<compile_context>
chip_gen: v7x
topology: tpu7x:2x2x1
jax: 0.10.0
libtpu: 0.0.40
codegen_flags: <defaults>
</compile_context>

<pallas_src>
import jax
import jax.numpy as jnp
from jax.experimental import pallas as pl
from jax.experimental.pallas import tpu as pltpu

LEAKY_SLOPE = 0.2
BN_EPS = 1e-5
TILE_M_MAX = 1024          # review: larger row tiles; per-step VMEM stays tiny
LANE = 128
VMEM_LIMIT = 48 * 1024 * 1024


def _round_up(x, m):
    return (x + m - 1) // m * m


def _largest_divisor_leq(n, cap):
    for c in range(min(cap, n), 0, -1):
        if n % c == 0:
            return c
    return n


# ------------- pass 1: conv (2 row-pair taps) + bias + LeakyReLU + stats -----
def _make_conv_kernel(tile_m, wo):
    def kernel(g_ref, w_ref, b_ref, y_ref, sum_ref, sq_ref):
        g = g_ref[0]                                    # [tile_m + wo, K2] bf16
        # Conv2d(4,2,1) as two MXU matmuls over the dp in {0,1} row-pair taps;
        # the dp=1 tap is the same slab shifted down by Wo rows (halo rows).
        acc = jnp.dot(g[0:tile_m, :], w_ref[0],
                      preferred_element_type=jnp.float32)
        acc = acc + jnp.dot(g[wo:wo + tile_m, :], w_ref[1],
                            preferred_element_type=jnp.float32)
        acc = acc + b_ref[...]
        # LeakyReLU(0.2) in f32 (v5e has no bf16 VPU).
        acc = jnp.where(acc >= 0, acc, LEAKY_SLOPE * acc)
        yb = acc.astype(jnp.bfloat16)                   # bf16 activation storage
        y_ref[0] = yb
        # Per-channel partial sums for BatchNorm, taken from the stored
        # (bf16-rounded) values so the later affine is self-consistent.
        yf = yb.astype(jnp.float32)
        sum_ref[0] = jnp.sum(yf, axis=0, keepdims=True)
        sq_ref[0] = jnp.sum(yf * yf, axis=0, keepdims=True)
    return kernel


# ------------- pass 2 (final layer only): apply folded BatchNorm affine ------
def _bn_apply_kernel(y_ref, scale_ref, shift_ref, out_ref):
    out_ref[0] = (y_ref[0].astype(jnp.float32) * scale_ref[...]
                  + shift_ref[...])


def conv_leaky_stats(h_nhwc, w, b, prev_scale=None, prev_shift=None):
    """Conv2d(4,2,1) + LeakyReLU(0.2) + BN batch stats; NHWC input.

    The previous layer's BatchNorm affine (prev_scale / prev_shift, per
    channel) is folded into the XLA glue that builds the conv operand, so no
    separate BN-apply pass over HBM is needed for intermediate layers.
    Returns (y3, mean, var, meta) where y3 is bf16 [N*Mb, tile_m, c_pad].
    """
    N, H, W, Cin = h_nhwc.shape
    Cout = w.shape[0]
    assert H % 2 == 0 and W % 2 == 0
    Ho, Wo = H // 2, W // 2
    Hp = Ho + 1                        # row pairs of the padded input
    Mn = Ho * Wo                       # output pixels per batch element
    K2 = 8 * Cin                       # contraction size per row-pair tap
    c_pad = _round_up(Cout, LANE)      # lane-dense output channels

    # --- XLA glue: prev-layer BN affine -> pad -> row-pair / 4-wide gather ---
    x = h_nhwc.astype(jnp.float32)
    if prev_scale is not None:
        x = x * prev_scale + prev_shift              # folded BN of prev layer
    x = x.astype(jnp.bfloat16)
    xp = jnp.pad(x, ((0, 0), (1, 1), (1, 1), (0, 0)))       # [N, H+2, W+2, Cin]
    xr = xp.reshape(N, Hp, 2, W + 2, Cin)                    # row pairs (p, rh)
    taps = [xr[:, :, :, kw:kw + 2 * Wo:2, :] for kw in range(4)]
    g = jnp.stack(taps, axis=4)                 # [N, Hp, 2, Wo, 4, Cin]
    g = jnp.transpose(g, (0, 1, 3, 2, 4, 5))    # [N, Hp, Wo, 2, 4, Cin]
    g = g.reshape(N, Hp * Wo, K2)               # feature order (rh, kw, c)

    # Row tiling: tiles never cross a batch element and tile_m | Mn, so there
    # are no padded output rows (no stats masking needed).
    tile_m = Mn if Mn <= TILE_M_MAX else _largest_divisor_leq(Mn, TILE_M_MAX)
    mb = Mn // tile_m
    rows = tile_m + Wo                          # +Wo halo rows for the dp=1 tap
    if mb == 1:
        gb = g                                  # rows == Hp*Wo exactly
    else:
        gb = jnp.stack(
            [g[:, t * tile_m:t * tile_m + rows, :] for t in range(mb)], axis=1)
        gb = gb.reshape(N * mb, rows, K2)
    nt = N * mb

    # Weights: [Cout, Cin, 4, 4] -> per-tap [2, K2, c_pad] matching (rh, kw, c).
    wg = w.reshape(Cout, Cin, 2, 2, 4)          # o, c, dp, rh, kw
    wg = jnp.transpose(wg, (2, 3, 4, 1, 0)).reshape(2, K2, Cout)
    wg = jnp.pad(wg, ((0, 0), (0, 0), (0, c_pad - Cout))).astype(jnp.bfloat16)
    b_p = jnp.pad(b.astype(jnp.float32), (0, c_pad - Cout)).reshape(1, c_pad)

    cost = pl.CostEstimate(
        flops=int(4 * nt * tile_m * K2 * c_pad),
        transcendentals=0,
        bytes_accessed=int(nt * rows * K2 * 2 + 2 * K2 * c_pad * 2
                           + nt * tile_m * c_pad * 2 + 2 * nt * c_pad * 4
                           + c_pad * 4))

    y3, psum, psq = pl.pallas_call(
        _make_conv_kernel(tile_m, Wo),
        grid=(nt,),
        in_specs=[
            pl.BlockSpec((1, rows, K2), lambda i: (i, 0, 0)),     # streamed slab
            pl.BlockSpec((2, K2, c_pad), lambda i: (0, 0, 0)),    # resident W
            pl.BlockSpec((1, c_pad), lambda i: (0, 0)),           # resident bias
        ],
        out_specs=[
            pl.BlockSpec((1, tile_m, c_pad), lambda i: (i, 0, 0)),  # y tiles
            pl.BlockSpec((1, 1, c_pad), lambda i: (i, 0, 0)),       # partial sum
            pl.BlockSpec((1, 1, c_pad), lambda i: (i, 0, 0)),       # partial sq
        ],
        out_shape=[
            jax.ShapeDtypeStruct((nt, tile_m, c_pad), jnp.bfloat16),
            jax.ShapeDtypeStruct((nt, 1, c_pad), jnp.float32),
            jax.ShapeDtypeStruct((nt, 1, c_pad), jnp.float32),
        ],
        compiler_params=pltpu.CompilerParams(
            dimension_semantics=("parallel",),
            vmem_limit_bytes=VMEM_LIMIT),
        cost_estimate=cost,
    )(gb, wg, b_p)

    # Biased batch statistics (PyTorch training-mode normalization divides by M).
    m_total = float(N * Mn)
    csum = jnp.sum(psum[:, 0, :Cout], axis=0)
    csq = jnp.sum(psq[:, 0, :Cout], axis=0)
    mean = csum / m_total
    var = jnp.maximum(csq / m_total - mean * mean, 0.0)

    meta = (N, Ho, Wo, Cout, c_pad, tile_m, mb)
    return y3, mean, var, meta


def _to_nhwc(y3, meta):
    n, ho, wo, cout, c_pad, _, _ = meta
    return y3.reshape(n, ho, wo, c_pad)[..., :cout]


def bn_apply_final(y3, scale, shift, meta):
    """Dedicated Pallas BN-apply for the last layer (f32 encoder output)."""
    n, ho, wo, cout, c_pad, tile_m, mb = meta
    nt = n * mb
    s_p = jnp.pad(scale.astype(jnp.float32), (0, c_pad - cout)).reshape(1, c_pad)
    t_p = jnp.pad(shift.astype(jnp.float32), (0, c_pad - cout)).reshape(1, c_pad)
    cost = pl.CostEstimate(
        flops=int(2 * nt * tile_m * c_pad),
        transcendentals=0,
        bytes_accessed=int(nt * tile_m * c_pad * (2 + 4) + 2 * c_pad * 4))
    out = pl.pallas_call(
        _bn_apply_kernel,
        grid=(nt,),
        in_specs=[
            pl.BlockSpec((1, tile_m, c_pad), lambda i: (i, 0, 0)),
            pl.BlockSpec((1, c_pad), lambda i: (0, 0)),
            pl.BlockSpec((1, c_pad), lambda i: (0, 0)),
        ],
        out_specs=pl.BlockSpec((1, tile_m, c_pad), lambda i: (i, 0, 0)),
        out_shape=jax.ShapeDtypeStruct((nt, tile_m, c_pad), jnp.float32),
        compiler_params=pltpu.CompilerParams(
            dimension_semantics=("parallel",),
            vmem_limit_bytes=VMEM_LIMIT),
        cost_estimate=cost,
    )(y3, s_p, t_p)
    return out.reshape(n, ho, wo, c_pad)[..., :cout]


def init_encoder_params(key, nc, nef):
    """Deterministic synthetic parameters matching the PyTorch module shapes."""
    chans = [(nc, nef), (nef, nef * 2), (nef * 2, nef * 4), (nef * 4, nef * 8)]
    params = []
    for i, (cin, cout) in enumerate(chans):
        k = jax.random.fold_in(key, i)
        kw_, kb, kg, kbt = jax.random.split(k, 4)
        fan_in = cin * 16
        w = jax.random.normal(kw_, (cout, cin, 4, 4), jnp.float32) / jnp.sqrt(fan_in)
        b = 0.1 * jax.random.normal(kb, (cout,), jnp.float32)
        gamma = 1.0 + 0.1 * jax.random.normal(kg, (cout,), jnp.float32)
        beta = 0.1 * jax.random.normal(kbt, (cout,), jnp.float32)
        params.append((w, b, gamma, beta))
    return params


def encoder_forward(params, x_nchw):
    n = x_nchw.shape[0]
    h = jnp.transpose(x_nchw, (0, 2, 3, 1))       # single NCHW -> NHWC transpose
    scale = shift = None
    y3 = meta = None
    for (w, b, gamma, beta) in params:
        y3, mean, var, meta = conv_leaky_stats(h, w, b, scale, shift)
        scale = gamma * jax.lax.rsqrt(var + BN_EPS)
        shift = beta - mean * scale
        h = _to_nhwc(y3, meta)                    # bf16 NHWC feed for next layer
    out_nhwc = bn_apply_final(y3, scale, shift, meta)      # last layer's BN, f32
    # PyTorch flattens NCHW: one transpose at the end to match element order.
    out = jnp.transpose(out_nhwc, (0, 3, 1, 2))
    return out.reshape(n, -1)


def encoder_reference(params, x_nchw):
    """Pure-JAX reference with the same precision policy (bf16 conv operands,
    f32 accumulation, bf16 activation storage, training-mode biased BN)."""
    h = x_nchw
    for (w, b, g, bt) in params:
        z = jax.lax.conv_general_dilated(
            h.astype(jnp.bfloat16), w.astype(jnp.bfloat16),
            window_strides=(2, 2), padding=((1, 1), (1, 1)),
            dimension_numbers=("NCHW", "OIHW", "NCHW"),
            preferred_element_type=jnp.float32)
        z = z + b.reshape(1, -1, 1, 1)
        z = jnp.where(z >= 0, z, LEAKY_SLOPE * z)
        z = z.astype(jnp.bfloat16).astype(jnp.float32)   # bf16 activation storage
        mean = jnp.mean(z, axis=(0, 2, 3), keepdims=True)
        var = jnp.mean(jnp.square(z - mean), axis=(0, 2, 3), keepdims=True)
        h = ((z - mean) * jax.lax.rsqrt(var + BN_EPS)
             * g.reshape(1, -1, 1, 1) + bt.reshape(1, -1, 1, 1))
    return h.reshape(x_nchw.shape[0], -1)


if __name__ == "__main__":
    # Small deterministic config: nc=4, nef=8, isize=96, batch=2.
    # isize=96 makes layer 1's per-image pixel count (2304) exceed TILE_M_MAX,
    # exercising the multi-tile (halo-baked) path as well as single-tile layers.
    nc, nef, isize, batch = 4, 8, 96, 2

    key = jax.random.PRNGKey(0)
    k_params, k_x = jax.random.split(key)
    params = init_encoder_params(k_params, nc, nef)
    x = jax.random.normal(k_x, (batch, nc, isize, isize), jnp.float32)

    hidden = jax.jit(encoder_forward)(params, x)
    hidden = jax.block_until_ready(hidden)

    expected_dim = (nef * 8) * (isize // 16) ** 2
    assert hidden.shape == (batch, expected_dim), hidden.shape
    assert bool(jnp.all(jnp.isfinite(hidden)))

    ref = jax.jit(encoder_reference)(params, x)
    err = jnp.abs(hidden - ref)
    max_err = float(jnp.max(err))
    mean_err = float(jnp.mean(err))
    # Tolerances account for bf16 activation storage: rare one-ulp rounding
    # differences (vs. the reference's independent accumulation order) are
    # ~2-3e-2 absolute at the largest post-BN magnitudes; typical error is tiny.
    assert max_err < 5e-2, f"max |err| = {max_err}"
    assert mean_err < 2e-3, f"mean |err| = {mean_err}"
    print("KERNEL_OK")
</pallas_src>

<mosaic_0001>
module attributes {stable_mosaic.version = 11 : i64} {
  func.func @kernel(%arg0: i32, %arg1: memref<1x816x32xbf16, #tpu.memory_space<vmem>>, %arg2: memref<2x32x128xbf16, #tpu.memory_space<vmem>>, %arg3: memref<1x128xf32, #tpu.memory_space<vmem>>, %arg4: memref<1x768x128xbf16, #tpu.memory_space<vmem>>, %arg5: memref<1x1x128xf32, #tpu.memory_space<vmem>>, %arg6: memref<1x1x128xf32, #tpu.memory_space<vmem>>) attributes {dimension_semantics = [#tpu.dimension_semantics<parallel>], iteration_bounds = array<i64: 6>, scalar_prefetch = 0 : i64, scratch_operands = 0 : i64, tpu.core_type = #tpu.core_type<tc>, window_params = [{transform_indices = @transform_0, window_bounds = array<i64: 1, 816, 32>}, {pipeline_mode = #tpu.pipeline_mode<synchronous>, transform_indices = @transform_1, window_bounds = array<i64: 2, 32, 128>}, {pipeline_mode = #tpu.pipeline_mode<synchronous>, transform_indices = @transform_2, window_bounds = array<i64: 1, 128>}, {transform_indices = @transform_3, window_bounds = array<i64: 1, 768, 128>}, {transform_indices = @transform_4, window_bounds = array<i64: 1, 1, 128>}, {transform_indices = @transform_5, window_bounds = array<i64: 1, 1, 128>}]} {
    %c0 = arith.constant 0 : index
    %c0_0 = arith.constant 0 : index
    %c0_1 = arith.constant 0 : index
    %0 = vector.load %arg1[%c0, %c0_0, %c0_1] : memref<1x816x32xbf16, #tpu.memory_space<vmem>>, vector<1x816x32xbf16>
    %1 = vector.shape_cast %0 : vector<1x816x32xbf16> to vector<816x32xbf16>
    %2 = vector.extract_strided_slice %1 {offsets = [0, 0], sizes = [768, 32], strides = [1, 1]} : vector<816x32xbf16> to vector<768x32xbf16>
    %c0_2 = arith.constant 0 : index
    %c0_3 = arith.constant 0 : index
    %c0_4 = arith.constant 0 : index
    %3 = vector.load %arg2[%c0_2, %c0_3, %c0_4] : memref<2x32x128xbf16, #tpu.memory_space<vmem>>, vector<1x32x128xbf16>
    %4 = vector.shape_cast %3 : vector<1x32x128xbf16> to vector<32x128xbf16>
    %cst = arith.constant dense<0.000000e+00> : vector<768x128xf32>
    %5 = tpu.matmul %2, %4, %cst {dimension_numbers = #tpu.dot_dimension_numbers<[1], [0], [0], [1], [0, 0, 1, 1], [], []>} : vector<768x32xbf16>, vector<32x128xbf16>, vector<768x128xf32> -> vector<768x128xf32>
    %6 = vector.extract_strided_slice %1 {offsets = [48, 0], sizes = [768, 32], strides = [1, 1]} : vector<816x32xbf16> to vector<768x32xbf16>
    %c1 = arith.constant 1 : index
    %c0_5 = arith.constant 0 : index
    %c0_6 = arith.constant 0 : index
    %7 = vector.load %arg2[%c1, %c0_5, %c0_6] : memref<2x32x128xbf16, #tpu.memory_space<vmem>>, vector<1x32x128xbf16>
    %8 = vector.shape_cast %7 : vector<1x32x128xbf16> to vector<32x128xbf16>
    %cst_7 = arith.constant dense<0.000000e+00> : vector<768x128xf32>
    %9 = tpu.matmul %6, %8, %cst_7 {dimension_numbers = #tpu.dot_dimension_numbers<[1], [0], [0], [1], [0, 0, 1, 1], [], []>} : vector<768x32xbf16>, vector<32x128xbf16>, vector<768x128xf32> -> vector<768x128xf32>
    %10 = arith.addf %5, %9 : vector<768x128xf32>
    %c0_8 = arith.constant 0 : index
    %c0_9 = arith.constant 0 : index
    %11 = vector.load %arg3[%c0_8, %c0_9] : memref<1x128xf32, #tpu.memory_space<vmem>>, vector<1x128xf32>
    %12 = vector.broadcast %11 : vector<1x128xf32> to vector<768x128xf32>
    %13 = arith.addf %10, %12 : vector<768x128xf32>
    %cst_10 = arith.constant 0.000000e+00 : f32
    %14 = vector.broadcast %cst_10 : f32 to vector<768x128xf32>
    %15 = arith.cmpf oge, %13, %14 : vector<768x128xf32>
    %cst_11 = arith.constant 2.000000e-01 : f32
    %16 = vector.broadcast %cst_11 : f32 to vector<768x128xf32>
    %17 = arith.mulf %16, %13 : vector<768x128xf32>
    %18 = arith.select %15, %13, %17 : vector<768x128xi1>, vector<768x128xf32>
    %19 = arith.truncf %18 : vector<768x128xf32> to vector<768x128xbf16>
    %c0_12 = arith.constant 0 : index
    %c0_13 = arith.constant 0 : index
    %c0_14 = arith.constant 0 : index
    %20 = vector.load %arg4[%c0_12, %c0_13, %c0_14] : memref<1x768x128xbf16, #tpu.memory_space<vmem>>, vector<1x768x128xbf16>
    %21 = vector.shape_cast %20 : vector<1x768x128xbf16> to vector<768x128xbf16>
    %22 = vector.shape_cast %19 : vector<768x128xbf16> to vector<1x768x128xbf16>
    tpu.vector_store %arg4[%c0_12, %c0_13, %c0_14], %22 {strides = array<i32>} : memref<1x768x128xbf16, #tpu.memory_space<vmem>>, vector<1x768x128xbf16>,
    %23 = arith.extf %19 : vector<768x128xbf16> to vector<768x128xf32>
    %cst_15 = arith.constant dense<0.000000e+00> : vector<128xf32>
    %24 = vector.multi_reduction <add>, %23, %cst_15 [0] : vector<768x128xf32> to vector<128xf32>
    %25 = vector.shape_cast %24 : vector<128xf32> to vector<1x128xf32>
    %c0_16 = arith.constant 0 : index
    %c0_17 = arith.constant 0 : index
    %c0_18 = arith.constant 0 : index
    %26 = vector.load %arg5[%c0_16, %c0_17, %c0_18] : memref<1x1x128xf32, #tpu.memory_space<vmem>>, vector<1x1x128xf32>
    %27 = vector.shape_cast %26 : vector<1x1x128xf32> to vector<1x128xf32>
    %28 = vector.shape_cast %25 : vector<1x128xf32> to vector<1x1x128xf32>
    tpu.vector_store %arg5[%c0_16, %c0_17, %c0_18], %28 {strides = array<i32>} : memref<1x1x128xf32, #tpu.memory_space<vmem>>, vector<1x1x128xf32>,
    %29 = arith.mulf %23, %23 : vector<768x128xf32>
    %cst_19 = arith.constant dense<0.000000e+00> : vector<128xf32>
    %30 = vector.multi_reduction <add>, %29, %cst_19 [0] : vector<768x128xf32> to vector<128xf32>
    %31 = vector.shape_cast %30 : vector<128xf32> to vector<1x128xf32>
    %c0_20 = arith.constant 0 : index
    %c0_21 = arith.constant 0 : index
    %c0_22 = arith.constant 0 : index
    %32 = vector.load %arg6[%c0_20, %c0_21, %c0_22] : memref<1x1x128xf32, #tpu.memory_space<vmem>>, vector<1x1x128xf32>
    %33 = vector.shape_cast %32 : vector<1x1x128xf32> to vector<1x128xf32>
    %34 = vector.shape_cast %31 : vector<1x128xf32> to vector<1x1x128xf32>
    tpu.vector_store %arg6[%c0_20, %c0_21, %c0_22], %34 {strides = array<i32>} : memref<1x1x128xf32, #tpu.memory_space<vmem>>, vector<1x1x128xf32>,
    return
  }
  func.func @transform_0(%arg0: i32) -> (i32, i32, i32) {
    %c0_i32 = arith.constant 0 : i32
    %c0_i32_0 = arith.constant 0 : i32
    %c0_i32_1 = arith.constant 0 : i32
    return %arg0, %c0_i32, %c0_i32_0 : i32, i32, i32
  }
  func.func @transform_1(%arg0: i32) -> (i32, i32, i32) {
    %c0_i32 = arith.constant 0 : i32
    %c0_i32_0 = arith.constant 0 : i32
    %c0_i32_1 = arith.constant 0 : i32
    %c0_i32_2 = arith.constant 0 : i32
    return %c0_i32, %c0_i32_0, %c0_i32_1 : i32, i32, i32
  }
  func.func @transform_2(%arg0: i32) -> (i32, i32) {
    %c0_i32 = arith.constant 0 : i32
    %c0_i32_0 = arith.constant 0 : i32
    %c0_i32_1 = arith.constant 0 : i32
    return %c0_i32, %c0_i32_0 : i32, i32
  }
  func.func @transform_3(%arg0: i32) -> (i32, i32, i32) {
    %c0_i32 = arith.constant 0 : i32
    %c0_i32_0 = arith.constant 0 : i32
    %c0_i32_1 = arith.constant 0 : i32
    return %arg0, %c0_i32, %c0_i32_0 : i32, i32, i32
  }
  func.func @transform_4(%arg0: i32) -> (i32, i32, i32) {
    %c0_i32 = arith.constant 0 : i32
    %c0_i32_0 = arith.constant 0 : i32
    %c0_i32_1 = arith.constant 0 : i32
    return %arg0, %c0_i32, %c0_i32_0 : i32, i32, i32
  }
  func.func @transform_5(%arg0: i32) -> (i32, i32, i32) {
    %c0_i32 = arith.constant 0 : i32
    %c0_i32_0 = arith.constant 0 : i32
    %c0_i32_1 = arith.constant 0 : i32
    return %arg0, %c0_i32, %c0_i32_0 : i32, i32, i32
  }
}

module attributes {stable_mosaic.version = 11 : i64} {
  func.func @kernel(%arg0: i32, %arg1: memref<1x600x64xbf16, #tpu.memory_space<vmem>>, %arg2: memref<2x64x128xbf16, #tpu.memory_space<vmem>>, %arg3: memref<1x128xf32, #tpu.memory_space<vmem>>, %arg4: memref<1x576x128xbf16, #tpu.memory_space<vmem>>, %arg5: memref<1x1x128xf32, #tpu.memory_space<vmem>>, %arg6: memref<1x1x128xf32, #tpu.memory_space<vmem>>) attributes {dimension_semantics = [#tpu.dimension_semantics<parallel>], iteration_bounds = array<i64: 2>, scalar_prefetch = 0 : i64, scratch_operands = 0 : i64, tpu.core_type = #tpu.core_type<tc>, window_params = [{transform_indices = @transform_0, window_bounds = array<i64: 1, 600, 64>}, {pipeline_mode = #tpu.pipeline_mode<synchronous>, transform_indices = @transform_1, window_bounds = array<i64: 2, 64, 128>}, {pipeline_mode = #tpu.pipeline_mode<synchronous>, transform_indices = @transform_2, window_bounds = array<i64: 1, 128>}, {transform_indices = @transform_3, window_bounds = array<i64: 1, 576, 128>}, {transform_indices = @transform_4, window_bounds = array<i64: 1, 1, 128>}, {transform_indices = @transform_5, window_bounds = array<i64: 1, 1, 128>}]} {
    %c0 = arith.constant 0 : index
    %c0_0 = arith.constant 0 : index
    %c0_1 = arith.constant 0 : index
    %0 = vector.load %arg1[%c0, %c0_0, %c0_1] : memref<1x600x64xbf16, #tpu.memory_space<vmem>>, vector<1x600x64xbf16>
    %1 = vector.shape_cast %0 : vector<1x600x64xbf16> to vector<600x64xbf16>
    %2 = vector.extract_strided_slice %1 {offsets = [0, 0], sizes = [576, 64], strides = [1, 1]} : vector<600x64xbf16> to vector<576x64xbf16>
    %c0_2 = arith.constant 0 : index
    %c0_3 = arith.constant 0 : index
    %c0_4 = arith.constant 0 : index
    %3 = vector.load %arg2[%c0_2, %c0_3, %c0_4] : memref<2x64x128xbf16, #tpu.memory_space<vmem>>, vector<1x64x128xbf16>
    %4 = vector.shape_cast %3 : vector<1x64x128xbf16> to vector<64x128xbf16>
    %cst = arith.constant dense<0.000000e+00> : vector<576x128xf32>
    %5 = tpu.matmul %2, %4, %cst {dimension_numbers = #tpu.dot_dimension_numbers<[1], [0], [0], [1], [0, 0, 1, 1], [], []>} : vector<576x64xbf16>, vector<64x128xbf16>, vector<576x128xf32> -> vector<576x128xf32>
    %6 = vector.extract_strided_slice %1 {offsets = [24, 0], sizes = [576, 64], strides = [1, 1]} : vector<600x64xbf16> to vector<576x64xbf16>
    %c1 = arith.constant 1 : index
    %c0_5 = arith.constant 0 : index
    %c0_6 = arith.constant 0 : index
    %7 = vector.load %arg2[%c1, %c0_5, %c0_6] : memref<2x64x128xbf16, #tpu.memory_space<vmem>>, vector<1x64x128xbf16>
    %8 = vector.shape_cast %7 : vector<1x64x128xbf16> to vector<64x128xbf16>
    %cst_7 = arith.constant dense<0.000000e+00> : vector<576x128xf32>
    %9 = tpu.matmul %6, %8, %cst_7 {dimension_numbers = #tpu.dot_dimension_numbers<[1], [0], [0], [1], [0, 0, 1, 1], [], []>} : vector<576x64xbf16>, vector<64x128xbf16>, vector<576x128xf32> -> vector<576x128xf32>
    %10 = arith.addf %5, %9 : vector<576x128xf32>
    %c0_8 = arith.constant 0 : index
    %c0_9 = arith.constant 0 : index
    %11 = vector.load %arg3[%c0_8, %c0_9] : memref<1x128xf32, #tpu.memory_space<vmem>>, vector<1x128xf32>
    %12 = vector.broadcast %11 : vector<1x128xf32> to vector<576x128xf32>
    %13 = arith.addf %10, %12 : vector<576x128xf32>
    %cst_10 = arith.constant 0.000000e+00 : f32
    %14 = vector.broadcast %cst_10 : f32 to vector<576x128xf32>
    %15 = arith.cmpf oge, %13, %14 : vector<576x128xf32>
    %cst_11 = arith.constant 2.000000e-01 : f32
    %16 = vector.broadcast %cst_11 : f32 to vector<576x128xf32>
    %17 = arith.mulf %16, %13 : vector<576x128xf32>
    %18 = arith.select %15, %13, %17 : vector<576x128xi1>, vector<576x128xf32>
    %19 = arith.truncf %18 : vector<576x128xf32> to vector<576x128xbf16>
    %c0_12 = arith.constant 0 : index
    %c0_13 = arith.constant 0 : index
    %c0_14 = arith.constant 0 : index
    %20 = vector.load %arg4[%c0_12, %c0_13, %c0_14] : memref<1x576x128xbf16, #tpu.memory_space<vmem>>, vector<1x576x128xbf16>
    %21 = vector.shape_cast %20 : vector<1x576x128xbf16> to vector<576x128xbf16>
    %22 = vector.shape_cast %19 : vector<576x128xbf16> to vector<1x576x128xbf16>
    tpu.vector_store %arg4[%c0_12, %c0_13, %c0_14], %22 {strides = array<i32>} : memref<1x576x128xbf16, #tpu.memory_space<vmem>>, vector<1x576x128xbf16>,
    %23 = arith.extf %19 : vector<576x128xbf16> to vector<576x128xf32>
    %cst_15 = arith.constant dense<0.000000e+00> : vector<128xf32>
    %24 = vector.multi_reduction <add>, %23, %cst_15 [0] : vector<576x128xf32> to vector<128xf32>
    %25 = vector.shape_cast %24 : vector<128xf32> to vector<1x128xf32>
    %c0_16 = arith.constant 0 : index
    %c0_17 = arith.constant 0 : index
    %c0_18 = arith.constant 0 : index
    %26 = vector.load %arg5[%c0_16, %c0_17, %c0_18] : memref<1x1x128xf32, #tpu.memory_space<vmem>>, vector<1x1x128xf32>
    %27 = vector.shape_cast %26 : vector<1x1x128xf32> to vector<1x128xf32>
    %28 = vector.shape_cast %25 : vector<1x128xf32> to vector<1x1x128xf32>
    tpu.vector_store %arg5[%c0_16, %c0_17, %c0_18], %28 {strides = array<i32>} : memref<1x1x128xf32, #tpu.memory_space<vmem>>, vector<1x1x128xf32>,
    %29 = arith.mulf %23, %23 : vector<576x128xf32>
    %cst_19 = arith.constant dense<0.000000e+00> : vector<128xf32>
    %30 = vector.multi_reduction <add>, %29, %cst_19 [0] : vector<576x128xf32> to vector<128xf32>
    %31 = vector.shape_cast %30 : vector<128xf32> to vector<1x128xf32>
    %c0_20 = arith.constant 0 : index
    %c0_21 = arith.constant 0 : index
    %c0_22 = arith.constant 0 : index
    %32 = vector.load %arg6[%c0_20, %c0_21, %c0_22] : memref<1x1x128xf32, #tpu.memory_space<vmem>>, vector<1x1x128xf32>
    %33 = vector.shape_cast %32 : vector<1x1x128xf32> to vector<1x128xf32>
    %34 = vector.shape_cast %31 : vector<1x128xf32> to vector<1x1x128xf32>
    tpu.vector_store %arg6[%c0_20, %c0_21, %c0_22], %34 {strides = array<i32>} : memref<1x1x128xf32, #tpu.memory_space<vmem>>, vector<1x1x128xf32>,
    return
  }
  func.func @transform_0(%arg0: i32) -> (i32, i32, i32) {
    %c0_i32 = arith.constant 0 : i32
    %c0_i32_0 = arith.constant 0 : i32
    %c0_i32_1 = arith.constant 0 : i32
    return %arg0, %c0_i32, %c0_i32_0 : i32, i32, i32
  }
  func.func @transform_1(%arg0: i32) -> (i32, i32, i32) {
    %c0_i32 = arith.constant 0 : i32
    %c0_i32_0 = arith.constant 0 : i32
    %c0_i32_1 = arith.constant 0 : i32
    %c0_i32_2 = arith.constant 0 : i32
    return %c0_i32, %c0_i32_0, %c0_i32_1 : i32, i32, i32
  }
  func.func @transform_2(%arg0: i32) -> (i32, i32) {
    %c0_i32 = arith.constant 0 : i32
    %c0_i32_0 = arith.constant 0 : i32
    %c0_i32_1 = arith.constant 0 : i32
    return %c0_i32, %c0_i32_0 : i32, i32
  }
  func.func @transform_3(%arg0: i32) -> (i32, i32, i32) {
    %c0_i32 = arith.constant 0 : i32
    %c0_i32_0 = arith.constant 0 : i32
    %c0_i32_1 = arith.constant 0 : i32
    return %arg0, %c0_i32, %c0_i32_0 : i32, i32, i32
  }
  func.func @transform_4(%arg0: i32) -> (i32, i32, i32) {
    %c0_i32 = arith.constant 0 : i32
    %c0_i32_0 = arith.constant 0 : i32
    %c0_i32_1 = arith.constant 0 : i32
    return %arg0, %c0_i32, %c0_i32_0 : i32, i32, i32
  }
  func.func @transform_5(%arg0: i32) -> (i32, i32, i32) {
    %c0_i32 = arith.constant 0 : i32
    %c0_i32_0 = arith.constant 0 : i32
    %c0_i32_1 = arith.constant 0 : i32
    return %arg0, %c0_i32, %c0_i32_0 : i32, i32, i32
  }
}

module attributes {stable_mosaic.version = 11 : i64} {
  func.func @kernel(%arg0: i32, %arg1: memref<1x156x128xbf16, #tpu.memory_space<vmem>>, %arg2: memref<2x128x128xbf16, #tpu.memory_space<vmem>>, %arg3: memref<1x128xf32, #tpu.memory_space<vmem>>, %arg4: memref<1x144x128xbf16, #tpu.memory_space<vmem>>, %arg5: memref<1x1x128xf32, #tpu.memory_space<vmem>>, %arg6: memref<1x1x128xf32, #tpu.memory_space<vmem>>) attributes {dimension_semantics = [#tpu.dimension_semantics<parallel>], iteration_bounds = array<i64: 2>, scalar_prefetch = 0 : i64, scratch_operands = 0 : i64, tpu.core_type = #tpu.core_type<tc>, window_params = [{transform_indices = @transform_0, window_bounds = array<i64: 1, 156, 128>}, {pipeline_mode = #tpu.pipeline_mode<synchronous>, transform_indices = @transform_1, window_bounds = array<i64: 2, 128, 128>}, {pipeline_mode = #tpu.pipeline_mode<synchronous>, transform_indices = @transform_2, window_bounds = array<i64: 1, 128>}, {transform_indices = @transform_3, window_bounds = array<i64: 1, 144, 128>}, {transform_indices = @transform_4, window_bounds = array<i64: 1, 1, 128>}, {transform_indices = @transform_5, window_bounds = array<i64: 1, 1, 128>}]} {
    %c0 = arith.constant 0 : index
    %c0_0 = arith.constant 0 : index
    %c0_1 = arith.constant 0 : index
    %0 = vector.load %arg1[%c0, %c0_0, %c0_1] : memref<1x156x128xbf16, #tpu.memory_space<vmem>>, vector<1x156x128xbf16>
    %1 = vector.shape_cast %0 : vector<1x156x128xbf16> to vector<156x128xbf16>
    %2 = vector.extract_strided_slice %1 {offsets = [0, 0], sizes = [144, 128], strides = [1, 1]} : vector<156x128xbf16> to vector<144x128xbf16>
    %c0_2 = arith.constant 0 : index
    %c0_3 = arith.constant 0 : index
    %c0_4 = arith.constant 0 : index
    %3 = vector.load %arg2[%c0_2, %c0_3, %c0_4] : memref<2x128x128xbf16, #tpu.memory_space<vmem>>, vector<1x128x128xbf16>
    %4 = vector.shape_cast %3 : vector<1x128x128xbf16> to vector<128x128xbf16>
    %cst = arith.constant dense<0.000000e+00> : vector<144x128xf32>
    %5 = tpu.matmul %2, %4, %cst {dimension_numbers = #tpu.dot_dimension_numbers<[1], [0], [0], [1], [0, 0, 1, 1], [], []>} : vector<144x128xbf16>, vector<128x128xbf16>, vector<144x128xf32> -> vector<144x128xf32>
    %6 = vector.extract_strided_slice %1 {offsets = [12, 0], sizes = [144, 128], strides = [1, 1]} : vector<156x128xbf16> to vector<144x128xbf16>
    %c1 = arith.constant 1 : index
    %c0_5 = arith.constant 0 : index
    %c0_6 = arith.constant 0 : index
    %7 = vector.load %arg2[%c1, %c0_5, %c0_6] : memref<2x128x128xbf16, #tpu.memory_space<vmem>>, vector<1x128x128xbf16>
    %8 = vector.shape_cast %7 : vector<1x128x128xbf16> to vector<128x128xbf16>
    %cst_7 = arith.constant dense<0.000000e+00> : vector<144x128xf32>
    %9 = tpu.matmul %6, %8, %cst_7 {dimension_numbers = #tpu.dot_dimension_numbers<[1], [0], [0], [1], [0, 0, 1, 1], [], []>} : vector<144x128xbf16>, vector<128x128xbf16>, vector<144x128xf32> -> vector<144x128xf32>
    %10 = arith.addf %5, %9 : vector<144x128xf32>
    %c0_8 = arith.constant 0 : index
    %c0_9 = arith.constant 0 : index
    %11 = vector.load %arg3[%c0_8, %c0_9] : memref<1x128xf32, #tpu.memory_space<vmem>>, vector<1x128xf32>
    %12 = vector.broadcast %11 : vector<1x128xf32> to vector<144x128xf32>
    %13 = arith.addf %10, %12 : vector<144x128xf32>
    %cst_10 = arith.constant 0.000000e+00 : f32
    %14 = vector.broadcast %cst_10 : f32 to vector<144x128xf32>
    %15 = arith.cmpf oge, %13, %14 : vector<144x128xf32>
    %cst_11 = arith.constant 2.000000e-01 : f32
    %16 = vector.broadcast %cst_11 : f32 to vector<144x128xf32>
    %17 = arith.mulf %16, %13 : vector<144x128xf32>
    %18 = arith.select %15, %13, %17 : vector<144x128xi1>, vector<144x128xf32>
    %19 = arith.truncf %18 : vector<144x128xf32> to vector<144x128xbf16>
    %c0_12 = arith.constant 0 : index
    %c0_13 = arith.constant 0 : index
    %c0_14 = arith.constant 0 : index
    %20 = vector.load %arg4[%c0_12, %c0_13, %c0_14] : memref<1x144x128xbf16, #tpu.memory_space<vmem>>, vector<1x144x128xbf16>
    %21 = vector.shape_cast %20 : vector<1x144x128xbf16> to vector<144x128xbf16>
    %22 = vector.shape_cast %19 : vector<144x128xbf16> to vector<1x144x128xbf16>
    tpu.vector_store %arg4[%c0_12, %c0_13, %c0_14], %22 {strides = array<i32>} : memref<1x144x128xbf16, #tpu.memory_space<vmem>>, vector<1x144x128xbf16>,
    %23 = arith.extf %19 : vector<144x128xbf16> to vector<144x128xf32>
    %cst_15 = arith.constant dense<0.000000e+00> : vector<128xf32>
    %24 = vector.multi_reduction <add>, %23, %cst_15 [0] : vector<144x128xf32> to vector<128xf32>
    %25 = vector.shape_cast %24 : vector<128xf32> to vector<1x128xf32>
    %c0_16 = arith.constant 0 : index
    %c0_17 = arith.constant 0 : index
    %c0_18 = arith.constant 0 : index
    %26 = vector.load %arg5[%c0_16, %c0_17, %c0_18] : memref<1x1x128xf32, #tpu.memory_space<vmem>>, vector<1x1x128xf32>
    %27 = vector.shape_cast %26 : vector<1x1x128xf32> to vector<1x128xf32>
    %28 = vector.shape_cast %25 : vector<1x128xf32> to vector<1x1x128xf32>
    tpu.vector_store %arg5[%c0_16, %c0_17, %c0_18], %28 {strides = array<i32>} : memref<1x1x128xf32, #tpu.memory_space<vmem>>, vector<1x1x128xf32>,
    %29 = arith.mulf %23, %23 : vector<144x128xf32>
    %cst_19 = arith.constant dense<0.000000e+00> : vector<128xf32>
    %30 = vector.multi_reduction <add>, %29, %cst_19 [0] : vector<144x128xf32> to vector<128xf32>
    %31 = vector.shape_cast %30 : vector<128xf32> to vector<1x128xf32>
    %c0_20 = arith.constant 0 : index
    %c0_21 = arith.constant 0 : index
    %c0_22 = arith.constant 0 : index
    %32 = vector.load %arg6[%c0_20, %c0_21, %c0_22] : memref<1x1x128xf32, #tpu.memory_space<vmem>>, vector<1x1x128xf32>
    %33 = vector.shape_cast %32 : vector<1x1x128xf32> to vector<1x128xf32>
    %34 = vector.shape_cast %31 : vector<1x128xf32> to vector<1x1x128xf32>
    tpu.vector_store %arg6[%c0_20, %c0_21, %c0_22], %34 {strides = array<i32>} : memref<1x1x128xf32, #tpu.memory_space<vmem>>, vector<1x1x128xf32>,
    return
  }
  func.func @transform_0(%arg0: i32) -> (i32, i32, i32) {
    %c0_i32 = arith.constant 0 : i32
    %c0_i32_0 = arith.constant 0 : i32
    %c0_i32_1 = arith.constant 0 : i32
    return %arg0, %c0_i32, %c0_i32_0 : i32, i32, i32
  }
  func.func @transform_1(%arg0: i32) -> (i32, i32, i32) {
    %c0_i32 = arith.constant 0 : i32
    %c0_i32_0 = arith.constant 0 : i32
    %c0_i32_1 = arith.constant 0 : i32
    %c0_i32_2 = arith.constant 0 : i32
    return %c0_i32, %c0_i32_0, %c0_i32_1 : i32, i32, i32
  }
  func.func @transform_2(%arg0: i32) -> (i32, i32) {
    %c0_i32 = arith.constant 0 : i32
    %c0_i32_0 = arith.constant 0 : i32
    %c0_i32_1 = arith.constant 0 : i32
    return %c0_i32, %c0_i32_0 : i32, i32
  }
  func.func @transform_3(%arg0: i32) -> (i32, i32, i32) {
    %c0_i32 = arith.constant 0 : i32
    %c0_i32_0 = arith.constant 0 : i32
    %c0_i32_1 = arith.constant 0 : i32
    return %arg0, %c0_i32, %c0_i32_0 : i32, i32, i32
  }
  func.func @transform_4(%arg0: i32) -> (i32, i32, i32) {
    %c0_i32 = arith.constant 0 : i32
    %c0_i32_0 = arith.constant 0 : i32
    %c0_i32_1 = arith.constant 0 : i32
    return %arg0, %c0_i32, %c0_i32_0 : i32, i32, i32
  }
  func.func @transform_5(%arg0: i32) -> (i32, i32, i32) {
    %c0_i32 = arith.constant 0 : i32
    %c0_i32_0 = arith.constant 0 : i32
    %c0_i32_1 = arith.constant 0 : i32
    return %arg0, %c0_i32, %c0_i32_0 : i32, i32, i32
  }
}

module attributes {stable_mosaic.version = 11 : i64} {
  func.func @kernel(%arg0: i32, %arg1: memref<1x42x256xbf16, #tpu.memory_space<vmem>>, %arg2: memref<2x256x128xbf16, #tpu.memory_space<vmem>>, %arg3: memref<1x128xf32, #tpu.memory_space<vmem>>, %arg4: memref<1x36x128xbf16, #tpu.memory_space<vmem>>, %arg5: memref<1x1x128xf32, #tpu.memory_space<vmem>>, %arg6: memref<1x1x128xf32, #tpu.memory_space<vmem>>) attributes {dimension_semantics = [#tpu.dimension_semantics<parallel>], iteration_bounds = array<i64: 2>, scalar_prefetch = 0 : i64, scratch_operands = 0 : i64, tpu.core_type = #tpu.core_type<tc>, window_params = [{transform_indices = @transform_0, window_bounds = array<i64: 1, 42, 256>}, {pipeline_mode = #tpu.pipeline_mode<synchronous>, transform_indices = @transform_1, window_bounds = array<i64: 2, 256, 128>}, {pipeline_mode = #tpu.pipeline_mode<synchronous>, transform_indices = @transform_2, window_bounds = array<i64: 1, 128>}, {transform_indices = @transform_3, window_bounds = array<i64: 1, 36, 128>}, {transform_indices = @transform_4, window_bounds = array<i64: 1, 1, 128>}, {transform_indices = @transform_5, window_bounds = array<i64: 1, 1, 128>}]} {
    %c0 = arith.constant 0 : index
    %c0_0 = arith.constant 0 : index
    %c0_1 = arith.constant 0 : index
    %0 = vector.load %arg1[%c0, %c0_0, %c0_1] : memref<1x42x256xbf16, #tpu.memory_space<vmem>>, vector<1x42x256xbf16>
    %1 = vector.shape_cast %0 : vector<1x42x256xbf16> to vector<42x256xbf16>
    %2 = vector.extract_strided_slice %1 {offsets = [0, 0], sizes = [36, 256], strides = [1, 1]} : vector<42x256xbf16> to vector<36x256xbf16>
    %c0_2 = arith.constant 0 : index
    %c0_3 = arith.constant 0 : index
    %c0_4 = arith.constant 0 : index
    %3 = vector.load %arg2[%c0_2, %c0_3, %c0_4] : memref<2x256x128xbf16, #tpu.memory_space<vmem>>, vector<1x256x128xbf16>
    %4 = vector.shape_cast %3 : vector<1x256x128xbf16> to vector<256x128xbf16>
    %cst = arith.constant dense<0.000000e+00> : vector<36x128xf32>
    %5 = tpu.matmul %2, %4, %cst {dimension_numbers = #tpu.dot_dimension_numbers<[1], [0], [0], [1], [0, 0, 1, 1], [], []>} : vector<36x256xbf16>, vector<256x128xbf16>, vector<36x128xf32> -> vector<36x128xf32>
    %6 = vector.extract_strided_slice %1 {offsets = [6, 0], sizes = [36, 256], strides = [1, 1]} : vector<42x256xbf16> to vector<36x256xbf16>
    %c1 = arith.constant 1 : index
    %c0_5 = arith.constant 0 : index
    %c0_6 = arith.constant 0 : index
    %7 = vector.load %arg2[%c1, %c0_5, %c0_6] : memref<2x256x128xbf16, #tpu.memory_space<vmem>>, vector<1x256x128xbf16>
    %8 = vector.shape_cast %7 : vector<1x256x128xbf16> to vector<256x128xbf16>
    %cst_7 = arith.constant dense<0.000000e+00> : vector<36x128xf32>
    %9 = tpu.matmul %6, %8, %cst_7 {dimension_numbers = #tpu.dot_dimension_numbers<[1], [0], [0], [1], [0, 0, 1, 1], [], []>} : vector<36x256xbf16>, vector<256x128xbf16>, vector<36x128xf32> -> vector<36x128xf32>
    %10 = arith.addf %5, %9 : vector<36x128xf32>
    %c0_8 = arith.constant 0 : index
    %c0_9 = arith.constant 0 : index
    %11 = vector.load %arg3[%c0_8, %c0_9] : memref<1x128xf32, #tpu.memory_space<vmem>>, vector<1x128xf32>
    %12 = vector.broadcast %11 : vector<1x128xf32> to vector<36x128xf32>
    %13 = arith.addf %10, %12 : vector<36x128xf32>
    %cst_10 = arith.constant 0.000000e+00 : f32
    %14 = vector.broadcast %cst_10 : f32 to vector<36x128xf32>
    %15 = arith.cmpf oge, %13, %14 : vector<36x128xf32>
    %cst_11 = arith.constant 2.000000e-01 : f32
    %16 = vector.broadcast %cst_11 : f32 to vector<36x128xf32>
    %17 = arith.mulf %16, %13 : vector<36x128xf32>
    %18 = arith.select %15, %13, %17 : vector<36x128xi1>, vector<36x128xf32>
    %19 = arith.truncf %18 : vector<36x128xf32> to vector<36x128xbf16>
    %c0_12 = arith.constant 0 : index
    %c0_13 = arith.constant 0 : index
    %c0_14 = arith.constant 0 : index
    %20 = vector.load %arg4[%c0_12, %c0_13, %c0_14] : memref<1x36x128xbf16, #tpu.memory_space<vmem>>, vector<1x36x128xbf16>
    %21 = vector.shape_cast %20 : vector<1x36x128xbf16> to vector<36x128xbf16>
    %22 = vector.shape_cast %19 : vector<36x128xbf16> to vector<1x36x128xbf16>
    tpu.vector_store %arg4[%c0_12, %c0_13, %c0_14], %22 {strides = array<i32>} : memref<1x36x128xbf16, #tpu.memory_space<vmem>>, vector<1x36x128xbf16>,
    %23 = arith.extf %19 : vector<36x128xbf16> to vector<36x128xf32>
    %cst_15 = arith.constant dense<0.000000e+00> : vector<128xf32>
    %24 = vector.multi_reduction <add>, %23, %cst_15 [0] : vector<36x128xf32> to vector<128xf32>
    %25 = vector.shape_cast %24 : vector<128xf32> to vector<1x128xf32>
    %c0_16 = arith.constant 0 : index
    %c0_17 = arith.constant 0 : index
    %c0_18 = arith.constant 0 : index
    %26 = vector.load %arg5[%c0_16, %c0_17, %c0_18] : memref<1x1x128xf32, #tpu.memory_space<vmem>>, vector<1x1x128xf32>
    %27 = vector.shape_cast %26 : vector<1x1x128xf32> to vector<1x128xf32>
    %28 = vector.shape_cast %25 : vector<1x128xf32> to vector<1x1x128xf32>
    tpu.vector_store %arg5[%c0_16, %c0_17, %c0_18], %28 {strides = array<i32>} : memref<1x1x128xf32, #tpu.memory_space<vmem>>, vector<1x1x128xf32>,
    %29 = arith.mulf %23, %23 : vector<36x128xf32>
    %cst_19 = arith.constant dense<0.000000e+00> : vector<128xf32>
    %30 = vector.multi_reduction <add>, %29, %cst_19 [0] : vector<36x128xf32> to vector<128xf32>
    %31 = vector.shape_cast %30 : vector<128xf32> to vector<1x128xf32>
    %c0_20 = arith.constant 0 : index
    %c0_21 = arith.constant 0 : index
    %c0_22 = arith.constant 0 : index
    %32 = vector.load %arg6[%c0_20, %c0_21, %c0_22] : memref<1x1x128xf32, #tpu.memory_space<vmem>>, vector<1x1x128xf32>
    %33 = vector.shape_cast %32 : vector<1x1x128xf32> to vector<1x128xf32>
    %34 = vector.shape_cast %31 : vector<1x128xf32> to vector<1x1x128xf32>
    tpu.vector_store %arg6[%c0_20, %c0_21, %c0_22], %34 {strides = array<i32>} : memref<1x1x128xf32, #tpu.memory_space<vmem>>, vector<1x1x128xf32>,
    return
  }
  func.func @transform_0(%arg0: i32) -> (i32, i32, i32) {
    %c0_i32 = arith.constant 0 : i32
    %c0_i32_0 = arith.constant 0 : i32
    %c0_i32_1 = arith.constant 0 : i32
    return %arg0, %c0_i32, %c0_i32_0 : i32, i32, i32
  }
  func.func @transform_1(%arg0: i32) -> (i32, i32, i32) {
    %c0_i32 = arith.constant 0 : i32
    %c0_i32_0 = arith.constant 0 : i32
    %c0_i32_1 = arith.constant 0 : i32
    %c0_i32_2 = arith.constant 0 : i32
    return %c0_i32, %c0_i32_0, %c0_i32_1 : i32, i32, i32
  }
  func.func @transform_2(%arg0: i32) -> (i32, i32) {
    %c0_i32 = arith.constant 0 : i32
    %c0_i32_0 = arith.constant 0 : i32
    %c0_i32_1 = arith.constant 0 : i32
    return %c0_i32, %c0_i32_0 : i32, i32
  }
  func.func @transform_3(%arg0: i32) -> (i32, i32, i32) {
    %c0_i32 = arith.constant 0 : i32
    %c0_i32_0 = arith.constant 0 : i32
    %c0_i32_1 = arith.constant 0 : i32
    return %arg0, %c0_i32, %c0_i32_0 : i32, i32, i32
  }
  func.func @transform_4(%arg0: i32) -> (i32, i32, i32) {
    %c0_i32 = arith.constant 0 : i32
    %c0_i32_0 = arith.constant 0 : i32
    %c0_i32_1 = arith.constant 0 : i32
    return %arg0, %c0_i32, %c0_i32_0 : i32, i32, i32
  }
  func.func @transform_5(%arg0: i32) -> (i32, i32, i32) {
    %c0_i32 = arith.constant 0 : i32
    %c0_i32_0 = arith.constant 0 : i32
    %c0_i32_1 = arith.constant 0 : i32
    return %arg0, %c0_i32, %c0_i32_0 : i32, i32, i32
  }
}

module attributes {stable_mosaic.version = 11 : i64} {
  func.func @_bn_apply_kernel(%arg0: i32, %arg1: memref<1x36x128xbf16, #tpu.memory_space<vmem>>, %arg2: memref<1x128xf32, #tpu.memory_space<vmem>>, %arg3: memref<1x128xf32, #tpu.memory_space<vmem>>, %arg4: memref<1x36x128xf32, #tpu.memory_space<vmem>>) attributes {dimension_semantics = [#tpu.dimension_semantics<parallel>], iteration_bounds = array<i64: 2>, scalar_prefetch = 0 : i64, scratch_operands = 0 : i64, tpu.core_type = #tpu.core_type<tc>, window_params = [{transform_indices = @transform_0, window_bounds = array<i64: 1, 36, 128>}, {pipeline_mode = #tpu.pipeline_mode<synchronous>, transform_indices = @transform_1, window_bounds = array<i64: 1, 128>}, {pipeline_mode = #tpu.pipeline_mode<synchronous>, transform_indices = @transform_2, window_bounds = array<i64: 1, 128>}, {transform_indices = @transform_3, window_bounds = array<i64: 1, 36, 128>}]} {
    %c0 = arith.constant 0 : index
    %c0_0 = arith.constant 0 : index
    %c0_1 = arith.constant 0 : index
    %0 = vector.load %arg1[%c0, %c0_0, %c0_1] : memref<1x36x128xbf16, #tpu.memory_space<vmem>>, vector<1x36x128xbf16>
    %1 = vector.shape_cast %0 : vector<1x36x128xbf16> to vector<36x128xbf16>
    %2 = arith.extf %1 : vector<36x128xbf16> to vector<36x128xf32>
    %c0_2 = arith.constant 0 : index
    %c0_3 = arith.constant 0 : index
    %3 = vector.load %arg2[%c0_2, %c0_3] : memref<1x128xf32, #tpu.memory_space<vmem>>, vector<1x128xf32>
    %4 = vector.broadcast %3 : vector<1x128xf32> to vector<36x128xf32>
    %5 = arith.mulf %2, %4 : vector<36x128xf32>
    %c0_4 = arith.constant 0 : index
    %c0_5 = arith.constant 0 : index
    %6 = vector.load %arg3[%c0_4, %c0_5] : memref<1x128xf32, #tpu.memory_space<vmem>>, vector<1x128xf32>
    %7 = vector.broadcast %6 : vector<1x128xf32> to vector<36x128xf32>
    %8 = arith.addf %5, %7 : vector<36x128xf32>
    %c0_6 = arith.constant 0 : index
    %c0_7 = arith.constant 0 : index
    %c0_8 = arith.constant 0 : index
    %9 = vector.load %arg4[%c0_6, %c0_7, %c0_8] : memref<1x36x128xf32, #tpu.memory_space<vmem>>, vector<1x36x128xf32>
    %10 = vector.shape_cast %9 : vector<1x36x128xf32> to vector<36x128xf32>
    %11 = vector.shape_cast %8 : vector<36x128xf32> to vector<1x36x128xf32>
    tpu.vector_store %arg4[%c0_6, %c0_7, %c0_8], %11 {strides = array<i32>} : memref<1x36x128xf32, #tpu.memory_space<vmem>>, vector<1x36x128xf32>,
    return
  }
  func.func @transform_0(%arg0: i32) -> (i32, i32, i32) {
    %c0_i32 = arith.constant 0 : i32
    %c0_i32_0 = arith.constant 0 : i32
    %c0_i32_1 = arith.constant 0 : i32
    return %arg0, %c0_i32, %c0_i32_0 : i32, i32, i32
  }
  func.func @transform_1(%arg0: i32) -> (i32, i32) {
    %c0_i32 = arith.constant 0 : i32
    %c0_i32_0 = arith.constant 0 : i32
    %c0_i32_1 = arith.constant 0 : i32
    return %c0_i32, %c0_i32_0 : i32, i32
  }
  func.func @transform_2(%arg0: i32) -> (i32, i32) {
    %c0_i32 = arith.constant 0 : i32
    %c0_i32_0 = arith.constant 0 : i32
    %c0_i32_1 = arith.constant 0 : i32
    return %c0_i32, %c0_i32_0 : i32, i32
  }
  func.func @transform_3(%arg0: i32) -> (i32, i32, i32) {
    %c0_i32 = arith.constant 0 : i32
    %c0_i32_0 = arith.constant 0 : i32
    %c0_i32_1 = arith.constant 0 : i32
    return %arg0, %c0_i32, %c0_i32_0 : i32, i32, i32
  }
}

</mosaic_0001>

<bundles_post_ra>
// kernel: encoder_forward.5
= control target key start
LH: loop header
LB: loop body
LE: loop exit
PB: predicated region body
PF: predicated region fallthrough
CT: control target
= control target key end

     0   :  { %s4138_s18 = smov 0   ;;  %s4893_s0 = inlined_call_operand.vmem [shape: bf16[6,816,32], index: 0, kind: input, shape index: {}]   ;;  %s4894_s1 = inlined_call_operand.vmem [shape: bf16[2,32,128], index: 1, kind: input, shape index: {}]   ;;  %s4895_s2 = inlined_call_operand.vmem [shape: f32[1,128], index: 2, kind: input, shape index: {}]   ;;  %s4896_s3 = inlined_call_operand.vmem [shape: bf16[6,768,128], index: 3, kind: output, shape index: {0}]   ;;  %s4897_s4 = inlined_call_operand.vmem [shape: f32[6,1,128], index: 4, kind: output, shape index: {1}]   ;;  %s4898_s5 = inlined_call_operand.vmem [shape: f32[6,1,128], index: 5, kind: output, shape index: {2}]  }
   0x1 LB: > { %s2993_s19 = sadd.s32 4294967295, %s4106_s18   ;;  %p2997_p0 = scmp.ge.s32.totalorder %s4106_s18, 1  ;;  %s4106_s18 = sphi %s4138_s18, %s16_s18  }
   0x2   : > { %p192_p1 = scmp.lt.s32.totalorder %s4106_s18, 7 }
   0x4   : > { %p193_p2 = pnand %p2997_p0, %p192_p1 }
   0x5   : > { %v4043_v0 = vld [vmem:[%s4894_s1 + $0x10] sm:$0xff] (!%p193_p2)   ;;  %p226_p3 = scmp.lt.s32.totalorder (!%p193_p2), %s2993_s19, 5  ;;  %v4044_v1 = vld [vmem:[%s4894_s1] sm:$0xff] (!%p193_p2)   ;;  %v4045_v2 = vld [vmem:[%s4894_s1 + $0x18] sm:$0xff] (!%p193_p2)   ;;  %vm606_vm0 = vcmask (!%p193_p2), 261120  }
   0x6   : > { %196 = sbr.rel (%p193_p2) target bundleno = 486 (0x1e6), region = 32  ;;  %3737 = vmatprep.subr.bf16.mxu1 (!%p193_p2), %v4043_v0  ;;  %3837 = vmatprep.subr.bf16.mxu0 (!%p193_p2), %v4044_v1  ;;  %v4046_v3 = vld [vmem:[%s4894_s1 + $0x8] sm:$0xff] (!%p193_p2)   ;;  %v4316_v57 = vld [vmem:[%s4895_s2] ss:$0 sm:$0xff] (!%p193_p2) }
   0x7   : > { %3738 = vmatpush3.bf16.msra.mxu1 (!%p193_p2), %v4043_v0  ;;  %3838 = vmatpush3.bf16.msra.mxu0 (!%p193_p2), %v4044_v1 }
   0x8   : > { %3739 = vmatprep.subr.bf16.mxu1 (!%p193_p2), %v4045_v2  ;;  %3839 = vmatprep.subr.bf16.mxu0 (!%p193_p2), %v4046_v3 }
   0xb   : > { %3740 = vmatpush3.bf16.msra.mxu1 (!%p193_p2), %v4045_v2  ;;  %3840 = vmatpush3.bf16.msra.mxu0 (!%p193_p2), %v4046_v3 }
   0xd   : > { %s4900_s19 = smov (!%p226_p3, %s2993_s19), 5 }
   0xe   : > { %s4033_s28 = smul.u32 408, %s4900_s19  ;;  %s238_s21 = scalar_lea.vmem %s4897_s4, %s4900_s19 }
   0xf   : > { %s4034_s9 = smul.u32 384, %s4900_s19  ;;  %s241_s24 = scalar_lea.vmem %s4898_s5, %s4900_s19 }
  0x10   : > { %s4164_s6 = scalar_lea.vmem %s4893_s0, %s4033_s28 }
  0x11   : > { %v4047_v4 = vld [vmem:[%s4164_s6 + $0x18] sm:$0xff]   ;;  %v4048_v5 = vld [vmem:[%s4164_s6] sm:$0xff]   ;;  %v4050_v7 = vld [vmem:[%s4164_s6 + $0x8] sm:$0xff]   ;;  %s4326_s12 = scalar_lea.vmem %s4896_s3, %s4034_s9 }
  0x12   : > { %3741 = vmatprep.mubr.msk.bf16.mxu1 %vm606_vm0, %v4047_v4  ;;  %v4049_v6 = vld [vmem:[%s4164_s6 + $0x20] sm:$0xff]   ;;  %3841 = vmatprep.mubr.msk.bf16.mxu0 %vm606_vm0, %v4048_v5  ;;  %v4051_v8 = vld [vmem:[%s4164_s6 + $0x28] sm:$0xff]   ;;  %v4052_v9 = vld [vmem:[%s4164_s6 + $0x10] sm:$0xff]  }
  0x13   : > { %3742 = vmatmul.mubr.msk.bf16.vlgmr.msra.gmra.mrb[0].mxu1 %vm606_vm0, %v4049_v6  ;;  %3842 = vmatmul.mubr.msk.bf16.vlgmr.msra.gmra.mrb[0].mxu0 %vm606_vm0, %v4050_v7  ;;  %v4053_v10 = vld [vmem:[%s4164_s6 + $0x30] sm:$0xff]   ;;  %v4054_v11 = vld [vmem:[%s4164_s6 + $0x38] sm:$0xff]   ;;  %v4055_v12 = vld [vmem:[%s4164_s6 + $0x40] sm:$0xff]  }
  0x14   : > { %3745 = vmatprep.mubr.msk.bf16.mxu1 %vm606_vm0, %v4051_v8  ;;  %3845 = vmatprep.mubr.msk.bf16.mxu0 %vm606_vm0, %v4052_v9  ;;  %v4056_v13 = vld [vmem:[%s4164_s6 + $0x48] sm:$0xff]   ;;  %v4057_v14 = vld [vmem:[%s4164_s6 + $0x50] sm:$0xff]   ;;  %v4058_v15 = vld [vmem:[%s4164_s6 + $0x58] sm:$0xff]  }
  0x15   : > { %v4059_v16 = vld [vmem:[%s4164_s6 + $0x60] sm:$0xff]   ;;  %v4060_v17 = vld [vmem:[%s4164_s6 + $0x68] sm:$0xff]   ;;  %v4061_v18 = vld [vmem:[%s4164_s6 + $0x70] sm:$0xff]  }
  0x16   : > { %v4062_v19 = vld [vmem:[%s4164_s6 + $0x78] sm:$0xff]   ;;  %v4063_v20 = vld [vmem:[%s4164_s6 + $0x80] sm:$0xff]   ;;  %v4064_v21 = vld [vmem:[%s4164_s6 + $0x88] sm:$0xff]  }
  0x17   : > { %v4065_v22 = vld [vmem:[%s4164_s6 + $0x90] sm:$0xff]   ;;  %v4066_v23 = vld [vmem:[%s4164_s6 + $0x98] sm:$0xff]   ;;  %v4067_v24 = vld [vmem:[%s4164_s6 + $0xa0] sm:$0xff]  }
  0x18   : > { %v4068_v25 = vld [vmem:[%s4164_s6 + $0xa8] sm:$0xff]   ;;  %v4069_v26 = vld [vmem:[%s4164_s6 + $0xb0] sm:$0xff]   ;;  %v4070_v27 = vld [vmem:[%s4164_s6 + $0xb8] sm:$0xff]  }
  0x19   : > { %v4071_v28 = vld [vmem:[%s4164_s6 + $0xc0] sm:$0xff]   ;;  %v4072_v29 = vld [vmem:[%s4164_s6 + $0xc8] sm:$0xff]   ;;  %v4073_v30 = vld [vmem:[%s4164_s6 + $0xd0] sm:$0xff]  }
  0x1a   : > { %v4074_v31 = vld [vmem:[%s4164_s6 + $0xd8] sm:$0xff]   ;;  %v4075_v32 = vld [vmem:[%s4164_s6 + $0xe0] sm:$0xff]   ;;  %v4076_v33 = vld [vmem:[%s4164_s6 + $0xe8] sm:$0xff]  }
  0x1b   : > { %3746 = vmatmul.mubr.msk.bf16.gmra.mrb[4].mxu1 %vm606_vm0, %v4053_v10  ;;  %3846 = vmatmul.mubr.msk.bf16.gmra.mrb[4].mxu0 %vm606_vm0, %v4047_v4  ;;  %v4077_v34 = vld [vmem:[%s4164_s6 + $0xf0] sm:$0xff]   ;;  %v4078_v35 = vld [vmem:[%s4164_s6 + $0xf8] sm:$0xff]   ;;  %v4079_v36 = vld [vmem:[%s4164_s6 + $0x100] sm:$0xff]  }
  0x1c   : > { %3749 = vmatprep.mubr.msk.bf16.mxu1 %vm606_vm0, %v4054_v11  ;;  %3849 = vmatprep.mubr.msk.bf16.mxu0 %vm606_vm0, %v4049_v6  ;;  %v4080_v37 = vld [vmem:[%s4164_s6 + $0x108] sm:$0xff]   ;;  %v4081_v38 = vld [vmem:[%s4164_s6 + $0x110] sm:$0xff]   ;;  %v4082_v39 = vld [vmem:[%s4164_s6 + $0x118] sm:$0xff]  }
  0x1d   : > { %v4083_v40 = vld [vmem:[%s4164_s6 + $0x120] sm:$0xff]   ;;  %v4084_v41 = vld [vmem:[%s4164_s6 + $0x128] sm:$0xff]   ;;  %v4085_v42 = vld [vmem:[%s4164_s6 + $0x130] sm:$0xff]  }
  0x1e   : > { %v4086_v43 = vld [vmem:[%s4164_s6 + $0x138] sm:$0xff]   ;;  %v4087_v44 = vld [vmem:[%s4164_s6 + $0x140] sm:$0xff]   ;;  %v4088_v45 = vld [vmem:[%s4164_s6 + $0x148] sm:$0xff]  }
  0x1f   : > { %v4089_v46 = vld [vmem:[%s4164_s6 + $0x150] sm:$0xff]   ;;  %v4090_v47 = vld [vmem:[%s4164_s6 + $0x158] sm:$0xff]   ;;  %v4091_v48 = vld [vmem:[%s4164_s6 + $0x160] sm:$0xff]  }
  0x20   : > { %v4092_v49 = vld [vmem:[%s4164_s6 + $0x168] sm:$0xff]   ;;  %v4093_v50 = vld [vmem:[%s4164_s6 + $0x170] sm:$0xff]   ;;  %v4094_v51 = vld [vmem:[%s4164_s6 + $0x178] sm:$0xff]  }
  0x21   : > { %v4095_v52 = vld [vmem:[%s4164_s6 + $0x180] sm:$0xff]   ;;  %v4096_v53 = vld [vmem:[%s4164_s6 + $0x188] sm:$0xff]   ;;  %v4097_v54 = vld [vmem:[%s4164_s6 + $0x190] sm:$0xff]  }
  0x23   : > { %3750 = vmatmul.mubr.msk.bf16.gmra.mrb[8].mxu1 %vm606_vm0, %v4055_v12  ;;  %3850 = vmatmul.mubr.msk.bf16.gmra.mrb[8].mxu0 %vm606_vm0, %v4051_v8 }
  0x24   : > { %3753 = vmatprep.mubr.msk.bf16.mxu1 %vm606_vm0, %v4056_v13  ;;  %3853 = vmatprep.mubr.msk.bf16.mxu0 %vm606_vm0, %v4053_v10 }
  0x2b   : > { %3754 = vmatmul.mubr.msk.bf16.gmra.mrb[12].mxu1 %vm606_vm0, %v4057_v14  ;;  %3854 = vmatmul.mubr.msk.bf16.gmra.mrb[12].mxu0 %vm606_vm0, %v4054_v11 }
  0x2c   : > { %3757 = vmatprep.mubr.msk.bf16.mxu1 %vm606_vm0, %v4058_v15  ;;  %3857 = vmatprep.mubr.msk.bf16.mxu0 %vm606_vm0, %v4055_v12 }
  0x33   : > { %3758 = vmatmul.mubr.msk.bf16.gmra.mrb[16].mxu1 %vm606_vm0, %v4059_v16  ;;  %3858 = vmatmul.mubr.msk.bf16.gmra.mrb[16].mxu0 %vm606_vm0, %v4056_v13 }
  0x34   : > { %3761 = vmatprep.mubr.msk.bf16.mxu1 %vm606_vm0, %v4060_v17  ;;  %3861 = vmatprep.mubr.msk.bf16.mxu0 %vm606_vm0, %v4057_v14 }
  0x3b   : > { %3762 = vmatmul.mubr.msk.bf16.gmra.mrb[20].mxu1 %vm606_vm0, %v4061_v18  ;;  %3862 = vmatmul.mubr.msk.bf16.gmra.mrb[20].mxu0 %vm606_vm0, %v4058_v15 }
  0x3c   : > { %3765 = vmatprep.mubr.msk.bf16.mxu1 %vm606_vm0, %v4062_v19  ;;  %3865 = vmatprep.mubr.msk.bf16.mxu0 %vm606_vm0, %v4059_v16 }
  0x43   : > { %3766 = vmatmul.mubr.msk.bf16.gmra.mrb[24].mxu1 %vm606_vm0, %v4063_v20  ;;  %3866 = vmatmul.mubr.msk.bf16.gmra.mrb[24].mxu0 %vm606_vm0, %v4060_v17 }
  0x44   : > { %3769 = vmatprep.mubr.msk.bf16.mxu1 %vm606_vm0, %v4064_v21  ;;  %3869 = vmatprep.mubr.msk.bf16.mxu0 %vm606_vm0, %v4061_v18 }
  0x4b   : > { %3770 = vmatmul.mubr.msk.bf16.gmra.mrb[28].mxu1 %vm606_vm0, %v4065_v22  ;;  %3870 = vmatmul.mubr.msk.bf16.gmra.mrb[28].mxu0 %vm606_vm0, %v4062_v19 }
  0x4c   : > { %3773 = vmatprep.mubr.msk.bf16.mxu1 %vm606_vm0, %v4066_v23  ;;  %3873 = vmatprep.mubr.msk.bf16.mxu0 %vm606_vm0, %v4063_v20 }
  0x53   : > { %3774 = vmatmul.mubr.msk.bf16.gmra.mrb[32].mxu1 %vm606_vm0, %v4067_v24  ;;  %3874 = vmatmul.mubr.msk.bf16.gmra.mrb[32].mxu0 %vm606_vm0, %v4064_v21 }
  0x54   : > { %3777 = vmatprep.mubr.msk.bf16.mxu1 %vm606_vm0, %v4068_v25  ;;  %3877 = vmatprep.mubr.msk.bf16.mxu0 %vm606_vm0, %v4065_v22 }
  0x5b   : > { %3778 = vmatmul.mubr.msk.bf16.gmra.mrb[36].mxu1 %vm606_vm0, %v4069_v26  ;;  %3878 = vmatmul.mubr.msk.bf16.gmra.mrb[36].mxu0 %vm606_vm0, %v4066_v23 }
  0x5c   : > { %3781 = vmatprep.mubr.msk.bf16.mxu1 %vm606_vm0, %v4070_v27  ;;  %3881 = vmatprep.mubr.msk.bf16.mxu0 %vm606_vm0, %v4067_v24 }
  0x63   : > { %3782 = vmatmul.mubr.msk.bf16.gmra.mrb[40].mxu1 %vm606_vm0, %v4071_v28  ;;  %3882 = vmatmul.mubr.msk.bf16.gmra.mrb[40].mxu0 %vm606_vm0, %v4068_v25 }
  0x64   : > { %3785 = vmatprep.mubr.msk.bf16.mxu1 %vm606_vm0, %v4072_v29  ;;  %3885 = vmatprep.mubr.msk.bf16.mxu0 %vm606_vm0, %v4069_v26 }
  0x6b   : > { %3786 = vmatmul.mubr.msk.bf16.gmra.mrb[44].mxu1 %vm606_vm0, %v4073_v30  ;;  %3886 = vmatmul.mubr.msk.bf16.gmra.mrb[44].mxu0 %vm606_vm0, %v4070_v27 }
  0x6c   : > { %3789 = vmatprep.mubr.msk.bf16.mxu1 %vm606_vm0, %v4074_v31  ;;  %3889 = vmatprep.mubr.msk.bf16.mxu0 %vm606_vm0, %v4071_v28 }
  0x73   : > { %3790 = vmatmul.mubr.msk.bf16.gmra.mrb[48].mxu1 %vm606_vm0, %v4075_v32  ;;  %3890 = vmatmul.mubr.msk.bf16.gmra.mrb[48].mxu0 %vm606_vm0, %v4072_v29 }
  0x74   : > { %3793 = vmatprep.mubr.msk.bf16.mxu1 %vm606_vm0, %v4076_v33  ;;  %3893 = vmatprep.mubr.msk.bf16.mxu0 %vm606_vm0, %v4073_v30 }
  0x7b   : > { %3794 = vmatmul.mubr.msk.bf16.gmra.mrb[52].mxu1 %vm606_vm0, %v4077_v34  ;;  %3894 = vmatmul.mubr.msk.bf16.gmra.mrb[52].mxu0 %vm606_vm0, %v4074_v31 }
  0x7c   : > { %3797 = vmatprep.mubr.msk.bf16.mxu1 %vm606_vm0, %v4078_v35  ;;  %3897 = vmatprep.mubr.msk.bf16.mxu0 %vm606_vm0, %v4075_v32 }
  0x83   : > { %3798 = vmatmul.mubr.msk.bf16.gmra.mrb[56].mxu1 %vm606_vm0, %v4079_v36  ;;  %3898 = vmatmul.mubr.msk.bf16.gmra.mrb[56].mxu0 %vm606_vm0, %v4076_v33 }
  0x84   : > { %3801 = vmatprep.mubr.msk.bf16.mxu1 %vm606_vm0, %v4080_v37  ;;  %3901 = vmatprep.mubr.msk.bf16.mxu0 %vm606_vm0, %v4077_v34 }
  0x8b   : > { %3802 = vmatmul.mubr.msk.bf16.gmra.mrb[60].mxu1 %vm606_vm0, %v4081_v38  ;;  %3902 = vmatmul.mubr.msk.bf16.gmra.mrb[60].mxu0 %vm606_vm0, %v4078_v35 }
  0x8c   : > { %3805 = vmatprep.mubr.msk.bf16.mxu1 %vm606_vm0, %v4082_v39  ;;  %3905 = vmatprep.mubr.msk.bf16.mxu0 %vm606_vm0, %v4079_v36 }
  0x93   : > { %3806 = vmatmul.mubr.msk.bf16.gmra.mrb[64].mxu1 %vm606_vm0, %v4083_v40  ;;  %3906 = vmatmul.mubr.msk.bf16.gmra.mrb[64].mxu0 %vm606_vm0, %v4080_v37 }
  0x94   : > { %3809 = vmatprep.mubr.msk.bf16.mxu1 %vm606_vm0, %v4084_v41  ;;  %3909 = vmatprep.mubr.msk.bf16.mxu0 %vm606_vm0, %v4081_v38 }
  0x9b   : > { %3810 = vmatmul.mubr.msk.bf16.gmra.mrb[68].mxu1 %vm606_vm0, %v4085_v42  ;;  %3910 = vmatmul.mubr.msk.bf16.gmra.mrb[68].mxu0 %vm606_vm0, %v4082_v39 }
  0x9c   : > { %3813 = vmatprep.mubr.msk.bf16.mxu1 %vm606_vm0, %v4086_v43  ;;  %3913 = vmatprep.mubr.msk.bf16.mxu0 %vm606_vm0, %v4083_v40 }
  0xa3   : > { %3814 = vmatmul.mubr.msk.bf16.gmra.mrb[72].mxu1 %vm606_vm0, %v4087_v44  ;;  %3914 = vmatmul.mubr.msk.bf16.gmra.mrb[72].mxu0 %vm606_vm0, %v4084_v41 }
  0xa4   : > { %3817 = vmatprep.mubr.msk.bf16.mxu1 %vm606_vm0, %v4088_v45  ;;  %3917 = vmatprep.mubr.msk.bf16.mxu0 %vm606_vm0, %v4085_v42 }
  0xab   : > { %3818 = vmatmul.mubr.msk.bf16.gmra.mrb[76].mxu1 %vm606_vm0, %v4089_v46  ;;  %3918 = vmatmul.mubr.msk.bf16.gmra.mrb[76].mxu0 %vm606_vm0, %v4086_v43 }
  0xac   : > { %3821 = vmatprep.mubr.msk.bf16.mxu1 %vm606_vm0, %v4090_v47  ;;  %3921 = vmatprep.mubr.msk.bf16.mxu0 %vm606_vm0, %v4087_v44 }
  0xb3   : > { %3822 = vmatmul.mubr.msk.bf16.gmra.mrb[80].mxu1 %vm606_vm0, %v4091_v48  ;;  %3922 = vmatmul.mubr.msk.bf16.gmra.mrb[80].mxu0 %vm606_vm0, %v4088_v45 }
  0xb4   : > { %3825 = vmatprep.mubr.msk.bf16.mxu1 %vm606_vm0, %v4092_v49  ;;  %3925 = vmatprep.mubr.msk.bf16.mxu0 %vm606_vm0, %v4089_v46 }
  0xbb   : > { %3826 = vmatmul.mubr.msk.bf16.gmra.mrb[84].mxu1 %vm606_vm0, %v4093_v50  ;;  %3926 = vmatmul.mubr.msk.bf16.gmra.mrb[84].mxu0 %vm606_vm0, %v4090_v47 }
  0xbc   : > { %3829 = vmatprep.mubr.msk.bf16.mxu1 %vm606_vm0, %v4094_v51  ;;  %3929 = vmatprep.mubr.msk.bf16.mxu0 %vm606_vm0, %v4091_v48 }
  0xc3   : > { %3830 = vmatmul.mubr.msk.bf16.gmra.mrb[88].mxu1 %vm606_vm0, %v4095_v52  ;;  %3930 = vmatmul.mubr.msk.bf16.gmra.mrb[88].mxu0 %vm606_vm0, %v4092_v49 }
  0xc4   : > { %3833 = vmatprep.mubr.msk.bf16.mxu1 %vm606_vm0, %v4096_v53  ;;  %3933 = vmatprep.mubr.msk.bf16.mxu0 %vm606_vm0, %v4093_v50 }
  0xcb   : > { %3834 = vmatmul.mubr.msk.bf16.gmra.mrb[92].mxu1 %vm606_vm0, %v4097_v54  ;;  %3934 = vmatmul.mubr.msk.bf16.gmra.mrb[92].mxu0 %vm606_vm0, %v4094_v51 }
  0xe6   : > { %v3743_v55 = vpop.f32.mrb[0].mxu1  ;;  %v3843_v56 = vpop.f32.mrb[0].mxu0 }
  0xe7   : > { %v785_v58 = vpop.f32.mrb[1].mxu1  ;;  %v1247_v59 = vadd.f32 %v3843_v56, %v3743_v55  ;;  %v1238_v60 = vpop.f32.mrb[1].mxu0 }
  0xe8   : > { %v3744_v61 = vpop.f32.mrb[2].mxu1  ;;  %v1239_v62 = vadd.f32 %v1238_v60, %v785_v58  ;;  %v3844_v63 = vpop.f32.mrb[2].mxu0 }
  0xe9   : > { %v788_v0 = vpop.f32.mrb[3].mxu1  ;;  %v1630_v1 = vadd.f32 %v4316_v57, %v1247_v59  ;;  %v1250_v2 = vadd.f32 %v3844_v63, %v3744_v61  ;;  %v1241_v3 = vpop.f32.mrb[3].mxu0 }
  0xea   : > { %v1628_v4 = vadd.f32 %v4316_v57, %v1239_v62  ;;  %v1242_v5 = vadd.f32 %v1241_v3, %v788_v0 }
  0xeb   : > { %v1822_v6 = vmul.f32 0.2, %v1630_v1  ;;  %v1631_v7 = vadd.f32 %v4316_v57, %v1250_v2  ;;  %vm1726_vm1 = vcmp.ge.f32.partialorder %v1630_v1, 0.0 }
  0xec   : > { %v1820_v8 = vmul.f32 0.2, %v1628_v4  ;;  %v1629_v9 = vadd.f32 %v4316_v57, %v1242_v5  ;;  %vm1724_vm2 = vcmp.ge.f32.partialorder %v1628_v4, 0.0 }
  0xed   : > { %vm1727_vm3 = vcmp.ge.f32.partialorder %v1631_v7, 0.0  ;;  %v1823_v10 = vmul.f32 0.2, %v1631_v7  ;;  %v1918_v15 = vsel %vm1726_vm1, %v1630_v1, %v1822_v6 }
  0xee   : > { %v3747_v11 = vpop.f32.mrb[4].mxu1  ;;  %vm1725_vm4 = vcmp.ge.f32.partialorder %v1629_v9, 0.0  ;;  %v1821_v12 = vmul.f32 0.2, %v1629_v9  ;;  %v3847_v13 = vpop.f32.mrb[4].mxu0  ;;  %v1916_v20 = vsel %vm1724_vm2, %v1628_v4, %v1820_v8 }
  0xef   : > { %v801_v14 = vpop.f32.mrb[5].mxu1  ;;  %v1919_v16 = vsel %vm1727_vm3, %v1631_v7, %v1823_v10  ;;  %v1263_v17 = vadd.f32 %v3847_v13, %v3747_v11  ;;  %v1254_v18 = vpop.f32.mrb[5].mxu0 }
  0xf0   : > { %v3748_v19 = vpop.f32.mrb[6].mxu1  ;;  %v2013_v21 = vpack.c.bf16 %v1919_v16, %v1918_v15  ;;  %v1917_v22 = vsel %vm1725_vm4, %v1629_v9, %v1821_v12  ;;  %v1255_v23 = vadd.f32 %v1254_v18, %v801_v14  ;;  %v3848_v24 = vpop.f32.mrb[6].mxu0 }
  0xf1   : > { %v804_v25 = vpop.f32.mrb[7].mxu1  ;;  %v2012_v26 = vpack.c.bf16 %v1917_v22, %v1916_v20  ;;  %v1634_v27 = vadd.f32 %v4316_v57, %v1263_v17  ;;  %v1266_v28 = vadd.f32 %v3848_v24, %v3748_v19  ;;  %v1257_v29 = vpop.f32.mrb[7].mxu0 }
  0xf2   : > { %3590 = vst [vmem:[%s4326_s12 + $0x8] sm:$0xff] %v2013_v21   ;;  %v2494_v30 = vunpack.c.l.bf16 %v2013_v21  ;;  %v2495_v31 = vunpack.c.h.bf16 %v2013_v21  ;;  %v1632_v32 = vadd.f32 %v4316_v57, %v1255_v23  ;;  %v1258_v33 = vadd.f32 %v1257_v29, %v804_v25 }
  0xf3   : > { %3354 = vst [vmem:[%s4326_s12] sm:$0xff] %v2012_v26   ;;  %v2492_v34 = vunpack.c.l.bf16 %v2012_v26  ;;  %v2493_v35 = vunpack.c.h.bf16 %v2012_v26  ;;  %v1826_v36 = vmul.f32 0.2, %v1634_v27  ;;  %vm1730_vm5 = vcmp.ge.f32.partialorder %v1634_v27, 0.0 }
  0xf4   : > { %v2692_v37 = vmul.f32 %v2494_v30, %v2494_v30  ;;  %v2693_v38 = vmul.f32 %v2495_v31, %v2495_v31  ;;  %vm1728_vm6 = vcmp.ge.f32.partialorder %v1632_v32, 0.0  ;;  %v1824_v43 = vmul.f32 0.2, %v1632_v32 }
  0xf5   : > { %v2588_v39 = vadd.f32 %v2493_v35, %v2492_v34  ;;  %v2690_v40 = vmul.f32 %v2492_v34, %v2492_v34  ;;  %v2691_v41 = vmul.f32 %v2493_v35, %v2493_v35  ;;  %v1635_v44 = vadd.f32 %v4316_v57, %v1266_v28 }
  0xf6   : > { %v3751_v42 = vpop.f32.mrb[8].mxu1  ;;  %v1633_v45 = vadd.f32 %v4316_v57, %v1258_v33  ;;  %v3851_v46 = vpop.f32.mrb[8].mxu0  ;;  %v1922_v50 = vsel %vm1730_vm5, %v1634_v27, %v1826_v36  ;;  %v1920_v63 = vsel %vm1728_vm6, %v1632_v32, %v1824_v43 }
  0xf7   : > { %v817_v47 = vpop.f32.mrb[9].mxu1  ;;  %v2589_v48 = vadd.f32 %v2588_v39, %v2494_v30  ;;  %v2786_v49 = vadd.f32 %v2691_v41, %v2690_v40  ;;  %v1279_v51 = vadd.f32 %v3851_v46, %v3751_v42  ;;  %v1270_v52 = vpop.f32.mrb[9].mxu0  ;;  %vm1731_vm7 = vcmp.ge.f32.partialorder %v1635_v44, 0.0 }
  0xf8   : > { %v3752_v53 = vpop.f32.mrb[10].mxu1  ;;  %v1827_v54 = vmul.f32 0.2, %v1635_v44  ;;  %vm1729_vm8 = vcmp.ge.f32.partialorder %v1633_v45, 0.0  ;;  %v1825_v55 = vmul.f32 0.2, %v1633_v45  ;;  %v1271_v60 = vadd.f32 %v1270_v52, %v817_v47 }
  0xf9   : > { %v2590_v56 = vadd.f32 %v2589_v48, %v2495_v31  ;;  %v2787_v58 = vadd.f32 %v2786_v49, %v2692_v37  ;;  %v1638_v59 = vadd.f32 %v4316_v57, %v1279_v51  ;;  %v3852_v61 = vpop.f32.mrb[10].mxu0  ;;  %v820_v62 = vpop.f32.mrb[11].mxu1 }
  0xfa   : > { %v1923_v0 = vsel %vm1731_vm7, %v1635_v44, %v1827_v54  ;;  %v1921_v1 = vsel %vm1729_vm8, %v1633_v45, %v1825_v55  ;;  %v1282_v2 = vadd.f32 %v3852_v61, %v3752_v53  ;;  %v1273_v3 = vpop.f32.mrb[11].mxu0  ;;  %v1636_v8 = vadd.f32 %v4316_v57, %v1271_v60 }
  0xfb   : > { %v2788_v4 = vadd.f32 %v2787_v58, %v2693_v38  ;;  %v2015_v5 = vpack.c.bf16 %v1923_v0, %v1922_v50  ;;  %v2014_v6 = vpack.c.bf16 %v1921_v1, %v1920_v63  ;;  %vm1734_vm9 = vcmp.ge.f32.partialorder %v1638_v59, 0.0 }
  0xfc   : > { %v1830_v7 = vmul.f32 0.2, %v1638_v59  ;;  %v1639_v9 = vadd.f32 %v4316_v57, %v1282_v2  ;;  %v1274_v10 = vadd.f32 %v1273_v3, %v820_v62  ;;  %vm1732_vm10 = vcmp.ge.f32.partialorder %v1636_v8, 0.0 }
  0xfd   : > { %3592 = vst [vmem:[%s4326_s12 + $0x18] sm:$0xff] %v2015_v5   ;;  %v2498_v11 = vunpack.c.l.bf16 %v2015_v5  ;;  %v2499_v12 = vunpack.c.h.bf16 %v2015_v5  ;;  %3591 = vst [vmem:[%s4326_s12 + $0x10] sm:$0xff] %v2014_v6   ;;  %v2496_v13 = vunpack.c.l.bf16 %v2014_v6  ;;  %v2497_v14 = vunpack.c.h.bf16 %v2014_v6 }
  0xfe   : > { %v3755_v15 = vpop.f32.mrb[12].mxu1  ;;  %v1926_v16 = vsel %vm1734_vm9, %v1638_v59, %v1830_v7  ;;  %v1828_v17 = vmul.f32 0.2, %v1636_v8  ;;  %v3855_v18 = vpop.f32.mrb[12].mxu0  ;;  %vm1735_vm11 = vcmp.ge.f32.partialorder %v1639_v9, 0.0  ;;  %v1637_v28 = vadd.f32 %v4316_v57, %v1274_v10 }
  0xff   : > { %v833_v19 = vpop.f32.mrb[13].mxu1  ;;  %v2696_v20 = vmul.f32 %v2498_v11, %v2498_v11  ;;  %v2591_v21 = vadd.f32 %v2590_v56, %v2496_v13  ;;  %v2694_v22 = vmul.f32 %v2496_v13, %v2496_v13  ;;  %v1286_v23 = vpop.f32.mrb[13].mxu0  ;;  %v2697_v25 = vmul.f32 %v2499_v12, %v2499_v12 }
 0x100   : > { %v3756_v24 = vpop.f32.mrb[14].mxu1  ;;  %v2695_v26 = vmul.f32 %v2497_v14, %v2497_v14  ;;  %v1831_v27 = vmul.f32 0.2, %v1639_v9  ;;  %v3856_v29 = vpop.f32.mrb[14].mxu0  ;;  %v1295_v33 = vadd.f32 %v3855_v18, %v3755_v15  ;;  %v1287_v34 = vadd.f32 %v1286_v23, %v833_v19 }
 0x101   : > { %v836_v30 = vpop.f32.mrb[15].mxu1  ;;  %v2592_v31 = vadd.f32 %v2591_v21, %v2497_v14  ;;  %v2789_v32 = vadd.f32 %v2788_v4, %v2694_v22  ;;  %v1289_v35 = vpop.f32.mrb[15].mxu0  ;;  %vm1733_vm12 = vcmp.ge.f32.partialorder %v1637_v28, 0.0  ;;  %v1829_v37 = vmul.f32 0.2, %v1637_v28 }
 0x102   : > { %v1927_v36 = vsel %vm1735_vm11, %v1639_v9, %v1831_v27  ;;  %v1298_v38 = vadd.f32 %v3856_v29, %v3756_v24  ;;  %v1642_v42 = vadd.f32 %v4316_v57, %v1295_v33  ;;  %v1640_v44 = vadd.f32 %v4316_v57, %v1287_v34 }
 0x103   : > { %v2593_v39 = vadd.f32 %v2592_v31, %v2498_v11  ;;  %v2790_v40 = vadd.f32 %v2789_v32, %v2695_v26  ;;  %v2017_v41 = vpack.c.bf16 %v1927_v36, %v1926_v16  ;;  %v1925_v43 = vsel %vm1733_vm12, %v1637_v28, %v1829_v37 }
 0x104   : > { %v1643_v45 = vadd.f32 %v4316_v57, %v1298_v38  ;;  %v1290_v46 = vadd.f32 %v1289_v35, %v836_v30  ;;  %v1924_v49 = vsel %vm1732_vm10, %v1636_v8, %v1828_v17  ;;  %vm1738_vm13 = vcmp.ge.f32.partialorder %v1642_v42, 0.0 }
 0x105   : > { %v2594_v47 = vadd.f32 %v2593_v39, %v2499_v12  ;;  %v2791_v48 = vadd.f32 %v2790_v40, %v2696_v20  ;;  %3594 = vst [vmem:[%s4326_s12 + $0x28] sm:$0xff] %v2017_v41   ;;  %v2502_v50 = vunpack.c.l.bf16 %v2017_v41  ;;  %v2016_v52 = vpack.c.bf16 %v1925_v43, %v1924_v49 }
 0x106   : > { %v3759_v51 = vpop.f32.mrb[16].mxu1  ;;  %v1834_v53 = vmul.f32 0.2, %v1642_v42  ;;  %vm1736_vm14 = vcmp.ge.f32.partialorder %v1640_v44, 0.0  ;;  %v3859_v54 = vpop.f32.mrb[16].mxu0  ;;  %v2503_v58 = vunpack.c.h.bf16 %v2017_v41  ;;  %vm1739_vm15 = vcmp.ge.f32.partialorder %v1643_v45, 0.0 }
 0x107   : > { %v849_v55 = vpop.f32.mrb[17].mxu1  ;;  %v2792_v56 = vadd.f32 %v2791_v48, %v2697_v25  ;;  %v2700_v59 = vmul.f32 %v2502_v50, %v2502_v50  ;;  %v1832_v60 = vmul.f32 0.2, %v1640_v44  ;;  %v1302_v61 = vpop.f32.mrb[17].mxu0  ;;  %3593 = vst [vmem:[%s4326_s12 + $0x20] sm:$0xff] %v2016_v52   ;;  %v2500_v63 = vunpack.c.l.bf16 %v2016_v52 }
 0x108   : > { %v3760_v62 = vpop.f32.mrb[18].mxu1  ;;  %v2501_v0 = vunpack.c.h.bf16 %v2016_v52  ;;  %v1930_v1 = vsel %vm1738_vm13, %v1642_v42, %v1834_v53  ;;  %v3860_v2 = vpop.f32.mrb[18].mxu0  ;;  %v1835_v5 = vmul.f32 0.2, %v1643_v45  ;;  %v1641_v6 = vadd.f32 %v4316_v57, %v1290_v46 }
 0x109   : > { %v852_v3 = vpop.f32.mrb[19].mxu1  ;;  %v1928_v4 = vsel %vm1736_vm14, %v1640_v44, %v1832_v60  ;;  %v1311_v7 = vadd.f32 %v3859_v54, %v3759_v51  ;;  %v1305_v8 = vpop.f32.mrb[19].mxu0  ;;  %v2595_v9 = vadd.f32 %v2594_v47, %v2500_v63  ;;  %v2698_v10 = vmul.f32 %v2500_v63, %v2500_v63 }
 0x10a   : > { %v2699_v11 = vmul.f32 %v2501_v0, %v2501_v0  ;;  %v1303_v12 = vadd.f32 %v1302_v61, %v849_v55  ;;  %v1931_v13 = vsel %vm1739_vm15, %v1643_v45, %v1835_v5  ;;  %vm1737_vm0 = vcmp.ge.f32.partialorder %v1641_v6, 0.0 }
 0x10b   : > { %v1833_v14 = vmul.f32 0.2, %v1641_v6  ;;  %v1646_v15 = vadd.f32 %v4316_v57, %v1311_v7  ;;  %v2596_v16 = vadd.f32 %v2595_v9, %v2501_v0  ;;  %v2793_v17 = vadd.f32 %v2792_v56, %v2698_v10 }
 0x10c   : > { %v2019_v18 = vpack.c.bf16 %v1931_v13, %v1930_v1  ;;  %v4351_v19 = vadd.f32 %v4316_v57, %v1303_v12  ;;  %v1314_v22 = vadd.f32 %v3860_v2, %v3760_v62  ;;  %v2701_v30 = vmul.f32 %v2503_v58, %v2503_v58 }
 0x10d   : > { %v1929_v20 = vsel %vm1737_vm0, %v1641_v6, %v1833_v14  ;;  %vm1742_vm1 = vcmp.ge.f32.partialorder %v1646_v15, 0.0  ;;  %v1838_v21 = vmul.f32 0.2, %v1646_v15  ;;  %v2597_v24 = vadd.f32 %v2596_v16, %v2502_v50 }
 0x10e   : > { %v3763_v23 = vpop.f32.mrb[20].mxu1  ;;  %v2794_v25 = vadd.f32 %v2793_v17, %v2699_v11  ;;  %3596 = vst [vmem:[%s4326_s12 + $0x38] sm:$0xff] %v2019_v18   ;;  %v2506_v26 = vunpack.c.l.bf16 %v2019_v18  ;;  %v2507_v27 = vunpack.c.h.bf16 %v2019_v18  ;;  %v3863_v28 = vpop.f32.mrb[20].mxu0  ;;  %v2018_v31 = vpack.c.bf16 %v1929_v20, %v1928_v4 }
 0x10f   : > { %v865_v29 = vpop.f32.mrb[21].mxu1  ;;  %v1934_v32 = vsel %vm1742_vm1, %v1646_v15, %v1838_v21  ;;  %vm1740_vm2 = vcmp.ge.f32.partialorder %v4351_v19, 0.0  ;;  %v1318_v33 = vpop.f32.mrb[21].mxu0  ;;  %v2598_v35 = vadd.f32 %v2597_v24, %v2503_v58  ;;  %v1836_v38 = vmul.f32 0.2, %v4351_v19 }
 0x110   : > { %v3764_v34 = vpop.f32.mrb[22].mxu1  ;;  %v2795_v36 = vadd.f32 %v2794_v25, %v2700_v59  ;;  %v2704_v37 = vmul.f32 %v2506_v26, %v2506_v26  ;;  %v3864_v39 = vpop.f32.mrb[22].mxu0  ;;  %v2705_v41 = vmul.f32 %v2507_v27, %v2507_v27  ;;  %3595 = vst [vmem:[%s4326_s12 + $0x30] sm:$0xff] %v2018_v31   ;;  %v2504_v42 = vunpack.c.l.bf16 %v2018_v31 }
 0x111   : > { %v868_v40 = vpop.f32.mrb[23].mxu1  ;;  %v2505_v43 = vunpack.c.h.bf16 %v2018_v31  ;;  %v1647_v44 = vadd.f32 %v4316_v57, %v1314_v22  ;;  %v1321_v45 = vpop.f32.mrb[23].mxu0  ;;  %v1306_v47 = vadd.f32 %v1305_v8, %v852_v3  ;;  %v1327_v48 = vadd.f32 %v3863_v28, %v3763_v23 }
 0x112   : > { %v2796_v46 = vadd.f32 %v2795_v36, %v2701_v30  ;;  %v1319_v49 = vadd.f32 %v1318_v33, %v865_v29  ;;  %v2599_v50 = vadd.f32 %v2598_v35, %v2504_v42  ;;  %v2702_v51 = vmul.f32 %v2504_v42, %v2504_v42 }
 0x113   : > { %v2703_v52 = vmul.f32 %v2505_v43, %v2505_v43  ;;  %vm1743_vm3 = vcmp.ge.f32.partialorder %v1647_v44, 0.0  ;;  %v1839_v53 = vmul.f32 0.2, %v1647_v44  ;;  %v1645_v54 = vadd.f32 %v4316_v57, %v1306_v47 }
 0x114   : > { %v1650_v55 = vadd.f32 %v4316_v57, %v1327_v48  ;;  %v1648_v56 = vadd.f32 %v4316_v57, %v1319_v49  ;;  %v2600_v58 = vadd.f32 %v2599_v50, %v2505_v43  ;;  %v2797_v59 = vadd.f32 %v2796_v46, %v2702_v51 }
 0x115   : > { %v1330_v60 = vadd.f32 %v3864_v39, %v3764_v34  ;;  %v1322_v61 = vadd.f32 %v1321_v45, %v868_v40  ;;  %v1935_v63 = vsel %vm1743_vm3, %v1647_v44, %v1839_v53  ;;  %vm1741_vm4 = vcmp.ge.f32.partialorder %v1645_v54, 0.0 }
 0x116   : > { %v3767_v62 = vpop.f32.mrb[24].mxu1  ;;  %v1837_v0 = vmul.f32 0.2, %v1645_v54  ;;  %vm1746_vm5 = vcmp.ge.f32.partialorder %v1650_v55, 0.0  ;;  %v3867_v1 = vpop.f32.mrb[24].mxu0  ;;  %v2601_v3 = vadd.f32 %v2600_v58, %v2506_v26  ;;  %v2798_v4 = vadd.f32 %v2797_v59, %v2703_v52 }
 0x117   : > { %v881_v2 = vpop.f32.mrb[25].mxu1  ;;  %v2021_v5 = vpack.c.bf16 %v1935_v63, %v1934_v32  ;;  %v1842_v6 = vmul.f32 0.2, %v1650_v55  ;;  %v1334_v7 = vpop.f32.mrb[25].mxu0  ;;  %vm1744_vm6 = vcmp.ge.f32.partialorder %v1648_v56, 0.0  ;;  %v1651_v11 = vadd.f32 %v4316_v57, %v1330_v60 }
 0x118   : > { %v3768_v8 = vpop.f32.mrb[26].mxu1  ;;  %v1933_v9 = vsel %vm1741_vm4, %v1645_v54, %v1837_v0  ;;  %v1840_v10 = vmul.f32 0.2, %v1648_v56  ;;  %v3868_v12 = vpop.f32.mrb[26].mxu0  ;;  %v2602_v14 = vadd.f32 %v2601_v3, %v2507_v27  ;;  %v2799_v15 = vadd.f32 %v2798_v4, %v2704_v37 }
 0x119   : > { %v884_v13 = vpop.f32.mrb[27].mxu1  ;;  %v1932_v16 = vsel %vm1740_vm2, %v4351_v19, %v1836_v38  ;;  %3598 = vst [vmem:[%s4326_s12 + $0x48] sm:$0xff] %v2021_v5   ;;  %v2510_v17 = vunpack.c.l.bf16 %v2021_v5  ;;  %v1337_v18 = vpop.f32.mrb[27].mxu0  ;;  %v2511_v20 = vunpack.c.h.bf16 %v2021_v5  ;;  %v1938_v22 = vsel %vm1746_vm5, %v1650_v55, %v1842_v6 }
 0x11a   : > { %v2020_v21 = vpack.c.bf16 %v1933_v9, %v1932_v16  ;;  %vm1747_vm7 = vcmp.ge.f32.partialorder %v1651_v11, 0.0  ;;  %v2800_v23 = vadd.f32 %v2799_v15, %v2705_v41  ;;  %v1936_v25 = vsel %vm1744_vm6, %v1648_v56, %v1840_v10 }
 0x11b   : > { %v2708_v24 = vmul.f32 %v2510_v17, %v2510_v17  ;;  %v1843_v26 = vmul.f32 0.2, %v1651_v11  ;;  %v1649_v29 = vadd.f32 %v4316_v57, %v1322_v61  ;;  %v1343_v30 = vadd.f32 %v3867_v1, %v3767_v62 }
 0x11c   : > { %3597 = vst [vmem:[%s4326_s12 + $0x40] sm:$0xff] %v2020_v21   ;;  %v2508_v27 = vunpack.c.l.bf16 %v2020_v21  ;;  %v2509_v28 = vunpack.c.h.bf16 %v2020_v21  ;;  %v1335_v31 = vadd.f32 %v1334_v7, %v881_v2  ;;  %v1346_v32 = vadd.f32 %v3868_v12, %v3768_v8 }
 0x11d   : > { %v1939_v19 = vsel %vm1747_vm7, %v1651_v11, %v1843_v26  ;;  %v1338_v33 = vadd.f32 %v1337_v18, %v884_v13  ;;  %v2709_v35 = vmul.f32 %v2511_v20, %v2511_v20  ;;  %vm1745_vm8 = vcmp.ge.f32.partialorder %v1649_v29, 0.0 }
 0x11e   : > { %v3771_v34 = vpop.f32.mrb[28].mxu1  ;;  %v2603_v36 = vadd.f32 %v2602_v14, %v2508_v27  ;;  %v2706_v37 = vmul.f32 %v2508_v27, %v2508_v27  ;;  %v2023_v38 = vpack.c.bf16 %v1939_v19, %v1938_v22  ;;  %v3871_v39 = vpop.f32.mrb[28].mxu0  ;;  %v1841_v41 = vmul.f32 0.2, %v1649_v29 }
 0x11f   : > { %v897_v40 = vpop.f32.mrb[29].mxu1  ;;  %v1654_v42 = vadd.f32 %v4316_v57, %v1343_v30  ;;  %v1652_v43 = vadd.f32 %v4316_v57, %v1335_v31  ;;  %v1350_v44 = vpop.f32.mrb[29].mxu0  ;;  %v2707_v47 = vmul.f32 %v2509_v28, %v2509_v28  ;;  %v1655_v63 = vadd.f32 %v4316_v57, %v1346_v32 }
 0x120   : > { %v3772_v45 = vpop.f32.mrb[30].mxu1  ;;  %v2604_v46 = vadd.f32 %v2603_v36, %v2509_v28  ;;  %v2801_v48 = vadd.f32 %v2800_v23, %v2706_v37  ;;  %3600 = vst [vmem:[%s4326_s12 + $0x58] sm:$0xff] %v2023_v38   ;;  %v2514_v49 = vunpack.c.l.bf16 %v2023_v38  ;;  %v3872_v50 = vpop.f32.mrb[30].mxu0  ;;  %v2515_v52 = vunpack.c.h.bf16 %v2023_v38 }
 0x121   : > { %v4373_v51 = vpop.f32.mrb[31].mxu1  ;;  %v1937_v53 = vsel %vm1745_vm8, %v1649_v29, %v1841_v41  ;;  %vm1750_vm9 = vcmp.ge.f32.partialorder %v1654_v42, 0.0  ;;  %v1846_v54 = vmul.f32 0.2, %v1654_v42  ;;  %v4375_v55 = vpop.f32.mrb[31].mxu0  ;;  %vm1748_vm10 = vcmp.ge.f32.partialorder %v1652_v43, 0.0 }
 0x122   : > { %v2605_v56 = vadd.f32 %v2604_v46, %v2510_v17  ;;  %v2802_v58 = vadd.f32 %v2801_v48, %v2707_v47  ;;  %v2712_v59 = vmul.f32 %v2514_v49, %v2514_v49  ;;  %v2022_v60 = vpack.c.bf16 %v1937_v53, %v1936_v25 }
 0x123   : > { %v1942_v61 = vsel %vm1750_vm9, %v1654_v42, %v1846_v54  ;;  %v1844_v62 = vmul.f32 0.2, %v1652_v43  ;;  %v1653_v2 = vadd.f32 %v4316_v57, %v1338_v33  ;;  %v1359_v3 = vadd.f32 %v3871_v39, %v3771_v34 }
 0x124   : > { %v2606_v0 = vadd.f32 %v2605_v56, %v2511_v20  ;;  %v2803_v1 = vadd.f32 %v2802_v58, %v2708_v24  ;;  %3599 = vst [vmem:[%s4326_s12 + $0x50] sm:$0xff] %v2022_v60   ;;  %v2512_v4 = vunpack.c.l.bf16 %v2022_v60  ;;  %v2513_v5 = vunpack.c.h.bf16 %v2022_v60 }
 0x125   : > { %v1940_v6 = vsel %vm1748_vm10, %v1652_v43, %v1844_v62  ;;  %vm1751_vm11 = vcmp.ge.f32.partialorder %v1655_v63, 0.0  ;;  %v1847_v9 = vmul.f32 0.2, %v1655_v63  ;;  %vm1749_vm12 = vcmp.ge.f32.partialorder %v1653_v2, 0.0 }
 0x126   : > { %v3775_v7 = vpop.f32.mrb[32].mxu1  ;;  %v2804_v8 = vadd.f32 %v2803_v1, %v2709_v35  ;;  %v1845_v10 = vmul.f32 0.2, %v1653_v2  ;;  %v3875_v11 = vpop.f32.mrb[32].mxu0  ;;  %v2607_v12 = vadd.f32 %v2606_v0, %v2512_v4  ;;  %v2710_v13 = vmul.f32 %v2512_v4, %v2512_v4 }
 0x127   : > { %v2711_v14 = vmul.f32 %v2513_v5, %v2513_v5  ;;  %v1658_v15 = vadd.f32 %v4316_v57, %v1359_v3  ;;  %v913_v16 = vpop.f32.mrb[33].mxu1  ;;  %v1366_v17 = vpop.f32.mrb[33].mxu0  ;;  %v1943_v18 = vsel %vm1751_vm11, %v1655_v63, %v1847_v9  ;;  %v1351_v21 = vadd.f32 %v1350_v44, %v897_v40 }
 0x128   : > { %v1941_v20 = vsel %vm1749_vm12, %v1653_v2, %v1845_v10  ;;  %v1362_v22 = vadd.f32 %v3872_v50, %v3772_v45  ;;  %v3776_v23 = vpop.f32.mrb[34].mxu1  ;;  %v3876_v24 = vpop.f32.mrb[34].mxu0  ;;  %v2608_v25 = vadd.f32 %v2607_v12, %v2513_v5  ;;  %v2805_v26 = vadd.f32 %v2804_v8, %v2710_v13 }
 0x129   : > { %v2025_v27 = vpack.c.bf16 %v1943_v18, %v1942_v61  ;;  %v2024_v28 = vpack.c.bf16 %v1941_v20, %v1940_v6  ;;  %v4381_v29 = vpop.f32.mrb[35].mxu1  ;;  %v4383_v30 = vpop.f32.mrb[35].mxu0  ;;  %vm1754_vm13 = vcmp.ge.f32.partialorder %v1658_v15, 0.0  ;;  %v1850_v19 = vmul.f32 0.2, %v1658_v15 }
 0x12a   : > { %v1656_v31 = vadd.f32 %v4316_v57, %v1351_v21  ;;  %v1659_v32 = vadd.f32 %v4316_v57, %v1362_v22  ;;  %v2609_v33 = vadd.f32 %v2608_v25, %v2514_v49  ;;  %v2806_v34 = vadd.f32 %v2805_v26, %v2711_v14 }
 0x12b   : > { %3602 = vst [vmem:[%s4326_s12 + $0x68] sm:$0xff] %v2025_v27   ;;  %v2518_v35 = vunpack.c.l.bf16 %v2025_v27  ;;  %v2519_v36 = vunpack.c.h.bf16 %v2025_v27  ;;  %3601 = vst [vmem:[%s4326_s12 + $0x60] sm:$0xff] %v2024_v28   ;;  %v2713_v37 = vmul.f32 %v2515_v52, %v2515_v52  ;;  %v2516_v38 = vunpack.c.l.bf16 %v2024_v28 }
 0x12c   : > { %v2517_v39 = vunpack.c.h.bf16 %v2024_v28  ;;  %v1946_v40 = vsel %vm1754_vm13, %v1658_v15, %v1850_v19  ;;  %v2610_v41 = vadd.f32 %v2609_v33, %v2515_v52  ;;  %v2807_v42 = vadd.f32 %v2806_v34, %v2712_v59 }
 0x12d   : > { %v2716_v43 = vmul.f32 %v2518_v35, %v2518_v35  ;;  %vm1752_vm14 = vcmp.ge.f32.partialorder %v1656_v31, 0.0  ;;  %v2717_v45 = vmul.f32 %v2519_v36, %v2519_v36  ;;  %v2714_v46 = vmul.f32 %v2516_v38, %v2516_v38 }
 0x12e   : > { %v3779_v44 = vpop.f32.mrb[36].mxu1  ;;  %v2715_v47 = vmul.f32 %v2517_v39, %v2517_v39  ;;  %vm1755_vm15 = vcmp.ge.f32.partialorder %v1659_v32, 0.0  ;;  %v3879_v48 = vpop.f32.mrb[36].mxu0  ;;  %v2808_v50 = vadd.f32 %v2807_v42, %v2713_v37  ;;  %v2611_v53 = vadd.f32 %v2610_v41, %v2516_v38 }
 0x12f   : > { %v929_v49 = vpop.f32.mrb[37].mxu1  ;;  %v1851_v54 = vmul.f32 0.2, %v1659_v32  ;;  %v1354_v56 = vadd.f32 %v4375_v55, %v4373_v51  ;;  %v1382_v58 = vpop.f32.mrb[37].mxu0  ;;  %v1848_v61 = vmul.f32 0.2, %v1656_v31  ;;  %v1375_v52 = vadd.f32 %v3875_v11, %v3775_v7 }
 0x130   : > { %v3780_v60 = vpop.f32.mrb[38].mxu1  ;;  %v1367_v59 = vadd.f32 %v1366_v17, %v913_v16  ;;  %v1378_v62 = vadd.f32 %v3876_v24, %v3776_v23  ;;  %v3880_v63 = vpop.f32.mrb[38].mxu0  ;;  %v2612_v1 = vadd.f32 %v2611_v53, %v2517_v39  ;;  %v2809_v2 = vadd.f32 %v2808_v50, %v2714_v46 }
 0x131   : > { %v4391_v0 = vpop.f32.mrb[39].mxu1  ;;  %v1947_v3 = vsel %vm1755_vm15, %v1659_v32, %v1851_v54  ;;  %v1657_v4 = vadd.f32 %v4316_v57, %v1354_v56  ;;  %v4395_v5 = vpop.f32.mrb[39].mxu0  ;;  %v1662_v51 = vadd.f32 %v4316_v57, %v1375_v52  ;;  %v1944_v16 = vsel %vm1752_vm14, %v1656_v31, %v1848_v61 }
 0x132   : > { %v2027_v6 = vpack.c.bf16 %v1947_v3, %v1946_v40  ;;  %v1660_v55 = vadd.f32 %v4316_v57, %v1367_v59  ;;  %v1663_v7 = vadd.f32 %v4316_v57, %v1378_v62  ;;  %v2613_v8 = vadd.f32 %v2612_v1, %v2518_v35 }
 0x133   : > { %v2810_v9 = vadd.f32 %v2809_v2, %v2715_v47  ;;  %vm1753_vm0 = vcmp.ge.f32.partialorder %v1657_v4, 0.0  ;;  %v1849_v10 = vmul.f32 0.2, %v1657_v4  ;;  %vm1758_vm1 = vcmp.ge.f32.partialorder %v1662_v51, 0.0 }
 0x134   : > { %3604 = vst [vmem:[%s4326_s12 + $0x78] sm:$0xff] %v2027_v6   ;;  %v2522_v11 = vunpack.c.l.bf16 %v2027_v6  ;;  %v2523_v12 = vunpack.c.h.bf16 %v2027_v6  ;;  %v1854_v13 = vmul.f32 0.2, %v1662_v51  ;;  %v2614_v14 = vadd.f32 %v2613_v8, %v2519_v36 }
 0x135   : > { %v2811_v15 = vadd.f32 %v2810_v9, %v2716_v43  ;;  %v1945_v17 = vsel %vm1753_vm0, %v1657_v4, %v1849_v10  ;;  %vm1756_vm2 = vcmp.ge.f32.partialorder %v1660_v55, 0.0  ;;  %vm1759_vm3 = vcmp.ge.f32.partialorder %v1663_v7, 0.0 }
 0x136   : > { %v4402_v18 = vpop.f32.mrb[40].mxu1  ;;  %v2720_v20 = vmul.f32 %v2522_v11, %v2522_v11  ;;  %v4404_v21 = vmul.f32 %v2523_v12, %v2523_v12  ;;  %v2026_v22 = vpack.c.bf16 %v1945_v17, %v1944_v16  ;;  %v3883_v23 = vpop.f32.mrb[40].mxu0  ;;  %v1950_v26 = vsel %vm1758_vm1, %v1662_v51, %v1854_v13 }
 0x137   : > { %v4406_v24 = vpop.f32.mrb[41].mxu1  ;;  %v2812_v25 = vadd.f32 %v2811_v15, %v2717_v45  ;;  %v1855_v27 = vmul.f32 0.2, %v1663_v7  ;;  %v1398_v28 = vpop.f32.mrb[41].mxu0  ;;  %v1370_v31 = vadd.f32 %v4383_v30, %v4381_v29  ;;  %v1391_v33 = vadd.f32 %v3879_v48, %v3779_v44 }
 0x138   : > { %3603 = vst [vmem:[%s4326_s12 + $0x70] sm:$0xff] %v2026_v22   ;;  %v2520_v19 = vunpack.c.l.bf16 %v2026_v22  ;;  %v2521_v32 = vunpack.c.h.bf16 %v2026_v22  ;;  %v3784_v34 = vpop.f32.mrb[42].mxu1  ;;  %v3884_v35 = vpop.f32.mrb[42].mxu0  ;;  %v1852_v36 = vmul.f32 0.2, %v1660_v55  ;;  %v1383_v38 = vadd.f32 %v1382_v58, %v929_v49 }
 0x139   : > { %v1951_v37 = vsel %vm1759_vm3, %v1663_v7, %v1855_v27  ;;  %v1394_v39 = vadd.f32 %v3880_v63, %v3780_v60  ;;  %v4411_v40 = vpop.f32.mrb[43].mxu1  ;;  %v4413_v41 = vpop.f32.mrb[43].mxu0  ;;  %v1661_v47 = vadd.f32 %v4316_v57, %v1370_v31  ;;  %v1666_v29 = vadd.f32 %v4316_v57, %v1391_v33 }
 0x13a   : > { %v2615_v42 = vadd.f32 %v2614_v14, %v2520_v19  ;;  %v2718_v43 = vmul.f32 %v2520_v19, %v2520_v19  ;;  %v2719_v45 = vmul.f32 %v2521_v32, %v2521_v32  ;;  %v2029_v46 = vpack.c.bf16 %v1951_v37, %v1950_v26 }
 0x13b   : > { %v1664_v30 = vadd.f32 %v4316_v57, %v1383_v38  ;;  %v1667_v44 = vadd.f32 %v4316_v57, %v1394_v39  ;;  %vm1757_vm4 = vcmp.ge.f32.partialorder %v1661_v47, 0.0  ;;  %v1853_v54 = vmul.f32 0.2, %v1661_v47 }
 0x13c   : > { %v2616_v48 = vadd.f32 %v2615_v42, %v2521_v32  ;;  %v2813_v50 = vadd.f32 %v2812_v25, %v2718_v43  ;;  %3606 = vst [vmem:[%s4326_s12 + $0x88] sm:$0xff] %v2029_v46   ;;  %v2526_v49 = vunpack.c.l.bf16 %v2029_v46  ;;  %v4420_v53 = vunpack.c.h.bf16 %v2029_v46 }
 0x13d   : > { %vm1762_vm5 = vcmp.ge.f32.partialorder %v1666_v29, 0.0  ;;  %v1858_v56 = vmul.f32 0.2, %v1666_v29  ;;  %v1948_v61 = vsel %vm1756_vm2, %v1660_v55, %v1852_v36  ;;  %v1949_v1 = vsel %vm1757_vm4, %v1661_v47, %v1853_v54 }
 0x13e   : > { %v2617_v58 = vadd.f32 %v2616_v48, %v2522_v11  ;;  %v2814_v60 = vadd.f32 %v2813_v50, %v2719_v45  ;;  %v4423_v52 = vmul.f32 %v2526_v49, %v2526_v49  ;;  %v4425_v59 = vpop.f32.mrb[44].mxu1  ;;  %v4427_v62 = vpop.f32.mrb[44].mxu0  ;;  %v4431_v63 = vmul.f32 %v4420_v53, %v4420_v53 }
 0x13f   : > { %v1954_v2 = vsel %vm1762_vm5, %v1666_v29, %v1858_v56  ;;  %v1856_v3 = vmul.f32 0.2, %v1664_v30  ;;  %v4433_v4 = vpop.f32.mrb[45].mxu1  ;;  %v4435_v6 = vpop.f32.mrb[45].mxu0  ;;  %v2028_v7 = vpack.c.bf16 %v1949_v1, %v1948_v61  ;;  %vm1763_vm6 = vcmp.ge.f32.partialorder %v1667_v44, 0.0 }
 0x140   : > { %v2618_v51 = vadd.f32 %v2617_v58, %v2523_v12  ;;  %v2815_v55 = vadd.f32 %v2814_v60, %v2720_v20  ;;  %v4437_v8 = vpop.f32.mrb[46].mxu1  ;;  %v4439_v9 = vpop.f32.mrb[46].mxu0  ;;  %vm1760_vm7 = vcmp.ge.f32.partialorder %v1664_v30, 0.0  ;;  %v1859_v10 = vmul.f32 0.2, %v1667_v44 }
 0x141   : > { %v1386_v11 = vadd.f32 %v4395_v5, %v4391_v0  ;;  %v1407_v13 = vadd.f32 %v3883_v23, %v4402_v18  ;;  %v4444_v14 = vpop.f32.mrb[47].mxu1  ;;  %v4446_v15 = vpop.f32.mrb[47].mxu0  ;;  %3605 = vst [vmem:[%s4326_s12 + $0x80] sm:$0xff] %v2028_v7   ;;  %v2524_v16 = vunpack.c.l.bf16 %v2028_v7  ;;  %v2525_v17 = vunpack.c.h.bf16 %v2028_v7 }
 0x142   : > { %v2816_v12 = vadd.f32 %v2815_v55, %v4404_v21  ;;  %v1399_v20 = vadd.f32 %v1398_v28, %v4406_v24  ;;  %v1955_v22 = vsel %vm1763_vm6, %v1667_v44, %v1859_v10  ;;  %v1410_v0 = vadd.f32 %v3884_v35, %v3784_v34 }
 0x143   : > { %v1665_v25 = vadd.f32 %v4316_v57, %v1386_v11  ;;  %v1670_v26 = vadd.f32 %v4316_v57, %v1407_v13  ;;  %v2619_v5 = vadd.f32 %v2618_v51, %v2524_v16  ;;  %v2722_v18 = vmul.f32 %v2524_v16, %v2524_v16 }
 0x144   : > { %v1952_v23 = vsel %vm1760_vm7, %v1664_v30, %v1856_v3  ;;  %v2031_v27 = vpack.c.bf16 %v1955_v22, %v1954_v2  ;;  %v2723_v31 = vmul.f32 %v2525_v17, %v2525_v17  ;;  %v1668_v35 = vadd.f32 %v4316_v57, %v1399_v20 }
 0x145   : > { %vm1761_vm8 = vcmp.ge.f32.partialorder %v1665_v25, 0.0  ;;  %v1857_v19 = vmul.f32 0.2, %v1665_v25  ;;  %vm1766_vm9 = vcmp.ge.f32.partialorder %v1670_v26, 0.0  ;;  %v1862_v21 = vmul.f32 0.2, %v1670_v26 }
 0x146   : > { %v2620_v32 = vadd.f32 %v2619_v5, %v2525_v17  ;;  %v2817_v33 = vadd.f32 %v2816_v12, %v2722_v18  ;;  %3608 = vst [vmem:[%s4326_s12 + $0x98] sm:$0xff] %v2031_v27   ;;  %v2530_v24 = vunpack.c.l.bf16 %v2031_v27  ;;  %v4455_v28 = vpop.f32.mrb[48].mxu1  ;;  %v4457_v36 = vpop.f32.mrb[48].mxu0  ;;  %v4459_v37 = vunpack.c.h.bf16 %v2031_v27 }
 0x147   : > { %v1953_v34 = vsel %vm1761_vm8, %v1665_v25, %v1857_v19  ;;  %v1671_v38 = vadd.f32 %v4316_v57, %v1410_v0  ;;  %v4463_v39 = vpop.f32.mrb[49].mxu1  ;;  %v4465_v42 = vpop.f32.mrb[49].mxu0  ;;  %v1958_v47 = vsel %vm1766_vm9, %v1670_v26, %v1862_v21  ;;  %vm1764_vm10 = vcmp.ge.f32.partialorder %v1668_v35, 0.0 }
 0x148   : > { %v2621_v43 = vadd.f32 %v2620_v32, %v2526_v49  ;;  %v2818_v45 = vadd.f32 %v2817_v33, %v2723_v31  ;;  %v2728_v46 = vmul.f32 %v2530_v24, %v2530_v24  ;;  %v4468_v29 = vpop.f32.mrb[50].mxu1  ;;  %v4470_v30 = vpop.f32.mrb[50].mxu0  ;;  %v2030_v44 = vpack.c.bf16 %v1953_v34, %v1952_v23 }
 0x149   : > { %v1860_v48 = vmul.f32 0.2, %v1668_v35  ;;  %vm1767_vm11 = vcmp.ge.f32.partialorder %v1671_v38, 0.0  ;;  %v4472_v50 = vpop.f32.mrb[51].mxu1  ;;  %v4474_v54 = vpop.f32.mrb[51].mxu0  ;;  %v1402_v60 = vadd.f32 %v4413_v41, %v4411_v40  ;;  %v2729_v61 = vmul.f32 %v4459_v37, %v4459_v37 }
 0x14a   : > { %v2819_v56 = vadd.f32 %v2818_v45, %v4423_v52  ;;  %v2622_v49 = vadd.f32 %v2621_v43, %v4420_v53  ;;  %v1863_v58 = vmul.f32 0.2, %v1671_v38  ;;  %3607 = vst [vmem:[%s4326_s12 + $0x90] sm:$0xff] %v2030_v44   ;;  %v2528_v1 = vunpack.c.l.bf16 %v2030_v44 }
 0x14b   : > { %v2529_v2 = vunpack.c.h.bf16 %v2030_v44  ;;  %v1423_v3 = vadd.f32 %v4427_v62, %v4425_v59  ;;  %v1669_v52 = vadd.f32 %v4316_v57, %v1402_v60  ;;  %v1415_v53 = vadd.f32 %v4435_v6, %v4433_v4  ;;  %v4495_v59 = vld [vmem:[%s4895_s2] ss:$0 sm:$0xff] }
 0x14c   : > { %v2820_v51 = vadd.f32 %v2819_v56, %v4431_v63  ;;  %v1959_v55 = vsel %vm1767_vm11, %v1671_v38, %v1863_v58  ;;  %v2623_v7 = vadd.f32 %v2622_v49, %v2528_v1  ;;  %v2726_v40 = vmul.f32 %v2528_v1, %v2528_v1 }
 0x14d   : > { %v1956_v41 = vsel %vm1764_vm10, %v1668_v35, %v1860_v48  ;;  %v2033_v10 = vpack.c.bf16 %v1959_v55, %v1958_v47  ;;  %vm1765_vm12 = vcmp.ge.f32.partialorder %v1669_v52, 0.0  ;;  %v1861_v13 = vmul.f32 0.2, %v1669_v52 }
 0x14e   : > { %v4490_v11 = vpop.f32.mrb[52].mxu1  ;;  %v1674_v57 = vadd.f32 %v4495_v59, %v1423_v3  ;;  %v1672_v62 = vadd.f32 %v4495_v59, %v1415_v53  ;;  %v4499_v63 = vpop.f32.mrb[52].mxu0  ;;  %v2624_v6 = vadd.f32 %v2623_v7, %v2529_v2  ;;  %v2727_v12 = vmul.f32 %v2529_v2, %v2529_v2 }
 0x14f   : > { %v4501_v4 = vpop.f32.mrb[53].mxu1  ;;  %v2821_v16 = vadd.f32 %v2820_v51, %v2726_v40  ;;  %3610 = vst [vmem:[%s4326_s12 + $0xa8] sm:$0xff] %v2033_v10   ;;  %v2534_v17 = vunpack.c.l.bf16 %v2033_v10  ;;  %v4504_v20 = vpop.f32.mrb[53].mxu0  ;;  %v4508_v25 = vunpack.c.h.bf16 %v2033_v10  ;;  %v1957_v26 = vsel %vm1765_vm12, %v1669_v52, %v1861_v13 }
 0x150   : > { %v4506_v22 = vpop.f32.mrb[54].mxu1  ;;  %vm1770_vm13 = vcmp.ge.f32.partialorder %v1674_v57, 0.0  ;;  %v1866_v0 = vmul.f32 0.2, %v1674_v57  ;;  %v4510_v5 = vpop.f32.mrb[54].mxu0  ;;  %v2625_v23 = vadd.f32 %v2624_v6, %v2530_v24  ;;  %vm1768_vm14 = vcmp.ge.f32.partialorder %v1672_v62, 0.0 }
 0x151   : > { %v4512_v18 = vpop.f32.mrb[55].mxu1  ;;  %v2822_v27 = vadd.f32 %v2821_v16, %v2727_v12  ;;  %v2732_v19 = vmul.f32 %v2534_v17, %v2534_v17  ;;  %v4514_v21 = vpop.f32.mrb[55].mxu0  ;;  %v2032_v32 = vpack.c.bf16 %v1957_v26, %v1956_v41  ;;  %v1864_v33 = vmul.f32 0.2, %v1672_v62 }
 0x152   : > { %v1962_v31 = vsel %vm1770_vm13, %v1674_v57, %v1866_v0  ;;  %v1426_v34 = vadd.f32 %v4439_v9, %v4437_v8  ;;  %v2626_v38 = vadd.f32 %v2625_v23, %v4459_v37  ;;  %v1418_v43 = vadd.f32 %v4446_v15, %v4444_v14 }
 0x153   : > { %v2823_v35 = vadd.f32 %v2822_v27, %v2728_v46  ;;  %v1439_v24 = vadd.f32 %v4457_v36, %v4455_v28  ;;  %3609 = vst [vmem:[%s4326_s12 + $0xa0] sm:$0xff] %v2032_v32   ;;  %v2532_v45 = vunpack.c.l.bf16 %v2032_v32  ;;  %v2533_v47 = vunpack.c.h.bf16 %v2032_v32 }
 0x154   : > { %v1960_v44 = vsel %vm1768_vm14, %v1672_v62, %v1864_v33  ;;  %v1675_v48 = vadd.f32 %v4495_v59, %v1426_v34  ;;  %v1673_v49 = vadd.f32 %v4495_v59, %v1418_v43  ;;  %v1431_v9 = vadd.f32 %v4465_v42, %v4463_v39 }
 0x155   : > { %v2824_v56 = vadd.f32 %v2823_v35, %v2729_v61  ;;  %v1678_v8 = vadd.f32 %v4495_v59, %v1439_v24  ;;  %v2627_v14 = vadd.f32 %v2626_v38, %v2532_v45  ;;  %v2730_v15 = vmul.f32 %v2532_v45, %v2532_v45 }
 0x156   : > { %v4529_v37 = vpop.f32.mrb[56].mxu1  ;;  %v2731_v46 = vmul.f32 %v2533_v47, %v2533_v47  ;;  %vm1771_vm15 = vcmp.ge.f32.partialorder %v1675_v48, 0.0  ;;  %v4531_v28 = vpop.f32.mrb[56].mxu0  ;;  %v1867_v58 = vmul.f32 0.2, %v1675_v48  ;;  %vm1769_vm0 = vcmp.ge.f32.partialorder %v1673_v49, 0.0 }
 0x157   : > { %v4533_v36 = vpop.f32.mrb[57].mxu1  ;;  %v1865_v60 = vmul.f32 0.2, %v1673_v49  ;;  %vm1774_vm1 = vcmp.ge.f32.partialorder %v1678_v8, 0.0  ;;  %v2628_v61 = vadd.f32 %v2627_v14, %v2533_v47  ;;  %v2825_v1 = vadd.f32 %v2824_v56, %v2730_v15  ;;  %v4536_v39 = vpop.f32.mrb[57].mxu0 }
 0x158   : > { %v1870_v2 = vmul.f32 0.2, %v1678_v8  ;;  %v1676_v3 = vadd.f32 %v4495_v59, %v1431_v9  ;;  %v4538_v42 = vpop.f32.mrb[58].mxu1  ;;  %v1963_v51 = vsel %vm1771_vm15, %v1675_v48, %v1867_v58  ;;  %v1442_v52 = vadd.f32 %v4470_v30, %v4468_v29  ;;  %v4544_v7 = vpop.f32.mrb[58].mxu0 }
 0x159   : > { %v1961_v55 = vsel %vm1769_vm0, %v1673_v49, %v1865_v60  ;;  %v1434_v53 = vadd.f32 %v4474_v54, %v4472_v50  ;;  %v4546_v40 = vpop.f32.mrb[59].mxu1  ;;  %v2629_v41 = vadd.f32 %v2628_v61, %v2534_v17  ;;  %v2826_v10 = vadd.f32 %v2825_v1, %v2731_v46  ;;  %v4548_v62 = vpop.f32.mrb[59].mxu0 }
 0x15a   : > { %v2035_v13 = vpack.c.bf16 %v1963_v51, %v1962_v31  ;;  %v2034_v57 = vpack.c.bf16 %v1961_v55, %v1960_v44  ;;  %v2733_v6 = vmul.f32 %v4508_v25, %v4508_v25  ;;  %vm1772_vm2 = vcmp.ge.f32.partialorder %v1676_v3, 0.0 }
 0x15b   : > { %v1868_v12 = vmul.f32 0.2, %v1676_v3  ;;  %v1679_v29 = vadd.f32 %v4495_v59, %v1442_v52  ;;  %v2827_v30 = vadd.f32 %v2826_v10, %v2732_v19  ;;  %v1966_v16 = vsel %vm1774_vm1, %v1678_v8, %v1870_v2 }
 0x15c   : > { %3612 = vst [vmem:[%s4326_s12 + $0xb8] sm:$0xff] %v2035_v13   ;;  %v2538_v50 = vunpack.c.l.bf16 %v2035_v13  ;;  %3611 = vst [vmem:[%s4326_s12 + $0xb0] sm:$0xff] %v2034_v57   ;;  %v2536_v54 = vunpack.c.l.bf16 %v2034_v57  ;;  %v2539_v17 = vunpack.c.h.bf16 %v2035_v13  ;;  %v2537_v26 = vunpack.c.h.bf16 %v2034_v57 }
 0x15d   : > { %v2630_v0 = vadd.f32 %v2629_v41, %v4508_v25  ;;  %v1964_v23 = vsel %vm1772_vm2, %v1676_v3, %v1868_v12  ;;  %v2828_v33 = vadd.f32 %v2827_v30, %v2733_v6  ;;  %vm1775_vm3 = vcmp.ge.f32.partialorder %v1679_v29, 0.0 }
 0x15e   : > { %v4557_v27 = vpop.f32.mrb[60].mxu1  ;;  %v2736_v32 = vmul.f32 %v2538_v50, %v2538_v50  ;;  %v2734_v31 = vmul.f32 %v2536_v54, %v2536_v54  ;;  %v4559_v34 = vpop.f32.mrb[60].mxu0  ;;  %v2735_v38 = vmul.f32 %v2537_v26, %v2537_v26  ;;  %v1871_v43 = vmul.f32 0.2, %v1679_v29 }
 0x15f   : > { %v4561_v19 = vpop.f32.mrb[61].mxu1  ;;  %v2631_v35 = vadd.f32 %v2630_v0, %v2536_v54  ;;  %v1677_v24 = vadd.f32 %v4495_v59, %v1434_v53  ;;  %v4564_v45 = vpop.f32.mrb[61].mxu0  ;;  %v1455_v44 = vadd.f32 %v4499_v63, %v4490_v11  ;;  %v1447_v48 = vadd.f32 %v4504_v20, %v4501_v4 }
 0x160   : > { %v4566_v47 = vpop.f32.mrb[62].mxu1  ;;  %v2829_v25 = vadd.f32 %v2828_v33, %v2734_v31  ;;  %v1458_v56 = vadd.f32 %v4510_v5, %v4506_v22  ;;  %v4574_v49 = vpop.f32.mrb[62].mxu0  ;;  %v1967_v14 = vsel %vm1775_vm3, %v1679_v29, %v1871_v43  ;;  %v1450_v60 = vadd.f32 %v4514_v21, %v4512_v18 }
 0x161   : > { %v4576_v8 = vpop.f32.mrb[63].mxu1  ;;  %v2632_v9 = vadd.f32 %v2631_v35, %v2537_v26  ;;  %vm1773_vm4 = vcmp.ge.f32.partialorder %v1677_v24, 0.0  ;;  %v1869_v15 = vmul.f32 0.2, %v1677_v24  ;;  %v4579_v46 = vpop.f32.mrb[63].mxu0  ;;  %v2037_v11 = vpack.c.bf16 %v1967_v14, %v1966_v16 }
 0x162   : > { %v2830_v58 = vadd.f32 %v2829_v25, %v2735_v38  ;;  %v1682_v63 = vadd.f32 %v4495_v59, %v1455_v44  ;;  %v1680_v4 = vadd.f32 %v4495_v59, %v1447_v48  ;;  %v1683_v5 = vadd.f32 %v4495_v59, %v1458_v56 }
 0x163   : > { %v2633_v20 = vadd.f32 %v2632_v9, %v2538_v50  ;;  %v1965_v22 = vsel %vm1773_vm4, %v1677_v24, %v1869_v15  ;;  %3614 = vst [vmem:[%s4326_s12 + $0xc8] sm:$0xff] %v2037_v11   ;;  %v2542_v1 = vunpack.c.l.bf16 %v2037_v11  ;;  %v2543_v2 = vunpack.c.h.bf16 %v2037_v11 }
 0x164   : > { %v2831_v61 = vadd.f32 %v2830_v58, %v2736_v32  ;;  %v2036_v3 = vpack.c.bf16 %v1965_v22, %v1964_v23  ;;  %v2737_v51 = vmul.f32 %v2539_v17, %v2539_v17  ;;  %vm1778_vm5 = vcmp.ge.f32.partialorder %v1682_v63, 0.0 }
 0x165   : > { %v2634_v55 = vadd.f32 %v2633_v20, %v2539_v17  ;;  %v1874_v52 = vmul.f32 0.2, %v1682_v63  ;;  %v2740_v41 = vmul.f32 %v2542_v1, %v2542_v1  ;;  %vm1776_vm6 = vcmp.ge.f32.partialorder %v1680_v4, 0.0 }
 0x166   : > { %v4587_v53 = vpop.f32.mrb[64].mxu1  ;;  %3613 = vst [vmem:[%s4326_s12 + $0xc0] sm:$0xff] %v2036_v3   ;;  %v2540_v10 = vunpack.c.l.bf16 %v2036_v3  ;;  %v2541_v13 = vunpack.c.h.bf16 %v2036_v3  ;;  %v4590_v57 = vpop.f32.mrb[64].mxu0  ;;  %v2741_v18 = vmul.f32 %v2543_v2, %v2543_v2  ;;  %v2832_v21 = vadd.f32 %v2831_v61, %v2737_v51 }
 0x167   : > { %v4592_v6 = vpop.f32.mrb[65].mxu1  ;;  %v1970_v12 = vsel %vm1778_vm5, %v1682_v63, %v1874_v52  ;;  %vm1779_vm7 = vcmp.ge.f32.partialorder %v1683_v5, 0.0  ;;  %v4594_v29 = vpop.f32.mrb[65].mxu0  ;;  %v1872_v16 = vmul.f32 0.2, %v1680_v4  ;;  %v1681_v32 = vadd.f32 %v4495_v59, %v1450_v60 }
 0x168   : > { %v4596_v30 = vpop.f32.mrb[66].mxu1  ;;  %v2635_v50 = vadd.f32 %v2634_v55, %v2540_v10  ;;  %v2738_v54 = vmul.f32 %v2540_v10, %v2540_v10  ;;  %v1875_v17 = vmul.f32 0.2, %v1683_v5  ;;  %v4598_v26 = vpop.f32.mrb[66].mxu0  ;;  %v2739_v23 = vmul.f32 %v2541_v13, %v2541_v13 }
 0x169   : > { %v4600_v0 = vpop.f32.mrb[67].mxu1  ;;  %v1471_v31 = vadd.f32 %v4531_v28, %v4529_v37  ;;  %v1463_v33 = vadd.f32 %v4536_v39, %v4533_v36  ;;  %v4607_v35 = vpop.f32.mrb[67].mxu0  ;;  %v1474_v25 = vadd.f32 %v4544_v7, %v4538_v42  ;;  %vm1777_vm8 = vcmp.ge.f32.partialorder %v1681_v32, 0.0 }
 0x16a   : > { %v2636_v38 = vadd.f32 %v2635_v50, %v2541_v13  ;;  %v2833_v43 = vadd.f32 %v2832_v21, %v2738_v54  ;;  %v1971_v24 = vsel %vm1779_vm7, %v1683_v5, %v1875_v17  ;;  %v1873_v48 = vmul.f32 0.2, %v1681_v32 }
 0x16b   : > { %v2039_v44 = vpack.c.bf16 %v1971_v24, %v1970_v12  ;;  %v1686_v56 = vadd.f32 %v4495_v59, %v1471_v31  ;;  %v1968_v37 = vsel %vm1776_vm6, %v1680_v4, %v1872_v16  ;;  %v1684_v28 = vadd.f32 %v4495_v59, %v1463_v33 }
 0x16c   : > { %v2637_v9 = vadd.f32 %v2636_v38, %v2542_v1  ;;  %v2834_v14 = vadd.f32 %v2833_v43, %v2739_v23  ;;  %v1969_v39 = vsel %vm1777_vm8, %v1681_v32, %v1873_v48  ;;  %v1687_v15 = vadd.f32 %v4495_v59, %v1474_v25 }
 0x16d   : > { %3616 = vst [vmem:[%s4326_s12 + $0xd8] sm:$0xff] %v2039_v44   ;;  %v2546_v36 = vunpack.c.l.bf16 %v2039_v44  ;;  %vm1782_vm9 = vcmp.ge.f32.partialorder %v1686_v56, 0.0  ;;  %v2038_v7 = vpack.c.bf16 %v1969_v39, %v1968_v37  ;;  %v1878_v63 = vmul.f32 0.2, %v1686_v56 }
 0x16e   : > { %v4617_v58 = vpop.f32.mrb[68].mxu1  ;;  %v2835_v42 = vadd.f32 %v2834_v14, %v2740_v41  ;;  %v2638_v11 = vadd.f32 %v2637_v9, %v2543_v2  ;;  %v4619_v20 = vpop.f32.mrb[68].mxu0  ;;  %v2547_v4 = vunpack.c.h.bf16 %v2039_v44  ;;  %vm1780_vm10 = vcmp.ge.f32.partialorder %v1684_v28, 0.0 }
 0x16f   : > { %v4621_v22 = vpop.f32.mrb[69].mxu1  ;;  %v2744_v5 = vmul.f32 %v2546_v36, %v2546_v36  ;;  %v4623_v60 = vpop.f32.mrb[69].mxu0  ;;  %3615 = vst [vmem:[%s4326_s12 + $0xd0] sm:$0xff] %v2038_v7   ;;  %v2544_v1 = vunpack.c.l.bf16 %v2038_v7  ;;  %v2545_v3 = vunpack.c.h.bf16 %v2038_v7  ;;  %v1876_v55 = vmul.f32 0.2, %v1684_v28 }
 0x170   : > { %v4625_v61 = vpop.f32.mrb[70].mxu1  ;;  %v2836_v51 = vadd.f32 %v2835_v42, %v2741_v18  ;;  %v4628_v52 = vpop.f32.mrb[70].mxu0  ;;  %v1974_v41 = vsel %vm1782_vm9, %v1686_v56, %v1878_v63  ;;  %vm1783_vm11 = vcmp.ge.f32.partialorder %v1687_v15, 0.0  ;;  %v1879_v10 = vmul.f32 0.2, %v1687_v15 }
 0x171   : > { %v4630_v2 = vpop.f32.mrb[71].mxu1  ;;  %v1466_v13 = vadd.f32 %v4548_v62, %v4546_v40  ;;  %v4635_v21 = vpop.f32.mrb[71].mxu0  ;;  %v2639_v12 = vadd.f32 %v2638_v11, %v2544_v1  ;;  %v2742_v50 = vmul.f32 %v2544_v1, %v2544_v1  ;;  %v2743_v54 = vmul.f32 %v2545_v3, %v2545_v3 }
 0x172   : > { %v1487_v18 = vadd.f32 %v4559_v34, %v4557_v27  ;;  %v1975_v16 = vsel %vm1783_vm11, %v1687_v15, %v1879_v10  ;;  %v1479_v23 = vadd.f32 %v4564_v45, %v4561_v19  ;;  %v1490_v32 = vadd.f32 %v4574_v49, %v4566_v47 }
 0x173   : > { %v1685_v17 = vadd.f32 %v4495_v59, %v1466_v13  ;;  %v2640_v31 = vadd.f32 %v2639_v12, %v2545_v3  ;;  %v2837_v40 = vadd.f32 %v2836_v51, %v2742_v50  ;;  %v2041_v62 = vpack.c.bf16 %v1975_v16, %v1974_v41 }
 0x174   : > { %v1690_v33 = vadd.f32 %v4495_v59, %v1487_v18  ;;  %v1688_v43 = vadd.f32 %v4495_v59, %v1479_v23  ;;  %v1691_v27 = vadd.f32 %v4495_v59, %v1490_v32  ;;  %v2745_v24 = vmul.f32 %v2547_v4, %v2547_v4 }
 0x175   : > { %vm1781_vm12 = vcmp.ge.f32.partialorder %v1685_v17, 0.0  ;;  %v1877_v38 = vmul.f32 0.2, %v1685_v17  ;;  %v2641_v25 = vadd.f32 %v2640_v31, %v2546_v36  ;;  %v2838_v44 = vadd.f32 %v2837_v40, %v2743_v54  ;;  %3618 = vst [vmem:[%s4326_s12 + $0xe8] sm:$0xff] %v2041_v62  }
 0x176   : > { %v4647_v34 = vpop.f32.mrb[72].mxu1  ;;  %v2550_v19 = vunpack.c.l.bf16 %v2041_v62  ;;  %v4650_v45 = vpop.f32.mrb[72].mxu0  ;;  %v1972_v49 = vsel %vm1780_vm10, %v1684_v28, %v1876_v55  ;;  %vm1786_vm13 = vcmp.ge.f32.partialorder %v1690_v33, 0.0  ;;  %v1882_v56 = vmul.f32 0.2, %v1690_v33 }
 0x177   : > { %v4652_v47 = vpop.f32.mrb[73].mxu1  ;;  %v1973_v48 = vsel %vm1781_vm12, %v1685_v17, %v1877_v38  ;;  %v4655_v9 = vpop.f32.mrb[73].mxu0  ;;  %v2839_v37 = vadd.f32 %v2838_v44, %v2744_v5  ;;  %v2551_v39 = vunpack.c.h.bf16 %v2041_v62  ;;  %vm1784_vm14 = vcmp.ge.f32.partialorder %v1688_v43, 0.0 }
 0x178   : > { %v4657_v14 = vpop.f32.mrb[74].mxu1  ;;  %v2040_v36 = vpack.c.bf16 %v1973_v48, %v1972_v49  ;;  %v4659_v15 = vpop.f32.mrb[74].mxu0  ;;  %v2748_v7 = vmul.f32 %v2550_v19, %v2550_v19  ;;  %v2642_v11 = vadd.f32 %v2641_v25, %v2547_v4  ;;  %v1978_v63 = vsel %vm1786_vm13, %v1690_v33, %v1882_v56 }
 0x179   : > { %v4661_v42 = vpop.f32.mrb[75].mxu1  ;;  %vm1787_vm15 = vcmp.ge.f32.partialorder %v1691_v27, 0.0  ;;  %v4663_v28 = vpop.f32.mrb[75].mxu0  ;;  %v2840_v51 = vadd.f32 %v2839_v37, %v2745_v24  ;;  %v1883_v55 = vmul.f32 0.2, %v1691_v27  ;;  %v1482_v5 = vadd.f32 %v4579_v46, %v4576_v8 }
 0x17a   : > { %3617 = vst [vmem:[%s4326_s12 + $0xe0] sm:$0xff] %v2040_v36   ;;  %v2548_v1 = vunpack.c.l.bf16 %v2040_v36  ;;  %v2549_v3 = vunpack.c.h.bf16 %v2040_v36  ;;  %v1880_v41 = vmul.f32 0.2, %v1688_v43  ;;  %v1503_v10 = vadd.f32 %v4590_v57, %v4587_v53 }
 0x17b   : > { %v1495_v13 = vadd.f32 %v4594_v29, %v4592_v6  ;;  %v1979_v54 = vsel %vm1787_vm15, %v1691_v27, %v1883_v55  ;;  %v1689_v16 = vadd.f32 %v4495_v59, %v1482_v5  ;;  %v1506_v53 = vadd.f32 %v4598_v26, %v4596_v30 }
 0x17c   : > { %v2643_v4 = vadd.f32 %v2642_v11, %v2548_v1  ;;  %v2746_v12 = vmul.f32 %v2548_v1, %v2548_v1  ;;  %v2747_v50 = vmul.f32 %v2549_v3, %v2549_v3  ;;  %v2043_v18 = vpack.c.bf16 %v1979_v54, %v1978_v63 }
 0x17d   : > { %v1694_v17 = vadd.f32 %v4495_v59, %v1503_v10  ;;  %v1692_v23 = vadd.f32 %v4495_v59, %v1495_v13  ;;  %v1498_v57 = vadd.f32 %v4607_v35, %v4600_v0  ;;  %v2749_v31 = vmul.f32 %v2551_v39, %v2551_v39 }
 0x17e   : > { %v4675_v32 = vpop.f32.mrb[76].mxu1  ;;  %v2644_v8 = vadd.f32 %v2643_v4, %v2549_v3  ;;  %v2841_v46 = vadd.f32 %v2840_v51, %v2746_v12  ;;  %v4681_v6 = vpop.f32.mrb[76].mxu0  ;;  %v1976_v40 = vsel %vm1784_vm14, %v1688_v43, %v1880_v41  ;;  %3620 = vst [vmem:[%s4326_s12 + $0xf8] sm:$0xff] %v2043_v18   ;;  %vm1785_vm0 = vcmp.ge.f32.partialorder %v1689_v16, 0.0 }
 0x17f   : > { %v4683_v29 = vpop.f32.mrb[77].mxu1  ;;  %v1881_v62 = vmul.f32 0.2, %v1689_v16  ;;  %v4687_v33 = vpop.f32.mrb[77].mxu0  ;;  %vm1790_vm1 = vcmp.ge.f32.partialorder %v1694_v17, 0.0  ;;  %v2554_v35 = vunpack.c.l.bf16 %v2043_v18  ;;  %v2555_v25 = vunpack.c.h.bf16 %v2043_v18 }
 0x180   : > { %v4689_v38 = vpop.f32.mrb[78].mxu1  ;;  %v2645_v27 = vadd.f32 %v2644_v8, %v2550_v19  ;;  %v2842_v24 = vadd.f32 %v2841_v46, %v2747_v50  ;;  %v1886_v30 = vmul.f32 0.2, %v1694_v17  ;;  %v4691_v26 = vpop.f32.mrb[78].mxu0  ;;  %vm1788_vm2 = vcmp.ge.f32.partialorder %v1692_v23, 0.0 }
 0x181   : > { %v4693_v0 = vpop.f32.mrb[79].mxu1  ;;  %v1977_v44 = vsel %vm1785_vm0, %v1689_v16, %v1881_v62  ;;  %v4695_v43 = vpop.f32.mrb[79].mxu0  ;;  %v1884_v36 = vmul.f32 0.2, %v1692_v23  ;;  %v1695_v19 = vadd.f32 %v4495_v59, %v1506_v53  ;;  %v1693_v11 = vadd.f32 %v4495_v59, %v1498_v57 }
 0x182   : > { %v2843_v49 = vadd.f32 %v2842_v24, %v2748_v7  ;;  %v2042_v48 = vpack.c.bf16 %v1977_v44, %v1976_v40  ;;  %v2646_v56 = vadd.f32 %v2645_v27, %v2551_v39  ;;  %v1982_v37 = vsel %vm1790_vm1, %v1694_v17, %v1886_v30 }
 0x183   : > { %v1519_v63 = vadd.f32 %v4619_v20, %v4617_v58  ;;  %v1511_v55 = vadd.f32 %v4623_v60, %v4621_v22  ;;  %v1980_v41 = vsel %vm1788_vm2, %v1692_v23, %v1884_v36  ;;  %vm1791_vm3 = vcmp.ge.f32.partialorder %v1695_v19, 0.0 }
 0x184   : > { %3619 = vst [vmem:[%s4326_s12 + $0xf0] sm:$0xff] %v2042_v48   ;;  %v2552_v1 = vunpack.c.l.bf16 %v2042_v48  ;;  %v2553_v3 = vunpack.c.h.bf16 %v2042_v48  ;;  %v2844_v51 = vadd.f32 %v2843_v49, %v2749_v31  ;;  %v1887_v7 = vmul.f32 0.2, %v1695_v19 }
 0x185   : > { %vm1789_vm4 = vcmp.ge.f32.partialorder %v1693_v11, 0.0  ;;  %v1885_v4 = vmul.f32 0.2, %v1693_v11  ;;  %v1698_v50 = vadd.f32 %v4495_v59, %v1519_v63  ;;  %v4712_v54 = vadd.f32 %v4495_v59, %v1511_v55 }
 0x186   : > { %v4704_v39 = vpop.f32.mrb[80].mxu1  ;;  %v2647_v5 = vadd.f32 %v2646_v56, %v2552_v1  ;;  %v2750_v10 = vmul.f32 %v2552_v1, %v2552_v1  ;;  %v2751_v13 = vmul.f32 %v2553_v3, %v2553_v3  ;;  %v4706_v12 = vpop.f32.mrb[80].mxu0  ;;  %v1983_v20 = vsel %vm1791_vm3, %v1695_v19, %v1887_v7 }
 0x187   : > { %v4708_v58 = vpop.f32.mrb[81].mxu1  ;;  %v1522_v22 = vadd.f32 %v4628_v52, %v4625_v61  ;;  %v4716_v60 = vpop.f32.mrb[81].mxu0  ;;  %v2045_v23 = vpack.c.bf16 %v1983_v20, %v1982_v37  ;;  %v1981_v8 = vsel %vm1789_vm4, %v1693_v11, %v1885_v4  ;;  %v2752_v57 = vmul.f32 %v2554_v35, %v2554_v35 }
 0x188   : > { %v4718_v18 = vpop.f32.mrb[82].mxu1  ;;  %v2648_v16 = vadd.f32 %v2647_v5, %v2553_v3  ;;  %v2845_v17 = vadd.f32 %v2844_v51, %v2750_v10  ;;  %v4721_v46 = vpop.f32.mrb[82].mxu0  ;;  %v2044_v31 = vpack.c.bf16 %v1981_v8, %v1980_v41  ;;  %vm1794_vm5 = vcmp.ge.f32.partialorder %v1698_v50, 0.0 }
 0x189   : > { %v4723_v53 = vpop.f32.mrb[83].mxu1  ;;  %v1890_v40 = vmul.f32 0.2, %v1698_v50  ;;  %v4725_v61 = vpop.f32.mrb[83].mxu0  ;;  %v2753_v52 = vmul.f32 %v2555_v25, %v2555_v25  ;;  %3622 = vst [vmem:[%s4326_s12 + $0x108] sm:$0xff] %v2045_v23   ;;  %v2558_v24 = vunpack.c.l.bf16 %v2045_v23  ;;  %v2559_v30 = vunpack.c.h.bf16 %v2045_v23 }
 0x18a   : > { %v2649_v62 = vadd.f32 %v2648_v16, %v2554_v35  ;;  %v2846_v27 = vadd.f32 %v2845_v17, %v2751_v13  ;;  %3621 = vst [vmem:[%s4326_s12 + $0x100] sm:$0xff] %v2044_v31   ;;  %v2556_v44 = vunpack.c.l.bf16 %v2044_v31  ;;  %v2557_v49 = vunpack.c.h.bf16 %v2044_v31 }
 0x18b   : > { %vm1792_vm6 = vcmp.ge.f32.partialorder %v4712_v54, 0.0  ;;  %v1986_v37 = vsel %vm1794_vm5, %v1698_v50, %v1890_v40  ;;  %v1888_v36 = vmul.f32 0.2, %v4712_v54  ;;  %v2756_v19 = vmul.f32 %v2558_v24, %v2558_v24 }
 0x18c   : > { %v2847_v48 = vadd.f32 %v2846_v27, %v2752_v57  ;;  %v2650_v56 = vadd.f32 %v2649_v62, %v2555_v25  ;;  %v2754_v11 = vmul.f32 %v2556_v44, %v2556_v44  ;;  %v2755_v63 = vmul.f32 %v2557_v49, %v2557_v49 }
 0x18d   : > { %v1699_v1 = vadd.f32 %v4495_v59, %v1522_v22  ;;  %v1514_v55 = vadd.f32 %v4635_v21, %v4630_v2  ;;  %v1535_v41 = vadd.f32 %v4650_v45, %v4647_v34  ;;  %v1527_v10 = vadd.f32 %v4655_v9, %v4652_v47 }
 0x18e   : > { %v4732_v35 = vpop.f32.mrb[84].mxu1  ;;  %v2651_v3 = vadd.f32 %v2650_v56, %v2556_v44  ;;  %v2848_v51 = vadd.f32 %v2847_v48, %v2753_v52  ;;  %v4738_v7 = vpop.f32.mrb[84].mxu0  ;;  %v1538_v13 = vadd.f32 %v4659_v15, %v4657_v14  ;;  %v1530_v14 = vadd.f32 %v4663_v28, %v4661_v42 }
 0x18f   : > { %v4740_v25 = vpop.f32.mrb[85].mxu1  ;;  %vm1795_vm7 = vcmp.ge.f32.partialorder %v1699_v1, 0.0  ;;  %v1891_v5 = vmul.f32 0.2, %v1699_v1  ;;  %v4746_v4 = vpop.f32.mrb[85].mxu0  ;;  %v1697_v34 = vadd.f32 %v4495_v59, %v1514_v55  ;;  %v1702_v45 = vadd.f32 %v4495_v59, %v1535_v41 }
 0x190   : > { %v4748_v20 = vpop.f32.mrb[86].mxu1  ;;  %v2652_v2 = vadd.f32 %v2651_v3, %v2557_v49  ;;  %v2849_v21 = vadd.f32 %v2848_v51, %v2754_v11  ;;  %v4752_v50 = vpop.f32.mrb[86].mxu0  ;;  %v1700_v47 = vadd.f32 %v4495_v59, %v1527_v10  ;;  %v1703_v9 = vadd.f32 %v4495_v59, %v1538_v13 }
 0x191   : > { %v4754_v22 = vpop.f32.mrb[87].mxu1  ;;  %v1987_v16 = vsel %vm1795_vm7, %v1699_v1, %v1891_v5  ;;  %v4760_v15 = vpop.f32.mrb[87].mxu0  ;;  %vm1793_vm8 = vcmp.ge.f32.partialorder %v1697_v34, 0.0  ;;  %v2757_v57 = vmul.f32 %v2559_v30, %v2559_v30  ;;  %v1889_v31 = vmul.f32 0.2, %v1697_v34 }
 0x192   : > { %v2653_v17 = vadd.f32 %v2652_v2, %v2558_v24  ;;  %v2850_v23 = vadd.f32 %v2849_v21, %v2755_v63  ;;  %v2047_v8 = vpack.c.bf16 %v1987_v16, %v1986_v37  ;;  %vm1798_vm9 = vcmp.ge.f32.partialorder %v1702_v45, 0.0 }
 0x193   : > { %v1894_v40 = vmul.f32 0.2, %v1702_v45  ;;  %v1984_v62 = vsel %vm1792_vm6, %v4712_v54, %v1888_v36  ;;  %v1985_v42 = vsel %vm1793_vm8, %v1697_v34, %v1889_v31  ;;  %vm1796_vm10 = vcmp.ge.f32.partialorder %v1700_v47, 0.0 }
 0x194   : > { %v2851_v52 = vadd.f32 %v2850_v23, %v2756_v19  ;;  %3624 = vst [vmem:[%s4326_s12 + $0x118] sm:$0xff] %v2047_v8   ;;  %v2562_v27 = vunpack.c.l.bf16 %v2047_v8  ;;  %v2654_v44 = vadd.f32 %v2653_v17, %v2559_v30  ;;  %v2563_v49 = vunpack.c.h.bf16 %v2047_v8 }
 0x195   : > { %v1990_v28 = vsel %vm1798_vm9, %v1702_v45, %v1894_v40  ;;  %v2046_v48 = vpack.c.bf16 %v1985_v42, %v1984_v62  ;;  %v1892_v37 = vmul.f32 0.2, %v1700_v47  ;;  %vm1799_vm11 = vcmp.ge.f32.partialorder %v1703_v9, 0.0 }
 0x196   : > { %v4766_v24 = vpop.f32.mrb[88].mxu1  ;;  %v2852_v56 = vadd.f32 %v2851_v52, %v2757_v57  ;;  %v4768_v11 = vpop.f32.mrb[88].mxu0  ;;  %v2760_v63 = vmul.f32 %v2562_v27, %v2562_v27  ;;  %v1895_v54 = vmul.f32 0.2, %v1703_v9  ;;  %v1701_v36 = vadd.f32 %v4495_v59, %v1530_v14 }
 0x197   : > { %v4770_v19 = vpop.f32.mrb[89].mxu1  ;;  %v1551_v30 = vadd.f32 %v4681_v6, %v4675_v32  ;;  %v4775_v1 = vpop.f32.mrb[89].mxu0  ;;  %3623 = vst [vmem:[%s4326_s12 + $0x110] sm:$0xff] %v2046_v48   ;;  %v2560_v51 = vunpack.c.l.bf16 %v2046_v48  ;;  %v2561_v55 = vunpack.c.h.bf16 %v2046_v48  ;;  %v1543_v41 = vadd.f32 %v4687_v33, %v4683_v29 }
 0x198   : > { %v4777_v3 = vpop.f32.mrb[90].mxu1  ;;  %v1554_v5 = vadd.f32 %v4691_v26, %v4689_v38  ;;  %v4784_v10 = vpop.f32.mrb[90].mxu0  ;;  %v1991_v2 = vsel %vm1799_vm11, %v1703_v9, %v1895_v54  ;;  %vm1797_vm12 = vcmp.ge.f32.partialorder %v1701_v36, 0.0  ;;  %v1893_v32 = vmul.f32 0.2, %v1701_v36 }
 0x199   : > { %v4786_v13 = vpop.f32.mrb[91].mxu1  ;;  %v1706_v6 = vadd.f32 %v4495_v59, %v1551_v30  ;;  %v4790_v21 = vpop.f32.mrb[91].mxu0  ;;  %v2655_v34 = vadd.f32 %v2654_v44, %v2560_v51  ;;  %v2758_v45 = vmul.f32 %v2560_v51, %v2560_v51  ;;  %v1988_v29 = vsel %vm1796_vm10, %v1700_v47, %v1892_v37 }
 0x19a   : > { %v2049_v33 = vpack.c.bf16 %v1991_v2, %v1990_v28  ;;  %v1989_v16 = vsel %vm1797_vm12, %v1701_v36, %v1893_v32  ;;  %v1704_v26 = vadd.f32 %v4495_v59, %v1543_v41  ;;  %v2759_v17 = vmul.f32 %v2561_v55, %v2561_v55 }
 0x19b   : > { %vm1802_vm13 = vcmp.ge.f32.partialorder %v1706_v6, 0.0  ;;  %v1898_v38 = vmul.f32 0.2, %v1706_v6  ;;  %v2656_v14 = vadd.f32 %v2655_v34, %v2561_v55  ;;  %v2853_v9 = vadd.f32 %v2852_v56, %v2758_v45 }
 0x19c   : > { %3626 = vst [vmem:[%s4326_s12 + $0x128] sm:$0xff] %v2049_v33   ;;  %v2566_v23 = vunpack.c.l.bf16 %v2049_v33  ;;  %v2761_v8 = vmul.f32 %v2563_v49, %v2563_v49  ;;  %v2567_v57 = vunpack.c.h.bf16 %v2049_v33  ;;  %v2048_v31 = vpack.c.bf16 %v1989_v16, %v1988_v29 }
 0x19d   : > { %v1994_v40 = vsel %vm1802_vm13, %v1706_v6, %v1898_v38  ;;  %v2657_v62 = vadd.f32 %v2656_v14, %v2562_v27  ;;  %v2854_v47 = vadd.f32 %v2853_v9, %v2759_v17  ;;  %vm1800_vm14 = vcmp.ge.f32.partialorder %v1704_v26, 0.0 }
 0x19e   : > { %v4795_v52 = vpop.f32.mrb[92].mxu1  ;;  %v1896_v44 = vmul.f32 0.2, %v1704_v26  ;;  %v4797_v42 = vpop.f32.mrb[92].mxu0  ;;  %v2764_v48 = vmul.f32 %v2566_v23, %v2566_v23  ;;  %3625 = vst [vmem:[%s4326_s12 + $0x120] sm:$0xff] %v2048_v31   ;;  %v2564_v37 = vunpack.c.l.bf16 %v2048_v31  ;;  %v2565_v56 = vunpack.c.h.bf16 %v2048_v31 }
 0x19f   : > { %v4799_v28 = vpop.f32.mrb[93].mxu1  ;;  %v1707_v54 = vadd.f32 %v4495_v59, %v1554_v5  ;;  %v4803_v36 = vpop.f32.mrb[93].mxu0  ;;  %v2855_v51 = vadd.f32 %v2854_v47, %v2760_v63  ;;  %v2658_v55 = vadd.f32 %v2657_v62, %v2563_v49  ;;  %v1546_v27 = vadd.f32 %v4695_v43, %v4693_v0 }
 0x1a0   : > { %v4805_v30 = vpop.f32.mrb[94].mxu1  ;;  %v1567_v41 = vadd.f32 %v4706_v12, %v4704_v39  ;;  %v4811_v2 = vpop.f32.mrb[94].mxu0  ;;  %v2762_v6 = vmul.f32 %v2564_v37, %v2564_v37  ;;  %v2763_v34 = vmul.f32 %v2565_v56, %v2565_v56  ;;  %v1559_v43 = vadd.f32 %v4716_v60, %v4708_v58 }
 0x1a1   : > { %v4813_v32 = vpop.f32.mrb[95].mxu1  ;;  %vm1803_vm15 = vcmp.ge.f32.partialorder %v1707_v54, 0.0  ;;  %v1899_v5 = vmul.f32 0.2, %v1707_v54  ;;  %v4815_v45 = vpop.f32.mrb[95].mxu0  ;;  %v2659_v29 = vadd.f32 %v2658_v55, %v2564_v37  ;;  %v2856_v33 = vadd.f32 %v2855_v51, %v2761_v8 }
 0x1a2   : > { %v1705_v49 = vadd.f32 %v4495_v59, %v1546_v27  ;;  %v1710_v63 = vadd.f32 %v4495_v59, %v1567_v41  ;;  %v1570_v39 = vadd.f32 %v4721_v46, %v4718_v18  ;;  %v1562_v12 = vadd.f32 %v4725_v61, %v4723_v53 }
 0x1a3   : > { %v1995_v0 = vsel %vm1803_vm15, %v1707_v54, %v1899_v5  ;;  %v2660_v16 = vadd.f32 %v2659_v29, %v2565_v56  ;;  %v2857_v38 = vadd.f32 %v2856_v33, %v2762_v6  ;;  %v1708_v8 = vadd.f32 %v4495_v59, %v1559_v43 }
 0x1a4   : > { %v2051_v14 = vpack.c.bf16 %v1995_v0, %v1994_v40  ;;  %vm1801_vm0 = vcmp.ge.f32.partialorder %v1705_v49, 0.0  ;;  %v1897_v17 = vmul.f32 0.2, %v1705_v49  ;;  %vm1806_vm1 = vcmp.ge.f32.partialorder %v1710_v63, 0.0 }
 0x1a5   : > { %v1902_v9 = vmul.f32 0.2, %v1710_v63  ;;  %v2765_v31 = vmul.f32 %v2567_v57, %v2567_v57  ;;  %v2661_v62 = vadd.f32 %v2660_v16, %v2566_v23  ;;  %v2858_v47 = vadd.f32 %v2857_v38, %v2763_v34 }
 0x1a6   : > { %v1992_v58 = vsel %vm1800_vm14, %v1704_v26, %v1896_v44  ;;  %3628 = vst [vmem:[%s4326_s12 + $0x138] sm:$0xff] %v2051_v14   ;;  %v2570_v60 = vunpack.c.l.bf16 %v2051_v14  ;;  %v1993_v18 = vsel %vm1801_vm0, %v1705_v49, %v1897_v17  ;;  %vm1804_vm2 = vcmp.ge.f32.partialorder %v1708_v8, 0.0 }
 0x1a7   : > { %v1900_v46 = vmul.f32 0.2, %v1708_v8  ;;  %v2859_v53 = vadd.f32 %v2858_v47, %v2764_v48  ;;  %v2571_v61 = vunpack.c.h.bf16 %v2051_v14  ;;  %v2050_v40 = vpack.c.bf16 %v1993_v18, %v1992_v58 }
 0x1a8   : > { %v1998_v37 = vsel %vm1806_vm1, %v1710_v63, %v1902_v9  ;;  %v2662_v56 = vadd.f32 %v2661_v62, %v2567_v57  ;;  %v1711_v51 = vadd.f32 %v4495_v59, %v1570_v39  ;;  %v1709_v55 = vadd.f32 %v4495_v59, %v1562_v12 }
 0x1a9   : > { %v1996_v54 = vsel %vm1804_vm2, %v1708_v8, %v1900_v46  ;;  %3627 = vst [vmem:[%s4326_s12 + $0x130] sm:$0xff] %v2050_v40   ;;  %v2568_v23 = vunpack.c.l.bf16 %v2050_v40  ;;  %v2569_v27 = vunpack.c.h.bf16 %v2050_v40  ;;  %v2860_v41 = vadd.f32 %v2859_v53, %v2765_v31 }
 0x1aa   : > { %v1583_v26 = vadd.f32 %v4738_v7, %v4732_v35  ;;  %vm1807_vm3 = vcmp.ge.f32.partialorder %v1711_v51, 0.0  ;;  %v1903_v44 = vmul.f32 0.2, %v1711_v51  ;;  %vm1805_vm4 = vcmp.ge.f32.partialorder %v1709_v55, 0.0 }
 0x1ab   : > { %v1901_v48 = vmul.f32 0.2, %v1709_v55  ;;  %v2663_v6 = vadd.f32 %v2662_v56, %v2568_v23  ;;  %v2766_v34 = vmul.f32 %v2568_v23, %v2568_v23  ;;  %v2767_v5 = vmul.f32 %v2569_v27, %v2569_v27 }
 0x1ac   : > { %v1714_v57 = vadd.f32 %v4495_v59, %v1583_v26  ;;  %v1999_v29 = vsel %vm1807_vm3, %v1711_v51, %v1903_v44  ;;  %v1575_v49 = vadd.f32 %v4746_v4, %v4740_v25  ;;  %v1586_v63 = vadd.f32 %v4752_v50, %v4748_v20 }
 0x1ad   : > { %v1997_v33 = vsel %vm1805_vm4, %v1709_v55, %v1901_v48  ;;  %v2664_v35 = vadd.f32 %v2663_v6, %v2569_v27  ;;  %v2861_v7 = vadd.f32 %v2860_v41, %v2766_v34  ;;  %v2053_v0 = vpack.c.bf16 %v1999_v29, %v1998_v37  ;;  %v4854_v55 = vld [vmem:[%s4895_s2] ss:$0 sm:$0xff] }
 0x1ae   : > { %v2052_v43 = vpack.c.bf16 %v1997_v33, %v1996_v54  ;;  %vm1810_vm5 = vcmp.ge.f32.partialorder %v1714_v57, 0.0  ;;  %v1906_v39 = vmul.f32 0.2, %v1714_v57  ;;  %v1712_v12 = vadd.f32 %v4495_v59, %v1575_v49 }
 0x1af   : > { %v1715_v16 = vadd.f32 %v4495_v59, %v1586_v63  ;;  %v2768_v38 = vmul.f32 %v2570_v60, %v2570_v60  ;;  %v2665_v14 = vadd.f32 %v2664_v35, %v2570_v60  ;;  %v2862_v17 = vadd.f32 %v2861_v7, %v2767_v5  ;;  %3630 = vst [vmem:[%s4326_s12 + $0x148] sm:$0xff] %v2053_v0  }
 0x1b0   : > { %3629 = vst [vmem:[%s4326_s12 + $0x140] sm:$0xff] %v2052_v43   ;;  %v2769_v9 = vmul.f32 %v2571_v61, %v2571_v61  ;;  %v2574_v25 = vunpack.c.l.bf16 %v2053_v0  ;;  %v2572_v4 = vunpack.c.l.bf16 %v2052_v43  ;;  %v2573_v8 = vunpack.c.h.bf16 %v2052_v43 }
 0x1b1   : > { %v2863_v20 = vadd.f32 %v2862_v17, %v2768_v38  ;;  %v2575_v50 = vunpack.c.h.bf16 %v2053_v0  ;;  %v2666_v31 = vadd.f32 %v2665_v14, %v2571_v61  ;;  %v2002_v62 = vsel %vm1810_vm5, %v1714_v57, %v1906_v39 }
 0x1b2   : > { %v2770_v47 = vmul.f32 %v2572_v4, %v2572_v4  ;;  %v2771_v58 = vmul.f32 %v2573_v8, %v2573_v8  ;;  %vm1808_vm6 = vcmp.ge.f32.partialorder %v1712_v12, 0.0  ;;  %vm1811_vm7 = vcmp.ge.f32.partialorder %v1715_v16, 0.0 }
 0x1b3   : > { %v2667_v18 = vadd.f32 %v2666_v31, %v2572_v4  ;;  %v2864_v59 = vadd.f32 %v2863_v20, %v2769_v9  ;;  %v1907_v46 = vmul.f32 0.2, %v1715_v16  ;;  %v1578_v60 = vadd.f32 %v4760_v15, %v4754_v22 }
 0x1b4   : > { %v1904_v53 = vmul.f32 0.2, %v1712_v12  ;;  %v1599_v40 = vadd.f32 %v4768_v11, %v4766_v24  ;;  %v1591_v37 = vadd.f32 %v4775_v1, %v4770_v19  ;;  %v1602_v61 = vadd.f32 %v4784_v10, %v4777_v3 }
 0x1b5   : > { %v2668_v56 = vadd.f32 %v2667_v18, %v2573_v8  ;;  %v2865_v54 = vadd.f32 %v2864_v59, %v2770_v47  ;;  %v2003_v51 = vsel %vm1811_vm7, %v1715_v16, %v1907_v46  ;;  %v1713_v22 = vadd.f32 %v4854_v55, %v1578_v60 }
 0x1b6   : > { %v2772_v15 = vmul.f32 %v2574_v25, %v2574_v25  ;;  %v2055_v23 = vpack.c.bf16 %v2003_v51, %v2002_v62  ;;  %v1718_v24 = vadd.f32 %v4854_v55, %v1599_v40  ;;  %v1719_v11 = vadd.f32 %v4854_v55, %v1602_v61 }
 0x1b7   : > { %v2669_v19 = vadd.f32 %v2668_v56, %v2574_v25  ;;  %v2866_v1 = vadd.f32 %v2865_v54, %v2771_v58  ;;  %vm1809_vm8 = vcmp.ge.f32.partialorder %v1713_v22, 0.0  ;;  %v1905_v3 = vmul.f32 0.2, %v1713_v22 }
 0x1b8   : > { %v2773_v10 = vmul.f32 %v2575_v50, %v2575_v50  ;;  %v2000_v27 = vsel %vm1808_vm6, %v1712_v12, %v1904_v53  ;;  %3632 = vst [vmem:[%s4326_s12 + $0x158] sm:$0xff] %v2055_v23   ;;  %v1910_v48 = vmul.f32 0.2, %v1718_v24  ;;  %v2578_v6 = vunpack.c.l.bf16 %v2055_v23 }
 0x1b9   : > { %v2867_v41 = vadd.f32 %v2866_v1, %v2772_v15  ;;  %v2001_v26 = vsel %vm1809_vm8, %v1713_v22, %v1905_v3  ;;  %v2670_v44 = vadd.f32 %v2669_v19, %v2575_v50  ;;  %vm1814_vm9 = vcmp.ge.f32.partialorder %v1718_v24, 0.0 }
 0x1ba   : > { %v2054_v34 = vpack.c.bf16 %v2001_v26, %v2000_v27  ;;  %v1716_v5 = vadd.f32 %v4854_v55, %v1591_v37  ;;  %v2579_v57 = vunpack.c.h.bf16 %v2055_v23  ;;  %vm1815_vm10 = vcmp.ge.f32.partialorder %v1719_v11, 0.0 }
 0x1bb   : > { %v2868_v29 = vadd.f32 %v2867_v41, %v2773_v10  ;;  %v1911_v33 = vmul.f32 0.2, %v1719_v11  ;;  %v1594_v35 = vadd.f32 %v4790_v21, %v4786_v13  ;;  %v1615_v7 = vadd.f32 %v4797_v42, %v4795_v52 }
 0x1bc   : > { %3631 = vst [vmem:[%s4326_s12 + $0x150] sm:$0xff] %v2054_v34   ;;  %v2576_v49 = vunpack.c.l.bf16 %v2054_v34  ;;  %v2577_v63 = vunpack.c.h.bf16 %v2054_v34  ;;  %v2006_v0 = vsel %vm1814_vm9, %v1718_v24, %v1910_v48  ;;  %v1607_v39 = vadd.f32 %v4803_v36, %v4799_v28 }
 0x1bd   : > { %v2007_v43 = vsel %vm1815_vm10, %v1719_v11, %v1911_v33  ;;  %v1618_v12 = vadd.f32 %v4811_v2, %v4805_v30  ;;  %v1908_v14 = vmul.f32 0.2, %v1716_v5  ;;  %vm1812_vm11 = vcmp.ge.f32.partialorder %v1716_v5, 0.0 }
 0x1be   : > { %v2671_v16 = vadd.f32 %v2670_v44, %v2576_v49  ;;  %v2774_v38 = vmul.f32 %v2576_v49, %v2576_v49  ;;  %v2057_v17 = vpack.c.bf16 %v2007_v43, %v2006_v0  ;;  %v1717_v9 = vadd.f32 %v4854_v55, %v1594_v35 }
 0x1bf   : > { %v1722_v13 = vadd.f32 %v4854_v55, %v1615_v7  ;;  %v2775_v25 = vmul.f32 %v2577_v63, %v2577_v63  ;;  %v1723_v42 = vadd.f32 %v4854_v55, %v1618_v12  ;;  %v2776_v4 = vmul.f32 %v2578_v6, %v2578_v6 }
 0x1c0   : > { %v2672_v21 = vadd.f32 %v2671_v16, %v2577_v63  ;;  %v2869_v52 = vadd.f32 %v2868_v29, %v2774_v38  ;;  %3634 = vst [vmem:[%s4326_s12 + $0x168] sm:$0xff] %v2057_v17   ;;  %vm1813_vm12 = vcmp.ge.f32.partialorder %v1717_v9, 0.0  ;;  %v1909_v28 = vmul.f32 0.2, %v1717_v9 }
 0x1c1   : > { %v2777_v36 = vmul.f32 %v2579_v57, %v2579_v57  ;;  %v2004_v8 = vsel %vm1812_vm11, %v1716_v5, %v1908_v14  ;;  %vm1818_vm13 = vcmp.ge.f32.partialorder %v1722_v13, 0.0  ;;  %v1914_v50 = vmul.f32 0.2, %v1722_v13 }
 0x1c2   : > { %v2673_v30 = vadd.f32 %v2672_v21, %v2578_v6  ;;  %v2870_v2 = vadd.f32 %v2869_v52, %v2775_v25  ;;  %v2005_v20 = vsel %vm1813_vm12, %v1717_v9, %v1909_v28  ;;  %v1720_v31 = vadd.f32 %v4854_v55, %v1607_v39 }
 0x1c3   : > { %v2056_v47 = vpack.c.bf16 %v2005_v20, %v2004_v8  ;;  %vm1819_vm14 = vcmp.ge.f32.partialorder %v1723_v42, 0.0  ;;  %v1915_v18 = vmul.f32 0.2, %v1723_v42  ;;  %v1610_v59 = vadd.f32 %v4815_v45, %v4813_v32 }
 0x1c4   : > { %v2871_v62 = vadd.f32 %v2870_v2, %v2776_v4  ;;  %v2674_v58 = vadd.f32 %v2673_v30, %v2579_v57  ;;  %v2582_v40 = vunpack.c.l.bf16 %v2057_v17  ;;  %v2010_v37 = vsel %vm1818_vm13, %v1722_v13, %v1914_v50 }
 0x1c5   : > { %3633 = vst [vmem:[%s4326_s12 + $0x160] sm:$0xff] %v2056_v47   ;;  %v2580_v46 = vunpack.c.l.bf16 %v2056_v47  ;;  %v2581_v60 = vunpack.c.h.bf16 %v2056_v47  ;;  %v2011_v61 = vsel %vm1819_vm14, %v1723_v42, %v1915_v18  ;;  %v1721_v56 = vadd.f32 %v4854_v55, %v1610_v59 }
 0x1c6   : > { %v2872_v53 = vadd.f32 %v2871_v62, %v2777_v36  ;;  %v1912_v22 = vmul.f32 0.2, %v1720_v31  ;;  %v2059_v15 = vpack.c.bf16 %v2011_v61, %v2010_v37  ;;  %vm1816_vm15 = vcmp.ge.f32.partialorder %v1720_v31, 0.0 }
 0x1c7   : > { %v2675_v54 = vadd.f32 %v2674_v58, %v2580_v46  ;;  %v2778_v51 = vmul.f32 %v2580_v46, %v2580_v46  ;;  %vm1817_vm0 = vcmp.ge.f32.partialorder %v1721_v56, 0.0  ;;  %v1913_v23 = vmul.f32 0.2, %v1721_v56 }
 0x1c8   : > { %v2583_v24 = vunpack.c.h.bf16 %v2057_v17  ;;  %v2779_v45 = vmul.f32 %v2581_v60, %v2581_v60  ;;  %3636 = vst [vmem:[%s4326_s12 + $0x178] sm:$0xff] %v2059_v15   ;;  %v2780_v1 = vmul.f32 %v2582_v40, %v2582_v40  ;;  %v2008_v27 = vsel %vm1816_vm15, %v1720_v31, %v1912_v22 }
 0x1c9   : > { %v2676_v32 = vadd.f32 %v2675_v54, %v2581_v60  ;;  %v2873_v11 = vadd.f32 %v2872_v53, %v2778_v51  ;;  %v2009_v19 = vsel %vm1817_vm0, %v1721_v56, %v1913_v23  ;;  %v2586_v5 = vunpack.c.l.bf16 %v2059_v15 }
 0x1ca   : > { %v2058_v41 = vpack.c.bf16 %v2009_v19, %v2008_v27  ;;  %v2781_v55 = vmul.f32 %v2583_v24, %v2583_v24  ;;  %v2587_v33 = vunpack.c.h.bf16 %v2059_v15 }
 0x1cb   : > { %v2677_v3 = vadd.f32 %v2676_v32, %v2582_v40  ;;  %v2874_v10 = vadd.f32 %v2873_v11, %v2779_v45  ;;  %v2784_v7 = vmul.f32 %v2586_v5, %v2586_v5 }
 0x1cc   : > { %3635 = vst [vmem:[%s4326_s12 + $0x170] sm:$0xff] %v2058_v41   ;;  %v2584_v48 = vunpack.c.l.bf16 %v2058_v41  ;;  %v2585_v6 = vunpack.c.h.bf16 %v2058_v41  ;;  %v2785_v39 = vmul.f32 %v2587_v33, %v2587_v33 }
 0x1cd   : > { %v2875_v26 = vadd.f32 %v2874_v10, %v2780_v1  ;;  %v2678_v44 = vadd.f32 %v2677_v3, %v2583_v24 }
 0x1ce   : > { %v2782_v29 = vmul.f32 %v2584_v48, %v2584_v48  ;;  %v2783_v63 = vmul.f32 %v2585_v6, %v2585_v6 }
 0x1cf   : > { %v2876_v34 = vadd.f32 %v2875_v26, %v2781_v55  ;;  %v2679_v57 = vadd.f32 %v2678_v44, %v2584_v48 }
 0x1d1   : > { %v2680_v49 = vadd.f32 %v2679_v57, %v2585_v6  ;;  %v2877_v35 = vadd.f32 %v2876_v34, %v2782_v29 }
 0x1d3   : > { %v2681_v0 = vadd.f32 %v2680_v49, %v2586_v5  ;;  %v2878_v43 = vadd.f32 %v2877_v35, %v2783_v63 }
 0x1d5   : > { %v2682_v12 = vadd.f32 %v2681_v0, %v2587_v33  ;;  %v2879_v16 = vadd.f32 %v2878_v43, %v2784_v7 }
 0x1d7   : > { %v2683_v38 = vrot.slane %v2682_v12, 4  ;;  %v2880_v14 = vadd.f32 %v2879_v16, %v2785_v39 }
 0x1d9   : > { %v2684_v17 = vadd.f32 %v2683_v38, %v2682_v12  ;;  %v2881_v9 = vrot.slane %v2880_v14, 4 }
 0x1db   : > { %v2685_v13 = vrot.slane %v2684_v17, 2  ;;  %v2882_v21 = vadd.f32 %v2881_v9, %v2880_v14 }
 0x1dd   : > { %v2686_v25 = vadd.f32 %v2685_v13, %v2684_v17  ;;  %v2883_v52 = vrot.slane %v2882_v21, 2 }
 0x1df   : > { %v2687_v42 = vrot.slane %v2686_v25, 1  ;;  %v2884_v4 = vadd.f32 %v2883_v52, %v2882_v21 }
 0x1e1   : > { %v2688_v28 = vadd.f32 %v2687_v42, %v2686_v25  ;;  %v2885_v36 = vrot.slane %v2884_v4, 1 }
 0x1e3   : > { %2689 = vst [vmem:[%s238_s21] sm:$0x1] %v2688_v28  ;;  %v2886_v30 = vadd.f32 %v2885_v36, %v2884_v4 }
 0x1e5   : > { %2887 = vst [vmem:[%s241_s24] sm:$0x1] %v2886_v30 }
 0x1e6 PF: > { %s16_s18 = sadd.s32 1, %s4106_s18  }
 0x1e7   : > { %p13_p4 = scmp.ge.s32.totalorder %s16_s18, 8  }
 0x1e9   :  { %15 = sbr.rel (!%p13_p4) target bundleno = 1 (0x1), region = 87 }

// kernel: encoder_forward.6
= control target key start
LH: loop header
LB: loop body
LE: loop exit
PB: predicated region body
PF: predicated region fallthrough
CT: control target
= control target key end

     0   :  { %s3494_s18 = smov 0   ;;  %s4074_s0 = inlined_call_operand.vmem [shape: bf16[2,600,64], index: 0, kind: input, shape index: {}]   ;;  %s4075_s1 = inlined_call_operand.vmem [shape: bf16[2,64,128], index: 1, kind: input, shape index: {}]   ;;  %s4076_s2 = inlined_call_operand.vmem [shape: f32[1,128], index: 2, kind: input, shape index: {}]   ;;  %s4077_s3 = inlined_call_operand.vmem [shape: bf16[2,576,128], index: 3, kind: output, shape index: {0}]   ;;  %s4078_s4 = inlined_call_operand.vmem [shape: f32[2,1,128], index: 4, kind: output, shape index: {1}]   ;;  %s4079_s5 = inlined_call_operand.vmem [shape: f32[2,1,128], index: 5, kind: output, shape index: {2}]  }
   0x1 LB: > { %s2524_s19 = sadd.s32 4294967295, %s3462_s18   ;;  %p2528_p0 = scmp.ge.s32.totalorder %s3462_s18, 1  ;;  %s3462_s18 = sphi %s3494_s18, %s16_s18  }
   0x2   : > { %p192_p1 = scmp.lt.s32.totalorder %s3462_s18, 3 }
   0x4   : > { %p193_p2 = pnand %p2528_p0, %p192_p1 }
   0x5   : > { %v3375_v0 = vld [vmem:[%s4075_s1 + $0x20] sm:$0xff] (!%p193_p2)   ;;  %p226_p3 = scmp.lt.s32.totalorder (!%p193_p2), %s2524_s19, 1  ;;  %v3377_v2 = vld [vmem:[%s4075_s1 + $0x28] sm:$0xff] (!%p193_p2)   ;;  %v3379_v4 = vld [vmem:[%s4075_s1 + $0x30] sm:$0xff] (!%p193_p2)   ;;  %vm539_vm0 = vcmask (!%p193_p2), 523264  }
   0x6   : > { %196 = sbr.rel (%p193_p2) target bundleno = 433 (0x1b1), region = 32  ;;  %v3376_v1 = vld [vmem:[%s4075_s1] sm:$0xff] (!%p193_p2)   ;;  %3133 = vmatprep.subr.bf16.mxu1 (!%p193_p2), %v3375_v0  ;;  %v3378_v3 = vld [vmem:[%s4075_s1 + $0x8] sm:$0xff] (!%p193_p2)   ;;  %v3380_v5 = vld [vmem:[%s4075_s1 + $0x10] sm:$0xff] (!%p193_p2)  }
   0x7   : > { %3213 = vmatprep.subr.bf16.mxu0 (!%p193_p2), %v3376_v1  ;;  %3134 = vmatpush3.bf16.msra.mxu1 (!%p193_p2), %v3375_v0  ;;  %v3381_v6 = vld [vmem:[%s4075_s1 + $0x38] sm:$0xff] (!%p193_p2)  }
   0x8   : > { %3214 = vmatpush3.bf16.msra.mxu0 (!%p193_p2), %v3376_v1  ;;  %3135 = vmatprep.subr.bf16.mxu1 (!%p193_p2), %v3377_v2  ;;  %v3382_v9 = vld [vmem:[%s4075_s1 + $0x18] sm:$0xff] (!%p193_p2)  }
   0x9   : > { %3215 = vmatprep.subr.bf16.mxu0 (!%p193_p2), %v3378_v3 }
   0xb   : > { %3136 = vmatpush3.bf16.msra.mxu1 (!%p193_p2), %v3377_v2 }
   0xc   : > { %3216 = vmatpush3.bf16.msra.mxu0 (!%p193_p2), %v3378_v3  ;;  %3137 = vmatprep.subr.bf16.mxu1 (!%p193_p2), %v3379_v4 }
   0xd   : > { %s4081_s19 = smov (!%p226_p3, %s2524_s19), 1  ;;  %3217 = vmatprep.subr.bf16.mxu0 %v3380_v5 }
   0xe   : > { %s3365_s30 = smul.u32 300, %s4081_s19  ;;  %s238_s27 = scalar_lea.vmem %s4078_s4, %s4081_s19 }
   0xf   : > { %3138 = vmatpush3.bf16.msra.mxu1 %v3379_v4  ;;  %s3366_s17 = smul.u32 288, %s4081_s19 }
  0x10   : > { %s3526_s10 = scalar_lea.vmem %s4074_s0, %s3365_s30  ;;  %3218 = vmatpush3.bf16.msra.mxu0 %v3380_v5  ;;  %3139 = vmatprep.subr.bf16.mxu1 %v3381_v6  ;;  %s241_s30 = scalar_lea.vmem %s4079_s5, %s4081_s19 }
  0x11   : > { %v246_v7 = vld [vmem:[%s3526_s10 + $0xc] sm:$0xf]  ;;  %v247_v8 = vld [vmem:[%s3526_s10 + $0x10] sm:$0xf]  ;;  %v3387_v11 = vld [vmem:[%s3526_s10] sm:$0xff]   ;;  %3219 = vmatprep.subr.bf16.mxu0 %v3382_v9  ;;  %s3692_s22 = scalar_lea.vmem %s4077_s3, %s3366_s17 }
  0x12   : > { %v2539_v10 = vcombine.low %v246_v7, %v247_v8  ;;  %v248_v12 = vld [vmem:[%s3526_s10 + $0x14] sm:$0xf]  ;;  %v249_v13 = vld [vmem:[%s3526_s10 + $0x18] sm:$0xf]  ;;  %v245_v14 = vld [vmem:[%s3526_s10 + $0x8] sm:$0xf]  ;;  %3221 = vmatprep.mubr.msk.bf16.mxu0 %vm539_vm0, %v3387_v11 }
  0x13   : > { %v250_v15 = vld [vmem:[%s3526_s10 + $0x1c] sm:$0xf]  ;;  %v251_v16 = vld [vmem:[%s3526_s10 + $0x20] sm:$0xf]  ;;  %v2540_v17 = vcombine.low %v248_v12, %v249_v13  ;;  %3140 = vmatpush3.bf16.msra.mxu1 %v3381_v6  ;;  %v2616_v18 = vcombine.low %v245_v14, %v246_v7  ;;  %v2617_v20 = vcombine.low %v247_v8, %v248_v12  ;;  %v252_v21 = vld [vmem:[%s3526_s10 + $0x24] sm:$0xf] }
  0x14   : > { %3141 = vmatprep.mubr.msk.bf16.mxu1 %vm539_vm0, %v2539_v10  ;;  %v2541_v19 = vcombine.low %v250_v15, %v251_v16  ;;  %3220 = vmatpush3.bf16.msra.mxu0 %v3382_v9  ;;  %v253_v22 = vld [vmem:[%s3526_s10 + $0x28] sm:$0xf]  ;;  %v254_v23 = vld [vmem:[%s3526_s10 + $0x2c] sm:$0xf]  ;;  %v255_v24 = vld [vmem:[%s3526_s10 + $0x30] sm:$0xf]  ;;  %v2618_v26 = vcombine.low %v249_v13, %v250_v15  ;;  %v2619_v28 = vcombine.low %v251_v16, %v252_v21 }
  0x15   : > { %v2542_v25 = vcombine.low %v252_v21, %v253_v22  ;;  %v2543_v27 = vcombine.low %v254_v23, %v255_v24  ;;  %v256_v29 = vld [vmem:[%s3526_s10 + $0x34] sm:$0xf]  ;;  %v257_v30 = vld [vmem:[%s3526_s10 + $0x38] sm:$0xf]  ;;  %v258_v31 = vld [vmem:[%s3526_s10 + $0x3c] sm:$0xf]  ;;  %v2620_v34 = vcombine.low %v253_v22, %v254_v23 }
  0x16   : > { %3142 = vmatmul.mubr.msk.bf16.vlgmr.msra.gmra.mrb[0].mxu1 %vm539_vm0, %v2540_v17  ;;  %v259_v32 = vld [vmem:[%s3526_s10 + $0x40] sm:$0xf]  ;;  %v2544_v33 = vcombine.low %v256_v29, %v257_v30  ;;  %v2621_v36 = vcombine.low %v255_v24, %v256_v29  ;;  %v260_v37 = vld [vmem:[%s3526_s10 + $0x44] sm:$0xf]  ;;  %v261_v38 = vld [vmem:[%s3526_s10 + $0x48] sm:$0xf]  ;;  %v2622_v42 = vcombine.low %v257_v30, %v258_v31 }
  0x17   : > { %3222 = vmatmul.mubr.msk.bf16.vlgmr.msra.gmra.mrb[0].mxu0 %vm539_vm0, %v2616_v18  ;;  %3145 = vmatprep.mubr.msk.bf16.mxu1 %vm539_vm0, %v2541_v19  ;;  %v2545_v35 = vcombine.low %v258_v31, %v259_v32  ;;  %v262_v39 = vld [vmem:[%s3526_s10 + $0x4c] sm:$0xf]  ;;  %v263_v40 = vld [vmem:[%s3526_s10 + $0x50] sm:$0xf]  ;;  %v2546_v41 = vcombine.low %v260_v37, %v261_v38  ;;  %v2623_v44 = vcombine.low %v259_v32, %v260_v37  ;;  %v264_v45 = vld [vmem:[%s3526_s10 + $0x54] sm:$0xf] }
  0x18   : > { %3225 = vmatprep.mubr.msk.bf16.mxu0 %vm539_vm0, %v2617_v20  ;;  %v2547_v43 = vcombine.low %v262_v39, %v263_v40  ;;  %v265_v46 = vld [vmem:[%s3526_s10 + $0x58] sm:$0xf]  ;;  %v266_v47 = vld [vmem:[%s3526_s10 + $0x5c] sm:$0xf]  ;;  %v267_v48 = vld [vmem:[%s3526_s10 + $0x60] sm:$0xf]  ;;  %v2624_v50 = vcombine.low %v261_v38, %v262_v39  ;;  %v2625_v52 = vcombine.low %v263_v40, %v264_v45 }
  0x19   : > { %v2548_v49 = vcombine.low %v264_v45, %v265_v46  ;;  %v2549_v51 = vcombine.low %v266_v47, %v267_v48  ;;  %v268_v53 = vld [vmem:[%s3526_s10 + $0x64] sm:$0xf]  ;;  %v269_v54 = vld [vmem:[%s3526_s10 + $0x68] sm:$0xf]  ;;  %v270_v55 = vld [vmem:[%s3526_s10 + $0x6c] sm:$0xf]  ;;  %v2626_v58 = vcombine.low %v265_v46, %v266_v47 }
  0x1a   : > { %v271_v56 = vld [vmem:[%s3526_s10 + $0x70] sm:$0xf]  ;;  %v2550_v57 = vcombine.low %v268_v53, %v269_v54  ;;  %v2627_v60 = vcombine.low %v267_v48, %v268_v53  ;;  %v272_v61 = vld [vmem:[%s3526_s10 + $0x74] sm:$0xf]  ;;  %v273_v62 = vld [vmem:[%s3526_s10 + $0x78] sm:$0xf]  ;;  %v2628_v2 = vcombine.low %v269_v54, %v270_v55 }
  0x1b   : > { %v2551_v59 = vcombine.low %v270_v55, %v271_v56  ;;  %v274_v63 = vld [vmem:[%s3526_s10 + $0x7c] sm:$0xf]  ;;  %v275_v0 = vld [vmem:[%s3526_s10 + $0x80] sm:$0xf]  ;;  %v2552_v1 = vcombine.low %v272_v61, %v273_v62  ;;  %v2629_v4 = vcombine.low %v271_v56, %v272_v61  ;;  %v276_v5 = vld [vmem:[%s3526_s10 + $0x84] sm:$0xf] }
  0x1c   : > { %v2553_v3 = vcombine.low %v274_v63, %v275_v0  ;;  %v277_v6 = vld [vmem:[%s3526_s10 + $0x88] sm:$0xf]  ;;  %v278_v7 = vld [vmem:[%s3526_s10 + $0x8c] sm:$0xf]  ;;  %v279_v8 = vld [vmem:[%s3526_s10 + $0x90] sm:$0xf]  ;;  %v2630_v10 = vcombine.low %v273_v62, %v274_v63  ;;  %v2631_v12 = vcombine.low %v275_v0, %v276_v5 }
  0x1d   : > { %v2554_v9 = vcombine.low %v276_v5, %v277_v6  ;;  %v2555_v11 = vcombine.low %v278_v7, %v279_v8  ;;  %v280_v13 = vld [vmem:[%s3526_s10 + $0x94] sm:$0xf]  ;;  %v281_v14 = vld [vmem:[%s3526_s10 + $0x98] sm:$0xf]  ;;  %v282_v15 = vld [vmem:[%s3526_s10 + $0x9c] sm:$0xf]  ;;  %v2632_v18 = vcombine.low %v277_v6, %v278_v7 }
  0x1e   : > { %3146 = vmatmul.mubr.msk.bf16.gmra.mrb[4].mxu1 %vm539_vm0, %v2542_v25  ;;  %v283_v16 = vld [vmem:[%s3526_s10 + $0xa0] sm:$0xf]  ;;  %v2556_v17 = vcombine.low %v280_v13, %v281_v14  ;;  %v2633_v20 = vcombine.low %v279_v8, %v280_v13  ;;  %v284_v21 = vld [vmem:[%s3526_s10 + $0xa4] sm:$0xf]  ;;  %v285_v22 = vld [vmem:[%s3526_s10 + $0xa8] sm:$0xf] }
  0x1f   : > { %3226 = vmatmul.mubr.msk.bf16.gmra.mrb[4].mxu0 %vm539_vm0, %v2618_v26  ;;  %3149 = vmatprep.mubr.msk.bf16.mxu1 %vm539_vm0, %v2543_v27  ;;  %v2557_v19 = vcombine.low %v282_v15, %v283_v16  ;;  %v286_v23 = vld [vmem:[%s3526_s10 + $0xac] sm:$0xf]  ;;  %v287_v24 = vld [vmem:[%s3526_s10 + $0xb0] sm:$0xf]  ;;  %v2558_v25 = vcombine.low %v284_v21, %v285_v22  ;;  %v2634_v26 = vcombine.low %v281_v14, %v282_v15  ;;  %v288_v29 = vld [vmem:[%s3526_s10 + $0xb4] sm:$0xf] }
  0x20   : > { %3229 = vmatprep.mubr.msk.bf16.mxu0 %vm539_vm0, %v2619_v28  ;;  %v2559_v27 = vcombine.low %v286_v23, %v287_v24  ;;  %v2635_v28 = vcombine.low %v283_v16, %v284_v21  ;;  %v289_v30 = vld [vmem:[%s3526_s10 + $0xb8] sm:$0xf]  ;;  %v290_v31 = vld [vmem:[%s3526_s10 + $0xbc] sm:$0xf]  ;;  %v291_v32 = vld [vmem:[%s3526_s10 + $0xc0] sm:$0xf] }
  0x21   : > { %v292_v37 = vld [vmem:[%s3526_s10 + $0xc4] sm:$0xf]  ;;  %v293_v38 = vld [vmem:[%s3526_s10 + $0xc8] sm:$0xf]  ;;  %v294_v39 = vld [vmem:[%s3526_s10 + $0xcc] sm:$0xf] }
  0x22   : > { %v295_v40 = vld [vmem:[%s3526_s10 + $0xd0] sm:$0xf]  ;;  %v296_v45 = vld [vmem:[%s3526_s10 + $0xd4] sm:$0xf]  ;;  %v297_v46 = vld [vmem:[%s3526_s10 + $0xd8] sm:$0xf] }
  0x23   : > { %v298_v47 = vld [vmem:[%s3526_s10 + $0xdc] sm:$0xf]  ;;  %v299_v48 = vld [vmem:[%s3526_s10 + $0xe0] sm:$0xf]  ;;  %v300_v53 = vld [vmem:[%s3526_s10 + $0xe4] sm:$0xf] }
  0x24   : > { %v301_v54 = vld [vmem:[%s3526_s10 + $0xe8] sm:$0xf]  ;;  %v302_v55 = vld [vmem:[%s3526_s10 + $0xec] sm:$0xf]  ;;  %v303_v56 = vld [vmem:[%s3526_s10 + $0xf0] sm:$0xf] }
  0x25   : > { %v304_v61 = vld [vmem:[%s3526_s10 + $0xf4] sm:$0xf]  ;;  %v305_v62 = vld [vmem:[%s3526_s10 + $0xf8] sm:$0xf]  ;;  %v306_v63 = vld [vmem:[%s3526_s10 + $0xfc] sm:$0xf] }
  0x26   : > { %3150 = vmatmul.mubr.msk.bf16.gmra.mrb[8].mxu1 %vm539_vm0, %v2544_v33  ;;  %v2560_v33 = vcombine.low %v288_v29, %v289_v30  ;;  %v307_v0 = vld [vmem:[%s3526_s10 + $0x100] sm:$0xf]  ;;  %v308_v5 = vld [vmem:[%s3526_s10 + $0x104] sm:$0xf]  ;;  %v309_v6 = vld [vmem:[%s3526_s10 + $0x108] sm:$0xf] }
  0x27   : > { %3230 = vmatmul.mubr.msk.bf16.gmra.mrb[8].mxu0 %vm539_vm0, %v2620_v34  ;;  %3153 = vmatprep.mubr.msk.bf16.mxu1 %vm539_vm0, %v2545_v35  ;;  %v2636_v34 = vcombine.low %v285_v22, %v286_v23  ;;  %v2561_v35 = vcombine.low %v290_v31, %v291_v32  ;;  %v310_v7 = vld [vmem:[%s3526_s10 + $0x10c] sm:$0xf]  ;;  %v311_v8 = vld [vmem:[%s3526_s10 + $0x110] sm:$0xf]  ;;  %v312_v13 = vld [vmem:[%s3526_s10 + $0x114] sm:$0xf] }
  0x28   : > { %3233 = vmatprep.mubr.msk.bf16.mxu0 %vm539_vm0, %v2621_v36  ;;  %v2637_v36 = vcombine.low %v287_v24, %v288_v29  ;;  %v313_v14 = vld [vmem:[%s3526_s10 + $0x118] sm:$0xf]  ;;  %v314_v15 = vld [vmem:[%s3526_s10 + $0x11c] sm:$0xf]  ;;  %v315_v16 = vld [vmem:[%s3526_s10 + $0x120] sm:$0xf] }
  0x29   : > { %v3453_v21 = vld [vmem:[%s3526_s10 + $0x124] sm:$0xff]   ;;  %v2650_v22 = vcombine.low %v313_v14, %v314_v15 }
  0x2e   : > { %3154 = vmatmul.mubr.msk.bf16.gmra.mrb[12].mxu1 %vm539_vm0, %v2546_v41  ;;  %v2562_v41 = vcombine.low %v292_v37, %v293_v38 }
  0x2f   : > { %3234 = vmatmul.mubr.msk.bf16.gmra.mrb[12].mxu0 %vm539_vm0, %v2622_v42  ;;  %3157 = vmatprep.mubr.msk.bf16.mxu1 %vm539_vm0, %v2547_v43  ;;  %v2638_v42 = vcombine.low %v289_v30, %v290_v31  ;;  %v2563_v43 = vcombine.low %v294_v39, %v295_v40 }
  0x30   : > { %3237 = vmatprep.mubr.msk.bf16.mxu0 %vm539_vm0, %v2623_v44  ;;  %v2639_v44 = vcombine.low %v291_v32, %v292_v37 }
  0x36   : > { %3158 = vmatmul.mubr.msk.bf16.gmra.mrb[16].mxu1 %vm539_vm0, %v2548_v49  ;;  %v2564_v49 = vcombine.low %v296_v45, %v297_v46 }
  0x37   : > { %3238 = vmatmul.mubr.msk.bf16.gmra.mrb[16].mxu0 %vm539_vm0, %v2624_v50  ;;  %3161 = vmatprep.mubr.msk.bf16.mxu1 %vm539_vm0, %v2549_v51  ;;  %v2640_v50 = vcombine.low %v293_v38, %v294_v39  ;;  %v2565_v51 = vcombine.low %v298_v47, %v299_v48 }
  0x38   : > { %3241 = vmatprep.mubr.msk.bf16.mxu0 %vm539_vm0, %v2625_v52  ;;  %v2641_v52 = vcombine.low %v295_v40, %v296_v45 }
  0x3e   : > { %3162 = vmatmul.mubr.msk.bf16.gmra.mrb[20].mxu1 %vm539_vm0, %v2550_v57  ;;  %v2566_v57 = vcombine.low %v300_v53, %v301_v54 }
  0x3f   : > { %3242 = vmatmul.mubr.msk.bf16.gmra.mrb[20].mxu0 %vm539_vm0, %v2626_v58  ;;  %3165 = vmatprep.mubr.msk.bf16.mxu1 %vm539_vm0, %v2551_v59  ;;  %v2642_v58 = vcombine.low %v297_v46, %v298_v47  ;;  %v2567_v59 = vcombine.low %v302_v55, %v303_v56 }
  0x40   : > { %3245 = vmatprep.mubr.msk.bf16.mxu0 %vm539_vm0, %v2627_v60  ;;  %v2643_v60 = vcombine.low %v299_v48, %v300_v53 }
  0x46   : > { %3166 = vmatmul.mubr.msk.bf16.gmra.mrb[24].mxu1 %vm539_vm0, %v2552_v1  ;;  %v2568_v1 = vcombine.low %v304_v61, %v305_v62 }
  0x47   : > { %3246 = vmatmul.mubr.msk.bf16.gmra.mrb[24].mxu0 %vm539_vm0, %v2628_v2  ;;  %3169 = vmatprep.mubr.msk.bf16.mxu1 %vm539_vm0, %v2553_v3  ;;  %v2644_v2 = vcombine.low %v301_v54, %v302_v55  ;;  %v2569_v3 = vcombine.low %v306_v63, %v307_v0 }
  0x48   : > { %3249 = vmatprep.mubr.msk.bf16.mxu0 %vm539_vm0, %v2629_v4  ;;  %v2645_v4 = vcombine.low %v303_v56, %v304_v61 }
  0x4e   : > { %3170 = vmatmul.mubr.msk.bf16.gmra.mrb[28].mxu1 %vm539_vm0, %v2554_v9  ;;  %v2570_v9 = vcombine.low %v308_v5, %v309_v6 }
  0x4f   : > { %3250 = vmatmul.mubr.msk.bf16.gmra.mrb[28].mxu0 %vm539_vm0, %v2630_v10  ;;  %3173 = vmatprep.mubr.msk.bf16.mxu1 %vm539_vm0, %v2555_v11  ;;  %v2646_v10 = vcombine.low %v305_v62, %v306_v63  ;;  %v2571_v11 = vcombine.low %v310_v7, %v311_v8 }
  0x50   : > { %3253 = vmatprep.mubr.msk.bf16.mxu0 %vm539_vm0, %v2631_v12  ;;  %v2647_v12 = vcombine.low %v307_v0, %v308_v5 }
  0x56   : > { %3174 = vmatmul.mubr.msk.bf16.gmra.mrb[32].mxu1 %vm539_vm0, %v2556_v17  ;;  %v2572_v17 = vcombine.low %v312_v13, %v313_v14 }
  0x57   : > { %3254 = vmatmul.mubr.msk.bf16.gmra.mrb[32].mxu0 %vm539_vm0, %v2632_v18  ;;  %3177 = vmatprep.mubr.msk.bf16.mxu1 %vm539_vm0, %v2557_v19  ;;  %v2648_v18 = vcombine.low %v309_v6, %v310_v7  ;;  %v2573_v19 = vcombine.low %v314_v15, %v315_v16 }
  0x58   : > { %3257 = vmatprep.mubr.msk.bf16.mxu0 %vm539_vm0, %v2633_v20  ;;  %v2649_v20 = vcombine.low %v311_v8, %v312_v13 }
  0x5e   : > { %3178 = vmatmul.mubr.msk.bf16.gmra.mrb[36].mxu1 %vm539_vm0, %v2558_v25  ;;  %v3682_v25 = vld [vmem:[%s4076_s2] ss:$0 sm:$0xff] }
  0x5f   : > { %3258 = vmatmul.mubr.msk.bf16.gmra.mrb[36].mxu0 %vm539_vm0, %v2634_v26  ;;  %3181 = vmatprep.mubr.msk.bf16.mxu1 %vm539_vm0, %v2559_v27 }
  0x60   : > { %3261 = vmatprep.mubr.msk.bf16.mxu0 %vm539_vm0, %v2635_v28 }
  0x66   : > { %3182 = vmatmul.mubr.msk.bf16.gmra.mrb[40].mxu1 %vm539_vm0, %v2560_v33 }
  0x67   : > { %3262 = vmatmul.mubr.msk.bf16.gmra.mrb[40].mxu0 %vm539_vm0, %v2636_v34  ;;  %3185 = vmatprep.mubr.msk.bf16.mxu1 %vm539_vm0, %v2561_v35 }
  0x68   : > { %3265 = vmatprep.mubr.msk.bf16.mxu0 %vm539_vm0, %v2637_v36 }
  0x6e   : > { %3186 = vmatmul.mubr.msk.bf16.gmra.mrb[44].mxu1 %vm539_vm0, %v2562_v41 }
  0x6f   : > { %3266 = vmatmul.mubr.msk.bf16.gmra.mrb[44].mxu0 %vm539_vm0, %v2638_v42  ;;  %3189 = vmatprep.mubr.msk.bf16.mxu1 %vm539_vm0, %v2563_v43 }
  0x70   : > { %3269 = vmatprep.mubr.msk.bf16.mxu0 %vm539_vm0, %v2639_v44 }
  0x76   : > { %3190 = vmatmul.mubr.msk.bf16.gmra.mrb[48].mxu1 %vm539_vm0, %v2564_v49 }
  0x77   : > { %3270 = vmatmul.mubr.msk.bf16.gmra.mrb[48].mxu0 %vm539_vm0, %v2640_v50  ;;  %3193 = vmatprep.mubr.msk.bf16.mxu1 %vm539_vm0, %v2565_v51 }
  0x78   : > { %3273 = vmatprep.mubr.msk.bf16.mxu0 %vm539_vm0, %v2641_v52 }
  0x7e   : > { %3194 = vmatmul.mubr.msk.bf16.gmra.mrb[52].mxu1 %vm539_vm0, %v2566_v57 }
  0x7f   : > { %3274 = vmatmul.mubr.msk.bf16.gmra.mrb[52].mxu0 %vm539_vm0, %v2642_v58  ;;  %3197 = vmatprep.mubr.msk.bf16.mxu1 %vm539_vm0, %v2567_v59 }
  0x80   : > { %3277 = vmatprep.mubr.msk.bf16.mxu0 %vm539_vm0, %v2643_v60 }
  0x86   : > { %3198 = vmatmul.mubr.msk.bf16.gmra.mrb[56].mxu1 %vm539_vm0, %v2568_v1 }
  0x87   : > { %3278 = vmatmul.mubr.msk.bf16.gmra.mrb[56].mxu0 %vm539_vm0, %v2644_v2  ;;  %3201 = vmatprep.mubr.msk.bf16.mxu1 %vm539_vm0, %v2569_v3 }
  0x88   : > { %3281 = vmatprep.mubr.msk.bf16.mxu0 %vm539_vm0, %v2645_v4 }
  0x8e   : > { %3202 = vmatmul.mubr.msk.bf16.gmra.mrb[60].mxu1 %vm539_vm0, %v2570_v9 }
  0x8f   : > { %3282 = vmatmul.mubr.msk.bf16.gmra.mrb[60].mxu0 %vm539_vm0, %v2646_v10  ;;  %3205 = vmatprep.mubr.msk.bf16.mxu1 %vm539_vm0, %v2571_v11 }
  0x90   : > { %3285 = vmatprep.mubr.msk.bf16.mxu0 %vm539_vm0, %v2647_v12 }
  0x96   : > { %3206 = vmatmul.mubr.msk.bf16.gmra.mrb[64].mxu1 %vm539_vm0, %v2572_v17 }
  0x97   : > { %3286 = vmatmul.mubr.msk.bf16.gmra.mrb[64].mxu0 %vm539_vm0, %v2648_v18  ;;  %3209 = vmatprep.mubr.msk.bf16.mxu1 %vm539_vm0, %v2573_v19 }
  0x98   : > { %3289 = vmatprep.mubr.msk.bf16.mxu0 %vm539_vm0, %v2649_v20 }
  0x9e   : > { %3210 = vmatmul.mubr.msk.bf16.gmra.mrb[68].mxu1 %vm539_vm0, %v3453_v21 }
  0x9f   : > { %3290 = vmatmul.mubr.msk.bf16.gmra.mrb[68].mxu0 %vm539_vm0, %v2650_v22 }
  0xe9   : > { %v3143_v23 = vpop.f32.mrb[0].mxu1 }
  0xea   : > { %v3223_v24 = vpop.f32.mrb[0].mxu0  ;;  %v682_v26 = vpop.f32.mrb[1].mxu1 }
  0xeb   : > { %v1186_v27 = vadd.f32 %v3223_v24, %v3143_v23  ;;  %v1177_v28 = vpop.f32.mrb[1].mxu0  ;;  %v3144_v29 = vpop.f32.mrb[2].mxu1 }
  0xec   : > { %v1178_v30 = vadd.f32 %v1177_v28, %v682_v26  ;;  %v3224_v31 = vpop.f32.mrb[2].mxu0  ;;  %v685_v32 = vpop.f32.mrb[3].mxu1 }
  0xed   : > { %v1473_v33 = vadd.f32 %v3682_v25, %v1186_v27  ;;  %v1189_v34 = vadd.f32 %v3224_v31, %v3144_v29  ;;  %v1180_v35 = vpop.f32.mrb[3].mxu0 }
  0xee   : > { %v1471_v36 = vadd.f32 %v3682_v25, %v1178_v30  ;;  %v1181_v37 = vadd.f32 %v1180_v35, %v685_v32 }
  0xef   : > { %v1617_v38 = vmul.f32 0.2, %v1473_v33  ;;  %v1474_v39 = vadd.f32 %v3682_v25, %v1189_v34  ;;  %vm1545_vm1 = vcmp.ge.f32.partialorder %v1473_v33, 0.0 }
  0xf0   : > { %v1615_v40 = vmul.f32 0.2, %v1471_v36  ;;  %v1472_v41 = vadd.f32 %v3682_v25, %v1181_v37  ;;  %vm1543_vm2 = vcmp.ge.f32.partialorder %v1471_v36, 0.0 }
  0xf1   : > { %vm1546_vm3 = vcmp.ge.f32.partialorder %v1474_v39, 0.0  ;;  %v1618_v42 = vmul.f32 0.2, %v1474_v39  ;;  %v3147_v43 = vpop.f32.mrb[4].mxu1  ;;  %v1689_v47 = vsel %vm1545_vm1, %v1473_v33, %v1617_v38 }
  0xf2   : > { %vm1544_vm4 = vcmp.ge.f32.partialorder %v1472_v41, 0.0  ;;  %v1616_v44 = vmul.f32 0.2, %v1472_v41  ;;  %v3227_v45 = vpop.f32.mrb[4].mxu0  ;;  %v698_v46 = vpop.f32.mrb[5].mxu1  ;;  %v1687_v52 = vsel %vm1543_vm2, %v1471_v36, %v1615_v40 }
  0xf3   : > { %v1690_v48 = vsel %vm1546_vm3, %v1474_v39, %v1618_v42  ;;  %v1202_v49 = vadd.f32 %v3227_v45, %v3147_v43  ;;  %v1193_v50 = vpop.f32.mrb[5].mxu0  ;;  %v3148_v51 = vpop.f32.mrb[6].mxu1 }
  0xf4   : > { %v1760_v53 = vpack.c.bf16 %v1690_v48, %v1689_v47  ;;  %v1688_v54 = vsel %vm1544_vm4, %v1472_v41, %v1616_v44  ;;  %v1194_v55 = vadd.f32 %v1193_v50, %v698_v46  ;;  %v3228_v56 = vpop.f32.mrb[6].mxu0  ;;  %v701_v57 = vpop.f32.mrb[7].mxu1 }
  0xf5   : > { %v1759_v58 = vpack.c.bf16 %v1688_v54, %v1687_v52  ;;  %v1477_v59 = vadd.f32 %v3682_v25, %v1202_v49  ;;  %v1205_v60 = vadd.f32 %v3228_v56, %v3148_v51  ;;  %v1196_v61 = vpop.f32.mrb[7].mxu0 }
  0xf6   : > { %3018 = vst [vmem:[%s3692_s22 + $0x8] sm:$0xff] %v1760_v53   ;;  %v2121_v62 = vunpack.c.l.bf16 %v1760_v53  ;;  %v2122_v63 = vunpack.c.h.bf16 %v1760_v53  ;;  %v1475_v0 = vadd.f32 %v3682_v25, %v1194_v55  ;;  %v1197_v1 = vadd.f32 %v1196_v61, %v701_v57 }
  0xf7   : > { %2842 = vst [vmem:[%s3692_s22] sm:$0xff] %v1759_v58   ;;  %v2119_v2 = vunpack.c.l.bf16 %v1759_v58  ;;  %v2120_v3 = vunpack.c.h.bf16 %v1759_v58  ;;  %v1621_v4 = vmul.f32 0.2, %v1477_v59  ;;  %vm1549_vm5 = vcmp.ge.f32.partialorder %v1477_v59, 0.0 }
  0xf8   : > { %v2271_v5 = vmul.f32 %v2121_v62, %v2121_v62  ;;  %v2272_v6 = vmul.f32 %v2122_v63, %v2122_v63  ;;  %vm1547_vm6 = vcmp.ge.f32.partialorder %v1475_v0, 0.0  ;;  %v1619_v11 = vmul.f32 0.2, %v1475_v0 }
  0xf9   : > { %v2191_v7 = vadd.f32 %v2120_v3, %v2119_v2  ;;  %v2269_v8 = vmul.f32 %v2119_v2, %v2119_v2  ;;  %v2270_v9 = vmul.f32 %v2120_v3, %v2120_v3  ;;  %v3151_v10 = vpop.f32.mrb[8].mxu1  ;;  %v1478_v12 = vadd.f32 %v3682_v25, %v1205_v60 }
  0xfa   : > { %v1476_v13 = vadd.f32 %v3682_v25, %v1197_v1  ;;  %v3231_v14 = vpop.f32.mrb[8].mxu0  ;;  %v714_v15 = vpop.f32.mrb[9].mxu1  ;;  %v1693_v18 = vsel %vm1549_vm5, %v1477_v59, %v1621_v4  ;;  %v1691_v31 = vsel %vm1547_vm6, %v1475_v0, %v1619_v11 }
  0xfb   : > { %v2192_v16 = vadd.f32 %v2191_v7, %v2121_v62  ;;  %v2341_v17 = vadd.f32 %v2270_v9, %v2269_v8  ;;  %v1218_v19 = vadd.f32 %v3231_v14, %v3151_v10  ;;  %v1209_v20 = vpop.f32.mrb[9].mxu0  ;;  %v3152_v21 = vpop.f32.mrb[10].mxu1  ;;  %vm1550_vm7 = vcmp.ge.f32.partialorder %v1478_v12, 0.0 }
  0xfc   : > { %v1622_v22 = vmul.f32 0.2, %v1478_v12  ;;  %vm1548_vm8 = vcmp.ge.f32.partialorder %v1476_v13, 0.0  ;;  %v1620_v23 = vmul.f32 0.2, %v1476_v13  ;;  %v1210_v28 = vadd.f32 %v1209_v20, %v714_v15  ;;  %v3232_v29 = vpop.f32.mrb[10].mxu0 }
  0xfd   : > { %v2193_v24 = vadd.f32 %v2192_v16, %v2122_v63  ;;  %v2342_v26 = vadd.f32 %v2341_v17, %v2271_v5  ;;  %v1481_v27 = vadd.f32 %v3682_v25, %v1218_v19  ;;  %v717_v30 = vpop.f32.mrb[11].mxu1  ;;  %v1221_v34 = vadd.f32 %v3232_v29, %v3152_v21  ;;  %v1212_v35 = vpop.f32.mrb[11].mxu0 }
  0xfe   : > { %v1694_v32 = vsel %vm1550_vm7, %v1478_v12, %v1622_v22  ;;  %v1692_v33 = vsel %vm1548_vm8, %v1476_v13, %v1620_v23  ;;  %v1479_v40 = vadd.f32 %v3682_v25, %v1210_v28  ;;  %v1213_v42 = vadd.f32 %v1212_v35, %v717_v30 }
  0xff   : > { %v2343_v36 = vadd.f32 %v2342_v26, %v2272_v6  ;;  %v1762_v37 = vpack.c.bf16 %v1694_v32, %v1693_v18  ;;  %v1761_v38 = vpack.c.bf16 %v1692_v33, %v1691_v31  ;;  %vm1553_vm9 = vcmp.ge.f32.partialorder %v1481_v27, 0.0 }
 0x100   : > { %v1625_v39 = vmul.f32 0.2, %v1481_v27  ;;  %v1482_v41 = vadd.f32 %v3682_v25, %v1221_v34  ;;  %vm1551_vm10 = vcmp.ge.f32.partialorder %v1479_v40, 0.0  ;;  %v1623_v53 = vmul.f32 0.2, %v1479_v40 }
 0x101   : > { %3020 = vst [vmem:[%s3692_s22 + $0x18] sm:$0xff] %v1762_v37   ;;  %v2125_v43 = vunpack.c.l.bf16 %v1762_v37  ;;  %3019 = vst [vmem:[%s3692_s22 + $0x10] sm:$0xff] %v1761_v38   ;;  %v2123_v44 = vunpack.c.l.bf16 %v1761_v38  ;;  %v2124_v45 = vunpack.c.h.bf16 %v1761_v38  ;;  %v3155_v46 = vpop.f32.mrb[12].mxu1  ;;  %v2126_v47 = vunpack.c.h.bf16 %v1762_v37 }
 0x102   : > { %v1697_v48 = vsel %vm1553_vm9, %v1481_v27, %v1625_v39  ;;  %v3235_v49 = vpop.f32.mrb[12].mxu0  ;;  %v730_v50 = vpop.f32.mrb[13].mxu1  ;;  %vm1554_vm11 = vcmp.ge.f32.partialorder %v1482_v41, 0.0  ;;  %v1626_v58 = vmul.f32 0.2, %v1482_v41  ;;  %v1480_v59 = vadd.f32 %v3682_v25, %v1213_v42 }
 0x103   : > { %v2194_v51 = vadd.f32 %v2193_v24, %v2123_v44  ;;  %v2273_v52 = vmul.f32 %v2123_v44, %v2123_v44  ;;  %v1225_v54 = vpop.f32.mrb[13].mxu0  ;;  %v3156_v55 = vpop.f32.mrb[14].mxu1  ;;  %v2275_v56 = vmul.f32 %v2125_v43, %v2125_v43  ;;  %v2274_v57 = vmul.f32 %v2124_v45, %v2124_v45 }
 0x104   : > { %v3236_v60 = vpop.f32.mrb[14].mxu0  ;;  %v733_v61 = vpop.f32.mrb[15].mxu1  ;;  %v1234_v0 = vadd.f32 %v3235_v49, %v3155_v46  ;;  %v1226_v1 = vadd.f32 %v1225_v54, %v730_v50  ;;  %v1698_v3 = vsel %vm1554_vm11, %v1482_v41, %v1626_v58  ;;  %vm1552_vm12 = vcmp.ge.f32.partialorder %v1480_v59, 0.0 }
 0x105   : > { %v2195_v62 = vadd.f32 %v2194_v51, %v2124_v45  ;;  %v2344_v63 = vadd.f32 %v2343_v36, %v2273_v52  ;;  %v1228_v2 = vpop.f32.mrb[15].mxu0  ;;  %v1624_v4 = vmul.f32 0.2, %v1480_v59  ;;  %v1237_v5 = vadd.f32 %v3236_v60, %v3156_v55 }
 0x106   : > { %v1764_v8 = vpack.c.bf16 %v1698_v3, %v1697_v48  ;;  %v1485_v9 = vadd.f32 %v3682_v25, %v1234_v0  ;;  %v1483_v11 = vadd.f32 %v3682_v25, %v1226_v1  ;;  %v1229_v13 = vadd.f32 %v1228_v2, %v733_v61 }
 0x107   : > { %v2196_v6 = vadd.f32 %v2195_v62, %v2125_v43  ;;  %v2345_v7 = vadd.f32 %v2344_v63, %v2274_v57  ;;  %v1696_v10 = vsel %vm1552_vm12, %v1480_v59, %v1624_v4  ;;  %v1486_v12 = vadd.f32 %v3682_v25, %v1237_v5 }
 0x108   : > { %v2276_v14 = vmul.f32 %v2126_v47, %v2126_v47  ;;  %v1695_v17 = vsel %vm1551_vm10, %v1479_v40, %v1623_v53  ;;  %3022 = vst [vmem:[%s3692_s22 + $0x28] sm:$0xff] %v1764_v8   ;;  %vm1557_vm13 = vcmp.ge.f32.partialorder %v1485_v9, 0.0  ;;  %v1629_v20 = vmul.f32 0.2, %v1485_v9 }
 0x109   : > { %v2197_v15 = vadd.f32 %v2196_v6, %v2126_v47  ;;  %v2346_v16 = vadd.f32 %v2345_v7, %v2275_v56  ;;  %v3159_v18 = vpop.f32.mrb[16].mxu1  ;;  %v1763_v19 = vpack.c.bf16 %v1696_v10, %v1695_v17  ;;  %v2129_v24 = vunpack.c.l.bf16 %v1764_v8 }
 0x10a   : > { %v3239_v21 = vpop.f32.mrb[16].mxu0  ;;  %v746_v22 = vpop.f32.mrb[17].mxu1  ;;  %v2130_v26 = vunpack.c.h.bf16 %v1764_v8  ;;  %vm1555_vm14 = vcmp.ge.f32.partialorder %v1483_v11, 0.0  ;;  %v1627_v31 = vmul.f32 0.2, %v1483_v11  ;;  %vm1558_vm15 = vcmp.ge.f32.partialorder %v1486_v12, 0.0 }
 0x10b   : > { %v2347_v23 = vadd.f32 %v2346_v16, %v2276_v14  ;;  %v1241_v27 = vpop.f32.mrb[17].mxu0  ;;  %v3160_v28 = vpop.f32.mrb[18].mxu1  ;;  %3021 = vst [vmem:[%s3692_s22 + $0x20] sm:$0xff] %v1763_v19   ;;  %v2127_v29 = vunpack.c.l.bf16 %v1763_v19  ;;  %v2128_v30 = vunpack.c.h.bf16 %v1763_v19  ;;  %v1701_v34 = vsel %vm1557_vm13, %v1485_v9, %v1629_v20 }
 0x10c   : > { %v3240_v32 = vpop.f32.mrb[18].mxu0  ;;  %v749_v33 = vpop.f32.mrb[19].mxu1  ;;  %v1630_v35 = vmul.f32 0.2, %v1486_v12  ;;  %v1484_v36 = vadd.f32 %v3682_v25, %v1229_v13  ;;  %v1250_v37 = vadd.f32 %v3239_v21, %v3159_v18  ;;  %v1242_v42 = vadd.f32 %v1241_v27, %v746_v22 }
 0x10d   : > { %v1244_v38 = vpop.f32.mrb[19].mxu0  ;;  %v2198_v39 = vadd.f32 %v2197_v15, %v2127_v29  ;;  %v2277_v40 = vmul.f32 %v2127_v29, %v2127_v29  ;;  %v2278_v41 = vmul.f32 %v2128_v30, %v2128_v30  ;;  %v1253_v52 = vadd.f32 %v3240_v32, %v3160_v28 }
 0x10e   : > { %v1702_v43 = vsel %vm1558_vm15, %v1486_v12, %v1630_v35  ;;  %vm1556_vm0 = vcmp.ge.f32.partialorder %v1484_v36, 0.0  ;;  %v1628_v44 = vmul.f32 0.2, %v1484_v36  ;;  %v1489_v45 = vadd.f32 %v3682_v25, %v1250_v37 }
 0x10f   : > { %v2199_v46 = vadd.f32 %v2198_v39, %v2128_v30  ;;  %v2348_v47 = vadd.f32 %v2347_v23, %v2277_v40  ;;  %v1766_v48 = vpack.c.bf16 %v1702_v43, %v1701_v34  ;;  %v1487_v49 = vadd.f32 %v3682_v25, %v1242_v42 }
 0x110   : > { %v1700_v50 = vsel %vm1556_vm0, %v1484_v36, %v1628_v44  ;;  %vm1561_vm1 = vcmp.ge.f32.partialorder %v1489_v45, 0.0  ;;  %v1633_v51 = vmul.f32 0.2, %v1489_v45  ;;  %v2279_v54 = vmul.f32 %v2129_v24, %v2129_v24 }
 0x111   : > { %v3163_v53 = vpop.f32.mrb[20].mxu1  ;;  %v2200_v55 = vadd.f32 %v2199_v46, %v2129_v24  ;;  %v2349_v56 = vadd.f32 %v2348_v47, %v2278_v41  ;;  %v1699_v57 = vsel %vm1555_vm14, %v1483_v11, %v1627_v31  ;;  %3024 = vst [vmem:[%s3692_s22 + $0x38] sm:$0xff] %v1766_v48   ;;  %v2280_v60 = vmul.f32 %v2130_v26, %v2130_v26 }
 0x112   : > { %v3243_v58 = vpop.f32.mrb[20].mxu0  ;;  %v762_v59 = vpop.f32.mrb[21].mxu1  ;;  %v2133_v61 = vunpack.c.l.bf16 %v1766_v48  ;;  %v2134_v62 = vunpack.c.h.bf16 %v1766_v48  ;;  %v1765_v63 = vpack.c.bf16 %v1700_v50, %v1699_v57  ;;  %v1705_v4 = vsel %vm1561_vm1, %v1489_v45, %v1633_v51 }
 0x113   : > { %v1257_v0 = vpop.f32.mrb[21].mxu0  ;;  %v3164_v1 = vpop.f32.mrb[22].mxu1  ;;  %v2350_v2 = vadd.f32 %v2349_v56, %v2279_v54  ;;  %v2201_v3 = vadd.f32 %v2200_v55, %v2130_v26  ;;  %vm1559_vm2 = vcmp.ge.f32.partialorder %v1487_v49, 0.0  ;;  %v1631_v9 = vmul.f32 0.2, %v1487_v49 }
 0x114   : > { %v3244_v5 = vpop.f32.mrb[22].mxu0  ;;  %v765_v6 = vpop.f32.mrb[23].mxu1  ;;  %3023 = vst [vmem:[%s3692_s22 + $0x30] sm:$0xff] %v1765_v63   ;;  %v2131_v7 = vunpack.c.l.bf16 %v1765_v63  ;;  %v2132_v8 = vunpack.c.h.bf16 %v1765_v63  ;;  %v1490_v10 = vadd.f32 %v3682_v25, %v1253_v52  ;;  %v1245_v13 = vadd.f32 %v1244_v38, %v749_v33 }
 0x115   : > { %v1260_v11 = vpop.f32.mrb[23].mxu0  ;;  %v2351_v12 = vadd.f32 %v2350_v2, %v2280_v60  ;;  %v1266_v14 = vadd.f32 %v3243_v58, %v3163_v53  ;;  %v1258_v15 = vadd.f32 %v1257_v0, %v762_v59  ;;  %v1269_v26 = vadd.f32 %v3244_v5, %v3164_v1 }
 0x116   : > { %v2202_v16 = vadd.f32 %v2201_v3, %v2131_v7  ;;  %v2281_v17 = vmul.f32 %v2131_v7, %v2131_v7  ;;  %v2282_v18 = vmul.f32 %v2132_v8, %v2132_v8  ;;  %vm1562_vm3 = vcmp.ge.f32.partialorder %v1490_v10, 0.0 }
 0x117   : > { %v1634_v19 = vmul.f32 0.2, %v1490_v10  ;;  %v1488_v20 = vadd.f32 %v3682_v25, %v1245_v13  ;;  %v1493_v21 = vadd.f32 %v3682_v25, %v1266_v14  ;;  %v3725_v22 = vadd.f32 %v3682_v25, %v1258_v15 }
 0x118   : > { %v2203_v23 = vadd.f32 %v2202_v16, %v2132_v8  ;;  %v2352_v24 = vadd.f32 %v2351_v12, %v2281_v17  ;;  %v1261_v27 = vadd.f32 %v1260_v11, %v765_v6  ;;  %v2283_v29 = vmul.f32 %v2133_v61, %v2133_v61 }
 0x119   : > { %v3167_v28 = vpop.f32.mrb[24].mxu1  ;;  %v1706_v30 = vsel %vm1562_vm3, %v1490_v10, %v1634_v19  ;;  %vm1560_vm4 = vcmp.ge.f32.partialorder %v1488_v20, 0.0  ;;  %v1632_v31 = vmul.f32 0.2, %v1488_v20  ;;  %v1637_v37 = vmul.f32 0.2, %v1493_v21 }
 0x11a   : > { %v3247_v32 = vpop.f32.mrb[24].mxu0  ;;  %v778_v33 = vpop.f32.mrb[25].mxu1  ;;  %v2204_v34 = vadd.f32 %v2203_v23, %v2133_v61  ;;  %v2353_v35 = vadd.f32 %v2352_v24, %v2282_v18  ;;  %v1768_v36 = vpack.c.bf16 %v1706_v30, %v1705_v4  ;;  %v1703_v40 = vsel %vm1559_vm2, %v1487_v49, %v1631_v9 }
 0x11b   : > { %v1273_v38 = vpop.f32.mrb[25].mxu0  ;;  %v3168_v39 = vpop.f32.mrb[26].mxu1  ;;  %v1704_v41 = vsel %vm1560_vm4, %v1488_v20, %v1632_v31  ;;  %vm1565_vm5 = vcmp.ge.f32.partialorder %v1493_v21, 0.0  ;;  %v1494_v42 = vadd.f32 %v3682_v25, %v1269_v26  ;;  %v2284_v45 = vmul.f32 %v2134_v62, %v2134_v62 }
 0x11c   : > { %v3248_v43 = vpop.f32.mrb[26].mxu0  ;;  %v3729_v44 = vpop.f32.mrb[27].mxu1  ;;  %v2354_v46 = vadd.f32 %v2353_v35, %v2283_v29  ;;  %3026 = vst [vmem:[%s3692_s22 + $0x48] sm:$0xff] %v1768_v36   ;;  %v1767_v47 = vpack.c.bf16 %v1704_v41, %v1703_v40  ;;  %vm1563_vm6 = vcmp.ge.f32.partialorder %v3725_v22, 0.0  ;;  %v2137_v50 = vunpack.c.l.bf16 %v1768_v36 }
 0x11d   : > { %v1276_v48 = vpop.f32.mrb[27].mxu0  ;;  %v2138_v51 = vunpack.c.h.bf16 %v1768_v36  ;;  %v2205_v52 = vadd.f32 %v2204_v34, %v2134_v62  ;;  %v1635_v49 = vmul.f32 0.2, %v3725_v22  ;;  %v1709_v55 = vsel %vm1565_vm5, %v1493_v21, %v1637_v37 }
 0x11e   : > { %3025 = vst [vmem:[%s3692_s22 + $0x40] sm:$0xff] %v1767_v47   ;;  %v2135_v53 = vunpack.c.l.bf16 %v1767_v47  ;;  %v2136_v54 = vunpack.c.h.bf16 %v1767_v47  ;;  %vm1566_vm7 = vcmp.ge.f32.partialorder %v1494_v42, 0.0  ;;  %v2355_v56 = vadd.f32 %v2354_v46, %v2284_v45 }
 0x11f   : > { %v1638_v57 = vmul.f32 0.2, %v1494_v42  ;;  %v1492_v58 = vadd.f32 %v3682_v25, %v1261_v27  ;;  %v1282_v59 = vadd.f32 %v3247_v32, %v3167_v28  ;;  %v1274_v0 = vadd.f32 %v1273_v38, %v778_v33 }
 0x120   : > { %v2206_v60 = vadd.f32 %v2205_v52, %v2135_v53  ;;  %v2285_v61 = vmul.f32 %v2135_v53, %v2135_v53  ;;  %v2286_v63 = vmul.f32 %v2136_v54, %v2136_v54  ;;  %v1285_v14 = vadd.f32 %v3248_v43, %v3168_v39 }
 0x121   : > { %v3171_v1 = vpop.f32.mrb[28].mxu1  ;;  %v1710_v2 = vsel %vm1566_vm7, %v1494_v42, %v1638_v57  ;;  %vm1564_vm8 = vcmp.ge.f32.partialorder %v1492_v58, 0.0  ;;  %v1636_v62 = vmul.f32 0.2, %v1492_v58  ;;  %v1497_v3 = vadd.f32 %v3682_v25, %v1282_v59 }
 0x122   : > { %v3251_v4 = vpop.f32.mrb[28].mxu0  ;;  %v794_v5 = vpop.f32.mrb[29].mxu1  ;;  %v2207_v6 = vadd.f32 %v2206_v60, %v2136_v54  ;;  %v2356_v7 = vadd.f32 %v2355_v56, %v2285_v61  ;;  %v1770_v8 = vpack.c.bf16 %v1710_v2, %v1709_v55  ;;  %v1495_v9 = vadd.f32 %v3682_v25, %v1274_v0 }
 0x123   : > { %v1289_v10 = vpop.f32.mrb[29].mxu0  ;;  %v3172_v11 = vpop.f32.mrb[30].mxu1  ;;  %v1708_v12 = vsel %vm1564_vm8, %v1492_v58, %v1636_v62  ;;  %vm1569_vm9 = vcmp.ge.f32.partialorder %v1497_v3, 0.0  ;;  %v1641_v13 = vmul.f32 0.2, %v1497_v3  ;;  %v2287_v17 = vmul.f32 %v2137_v50, %v2137_v50 }
 0x124   : > { %v3252_v15 = vpop.f32.mrb[30].mxu0  ;;  %v797_v16 = vpop.f32.mrb[31].mxu1  ;;  %v2208_v18 = vadd.f32 %v2207_v6, %v2137_v50  ;;  %v2357_v19 = vadd.f32 %v2356_v7, %v2286_v63  ;;  %v1707_v20 = vsel %vm1563_vm6, %v3725_v22, %v1635_v49  ;;  %3028 = vst [vmem:[%s3692_s22 + $0x58] sm:$0xff] %v1770_v8   ;;  %v2288_v23 = vmul.f32 %v2138_v51, %v2138_v51 }
 0x125   : > { %v1292_v21 = vpop.f32.mrb[31].mxu0  ;;  %v2141_v24 = vunpack.c.l.bf16 %v1770_v8  ;;  %v2142_v26 = vunpack.c.h.bf16 %v1770_v8  ;;  %v1769_v27 = vpack.c.bf16 %v1708_v12, %v1707_v20  ;;  %v1713_v30 = vsel %vm1569_vm9, %v1497_v3, %v1641_v13 }
 0x126   : > { %v2358_v28 = vadd.f32 %v2357_v19, %v2287_v17  ;;  %v2209_v29 = vadd.f32 %v2208_v18, %v2138_v51  ;;  %vm1567_vm10 = vcmp.ge.f32.partialorder %v1495_v9, 0.0  ;;  %v1639_v33 = vmul.f32 0.2, %v1495_v9 }
 0x127   : > { %3027 = vst [vmem:[%s3692_s22 + $0x50] sm:$0xff] %v1769_v27   ;;  %v2139_v31 = vunpack.c.l.bf16 %v1769_v27  ;;  %v2140_v32 = vunpack.c.h.bf16 %v1769_v27  ;;  %v1498_v34 = vadd.f32 %v3682_v25, %v1285_v14  ;;  %v1277_v22 = vadd.f32 %v1276_v48, %v3729_v44 }
 0x128   : > { %v2359_v35 = vadd.f32 %v2358_v28, %v2288_v23  ;;  %v1298_v36 = vadd.f32 %v3251_v4, %v3171_v1  ;;  %v1290_v37 = vadd.f32 %v1289_v10, %v794_v5  ;;  %v1301_v49 = vadd.f32 %v3252_v15, %v3172_v11 }
 0x129   : > { %v3175_v38 = vpop.f32.mrb[32].mxu1  ;;  %v2210_v39 = vadd.f32 %v2209_v29, %v2139_v31  ;;  %v2289_v40 = vmul.f32 %v2139_v31, %v2139_v31  ;;  %v2290_v41 = vmul.f32 %v2140_v32, %v2140_v32  ;;  %vm1570_vm11 = vcmp.ge.f32.partialorder %v1498_v34, 0.0 }
 0x12a   : > { %v3255_v42 = vpop.f32.mrb[32].mxu0  ;;  %v810_v43 = vpop.f32.mrb[33].mxu1  ;;  %v1642_v45 = vmul.f32 0.2, %v1498_v34  ;;  %v1496_v46 = vadd.f32 %v3682_v25, %v1277_v22  ;;  %v1501_v47 = vadd.f32 %v3682_v25, %v1298_v36  ;;  %v3750_v50 = vadd.f32 %v3682_v25, %v1290_v37 }
 0x12b   : > { %v1305_v51 = vpop.f32.mrb[33].mxu0  ;;  %v3176_v52 = vpop.f32.mrb[34].mxu1  ;;  %v2211_v44 = vadd.f32 %v2210_v39, %v2140_v32  ;;  %v2360_v48 = vadd.f32 %v2359_v35, %v2289_v40  ;;  %v1293_v53 = vadd.f32 %v1292_v21, %v797_v16  ;;  %v2291_v56 = vmul.f32 %v2141_v24, %v2141_v24 }
 0x12c   : > { %v3256_v54 = vpop.f32.mrb[34].mxu0  ;;  %v3752_v55 = vpop.f32.mrb[35].mxu1  ;;  %v1714_v57 = vsel %vm1570_vm11, %v1498_v34, %v1642_v45  ;;  %vm1568_vm12 = vcmp.ge.f32.partialorder %v1496_v46, 0.0  ;;  %v1640_v58 = vmul.f32 0.2, %v1496_v46  ;;  %v1711_v1 = vsel %vm1567_vm10, %v1495_v9, %v1639_v33 }
 0x12d   : > { %v3755_v59 = vpop.f32.mrb[35].mxu0  ;;  %v2212_v60 = vadd.f32 %v2211_v44, %v2141_v24  ;;  %v2361_v61 = vadd.f32 %v2360_v48, %v2290_v41  ;;  %v1772_v63 = vpack.c.bf16 %v1714_v57, %v1713_v30  ;;  %v1645_v0 = vmul.f32 0.2, %v1501_v47 }
 0x12e   : > { %v1712_v2 = vsel %vm1568_vm12, %v1496_v46, %v1640_v58  ;;  %vm1573_vm13 = vcmp.ge.f32.partialorder %v1501_v47, 0.0  ;;  %v1502_v62 = vadd.f32 %v3682_v25, %v1301_v49  ;;  %v2292_v3 = vmul.f32 %v2142_v26, %v2142_v26 }
 0x12f   : > { %v2362_v4 = vadd.f32 %v2361_v61, %v2291_v56  ;;  %3030 = vst [vmem:[%s3692_s22 + $0x68] sm:$0xff] %v1772_v63   ;;  %v1771_v5 = vpack.c.bf16 %v1712_v2, %v1711_v1  ;;  %vm1571_vm14 = vcmp.ge.f32.partialorder %v3750_v50, 0.0  ;;  %v2145_v6 = vunpack.c.l.bf16 %v1772_v63 }
 0x130   : > { %v2146_v7 = vunpack.c.h.bf16 %v1772_v63  ;;  %v2213_v8 = vadd.f32 %v2212_v60, %v2142_v26  ;;  %v1643_v10 = vmul.f32 0.2, %v3750_v50  ;;  %v1717_v9 = vsel %vm1573_vm13, %v1501_v47, %v1645_v0 }
 0x131   : > { %v3179_v11 = vpop.f32.mrb[36].mxu1  ;;  %3029 = vst [vmem:[%s3692_s22 + $0x60] sm:$0xff] %v1771_v5   ;;  %v2143_v12 = vunpack.c.l.bf16 %v1771_v5  ;;  %v2144_v13 = vunpack.c.h.bf16 %v1771_v5  ;;  %vm1574_vm15 = vcmp.ge.f32.partialorder %v1502_v62, 0.0  ;;  %v2363_v16 = vadd.f32 %v2362_v4, %v2292_v3 }
 0x132   : > { %v3259_v14 = vpop.f32.mrb[36].mxu0  ;;  %v826_v15 = vpop.f32.mrb[37].mxu1  ;;  %v1646_v17 = vmul.f32 0.2, %v1502_v62  ;;  %v1500_v18 = vadd.f32 %v3682_v25, %v1293_v53  ;;  %v1314_v19 = vadd.f32 %v3255_v42, %v3175_v38  ;;  %v1306_v27 = vadd.f32 %v1305_v51, %v810_v43 }
 0x133   : > { %v1321_v20 = vpop.f32.mrb[37].mxu0  ;;  %v3180_v21 = vpop.f32.mrb[38].mxu1  ;;  %v2214_v23 = vadd.f32 %v2213_v8, %v2143_v12  ;;  %v2293_v24 = vmul.f32 %v2143_v12, %v2143_v12  ;;  %v2294_v26 = vmul.f32 %v2144_v13, %v2144_v13  ;;  %v1317_v39 = vadd.f32 %v3256_v54, %v3176_v52 }
 0x134   : > { %v3260_v28 = vpop.f32.mrb[38].mxu0  ;;  %v829_v29 = vpop.f32.mrb[39].mxu1  ;;  %v1718_v30 = vsel %vm1574_vm15, %v1502_v62, %v1646_v17  ;;  %vm1572_vm0 = vcmp.ge.f32.partialorder %v1500_v18, 0.0  ;;  %v1644_v31 = vmul.f32 0.2, %v1500_v18  ;;  %v1505_v32 = vadd.f32 %v3682_v25, %v1314_v19 }
 0x135   : > { %v1324_v33 = vpop.f32.mrb[39].mxu0  ;;  %v2215_v34 = vadd.f32 %v2214_v23, %v2144_v13  ;;  %v2364_v35 = vadd.f32 %v2363_v16, %v2293_v24  ;;  %v1774_v22 = vpack.c.bf16 %v1718_v30, %v1717_v9  ;;  %v1503_v36 = vadd.f32 %v3682_v25, %v1306_v27 }
 0x136   : > { %v1716_v37 = vsel %vm1572_vm0, %v1500_v18, %v1644_v31  ;;  %vm1577_vm1 = vcmp.ge.f32.partialorder %v1505_v32, 0.0  ;;  %v1649_v38 = vmul.f32 0.2, %v1505_v32  ;;  %v2295_v40 = vmul.f32 %v2145_v6, %v2145_v6 }
 0x137   : > { %v2216_v41 = vadd.f32 %v2215_v34, %v2145_v6  ;;  %v2365_v42 = vadd.f32 %v2364_v35, %v2294_v26  ;;  %v1715_v43 = vsel %vm1571_vm14, %v3750_v50, %v1643_v10  ;;  %3032 = vst [vmem:[%s3692_s22 + $0x78] sm:$0xff] %v1774_v22   ;;  %v2296_v45 = vmul.f32 %v2146_v7, %v2146_v7 }
 0x138   : > { %v2149_v46 = vunpack.c.l.bf16 %v1774_v22  ;;  %v2150_v47 = vunpack.c.h.bf16 %v1774_v22  ;;  %v1773_v51 = vpack.c.bf16 %v1716_v37, %v1715_v43  ;;  %v1721_v53 = vsel %vm1577_vm1, %v1505_v32, %v1649_v38 }
 0x139   : > { %v3770_v44 = vpop.f32.mrb[40].mxu1  ;;  %v2366_v48 = vadd.f32 %v2365_v42, %v2295_v40  ;;  %v2217_v49 = vadd.f32 %v2216_v41, %v2146_v7  ;;  %vm1575_vm2 = vcmp.ge.f32.partialorder %v1503_v36, 0.0  ;;  %v1647_v58 = vmul.f32 0.2, %v1503_v36 }
 0x13a   : > { %v3772_v52 = vpop.f32.mrb[40].mxu0  ;;  %v3774_v54 = vpop.f32.mrb[41].mxu1  ;;  %3031 = vst [vmem:[%s3692_s22 + $0x70] sm:$0xff] %v1773_v51   ;;  %v2147_v56 = vunpack.c.l.bf16 %v1773_v51  ;;  %v2148_v57 = vunpack.c.h.bf16 %v1773_v51  ;;  %v1506_v50 = vadd.f32 %v3682_v25, %v1317_v39  ;;  %v1309_v0 = vadd.f32 %v3755_v59, %v3752_v55 }
 0x13b   : > { %v1337_v60 = vpop.f32.mrb[41].mxu0  ;;  %v3778_v61 = vpop.f32.mrb[42].mxu1  ;;  %v2367_v63 = vadd.f32 %v2366_v48, %v2296_v45  ;;  %v1330_v1 = vadd.f32 %v3259_v14, %v3179_v11  ;;  %v1322_v2 = vadd.f32 %v1321_v20, %v826_v15  ;;  %v1333_v11 = vadd.f32 %v3260_v28, %v3180_v21 }
 0x13c   : > { %v3782_v62 = vpop.f32.mrb[42].mxu0  ;;  %v3784_v3 = vpop.f32.mrb[43].mxu1  ;;  %v2218_v4 = vadd.f32 %v2217_v49, %v2147_v56  ;;  %v2297_v5 = vmul.f32 %v2147_v56, %v2147_v56  ;;  %v2298_v6 = vmul.f32 %v2148_v57, %v2148_v57  ;;  %vm1578_vm3 = vcmp.ge.f32.partialorder %v1506_v50, 0.0 }
 0x13d   : > { %v3786_v7 = vpop.f32.mrb[43].mxu0  ;;  %v1650_v8 = vmul.f32 0.2, %v1506_v50  ;;  %v1504_v10 = vadd.f32 %v3682_v25, %v1309_v0  ;;  %v1509_v12 = vadd.f32 %v3682_v25, %v1330_v1  ;;  %v3791_v13 = vadd.f32 %v3682_v25, %v1322_v2 }
 0x13e   : > { %v2219_v55 = vadd.f32 %v2218_v4, %v2148_v57  ;;  %v2368_v59 = vadd.f32 %v2367_v63, %v2297_v5  ;;  %v1325_v9 = vadd.f32 %v1324_v33, %v829_v29  ;;  %v2299_v14 = vmul.f32 %v2149_v46, %v2149_v46 }
 0x13f   : > { %v1722_v15 = vsel %vm1578_vm3, %v1506_v50, %v1650_v8  ;;  %vm1576_vm4 = vcmp.ge.f32.partialorder %v1504_v10, 0.0  ;;  %v1648_v16 = vmul.f32 0.2, %v1504_v10  ;;  %v1653_v20 = vmul.f32 0.2, %v1509_v12 }
 0x140   : > { %v2220_v17 = vadd.f32 %v2219_v55, %v2149_v46  ;;  %v2369_v18 = vadd.f32 %v2368_v59, %v2298_v6  ;;  %v1776_v19 = vpack.c.bf16 %v1722_v15, %v1721_v53  ;;  %v1719_v24 = vsel %vm1575_vm2, %v1503_v36, %v1647_v58 }
 0x141   : > { %v3793_v23 = vpop.f32.mrb[44].mxu1  ;;  %v1720_v26 = vsel %vm1576_vm4, %v1504_v10, %v1648_v16  ;;  %vm1581_vm5 = vcmp.ge.f32.partialorder %v1509_v12, 0.0  ;;  %v1510_v27 = vadd.f32 %v3682_v25, %v1333_v11  ;;  %v2300_v29 = vmul.f32 %v2150_v47, %v2150_v47 }
 0x142   : > { %v3797_v21 = vpop.f32.mrb[44].mxu0  ;;  %v3799_v28 = vpop.f32.mrb[45].mxu1  ;;  %v2370_v30 = vadd.f32 %v2369_v18, %v2299_v14  ;;  %3034 = vst [vmem:[%s3692_s22 + $0x88] sm:$0xff] %v1776_v19   ;;  %v1775_v31 = vpack.c.bf16 %v1720_v26, %v1719_v24  ;;  %vm1579_vm6 = vcmp.ge.f32.partialorder %v3791_v13, 0.0  ;;  %v2153_v34 = vunpack.c.l.bf16 %v1776_v19 }
 0x143   : > { %v3803_v32 = vpop.f32.mrb[45].mxu0  ;;  %v3805_v33 = vpop.f32.mrb[46].mxu1  ;;  %v2154_v35 = vunpack.c.h.bf16 %v1776_v19  ;;  %v2221_v22 = vadd.f32 %v2220_v17, %v2150_v47  ;;  %v1651_v36 = vmul.f32 0.2, %v3791_v13  ;;  %v1725_v41 = vsel %vm1581_vm5, %v1509_v12, %v1653_v20 }
 0x144   : > { %v3808_v37 = vpop.f32.mrb[46].mxu0  ;;  %v3810_v38 = vpop.f32.mrb[47].mxu1  ;;  %3033 = vst [vmem:[%s3692_s22 + $0x80] sm:$0xff] %v1775_v31   ;;  %v2151_v39 = vunpack.c.l.bf16 %v1775_v31  ;;  %v2152_v40 = vunpack.c.h.bf16 %v1775_v31  ;;  %vm1582_vm7 = vcmp.ge.f32.partialorder %v1510_v27, 0.0  ;;  %v2371_v43 = vadd.f32 %v2370_v30, %v2300_v29 }
 0x145   : > { %v3814_v42 = vpop.f32.mrb[47].mxu0  ;;  %v1654_v45 = vmul.f32 0.2, %v1510_v27  ;;  %v1508_v46 = vadd.f32 %v3682_v25, %v1325_v9  ;;  %v1346_v47 = vadd.f32 %v3772_v52, %v3770_v44  ;;  %v1338_v53 = vadd.f32 %v1337_v60, %v3774_v54 }
 0x146   : > { %v2222_v51 = vadd.f32 %v2221_v22, %v2151_v39  ;;  %v2301_v48 = vmul.f32 %v2151_v39, %v2151_v39  ;;  %v2302_v49 = vmul.f32 %v2152_v40, %v2152_v40  ;;  %v1349_v54 = vadd.f32 %v3782_v62, %v3778_v61 }
 0x147   : > { %v1726_v56 = vsel %vm1582_vm7, %v1510_v27, %v1654_v45  ;;  %vm1580_vm8 = vcmp.ge.f32.partialorder %v1508_v46, 0.0  ;;  %v1652_v57 = vmul.f32 0.2, %v1508_v46  ;;  %v1513_v58 = vadd.f32 %v3682_v25, %v1346_v47 }
 0x148   : > { %v2223_v50 = vadd.f32 %v2222_v51, %v2152_v40  ;;  %v2372_v63 = vadd.f32 %v2371_v43, %v2301_v48  ;;  %v1778_v0 = vpack.c.bf16 %v1726_v56, %v1725_v41  ;;  %v3822_v1 = vadd.f32 %v3682_v25, %v1338_v53  ;;  %v3862_v40 = vld [vmem:[%s4076_s2] ss:$0 sm:$0xff] }
 0x149   : > { %v3824_v2 = vpop.f32.mrb[48].mxu1  ;;  %v1724_v44 = vsel %vm1580_vm8, %v1508_v46, %v1652_v57  ;;  %vm1585_vm9 = vcmp.ge.f32.partialorder %v1513_v58, 0.0  ;;  %v1657_v52 = vmul.f32 0.2, %v1513_v58  ;;  %v2303_v5 = vmul.f32 %v2153_v34, %v2153_v34 }
 0x14a   : > { %v3828_v60 = vpop.f32.mrb[48].mxu0  ;;  %v3830_v4 = vpop.f32.mrb[49].mxu1  ;;  %v2224_v6 = vadd.f32 %v2223_v50, %v2153_v34  ;;  %v2373_v8 = vadd.f32 %v2372_v63, %v2302_v49  ;;  %v1723_v10 = vsel %vm1579_vm6, %v3791_v13, %v1651_v36  ;;  %3036 = vst [vmem:[%s3692_s22 + $0x98] sm:$0xff] %v1778_v0   ;;  %v2304_v59 = vmul.f32 %v2154_v35, %v2154_v35 }
 0x14b   : > { %v3836_v12 = vpop.f32.mrb[49].mxu0  ;;  %v3838_v55 = vpop.f32.mrb[50].mxu1  ;;  %v2157_v11 = vunpack.c.l.bf16 %v1778_v0  ;;  %v2158_v61 = vunpack.c.h.bf16 %v1778_v0  ;;  %v1777_v62 = vpack.c.bf16 %v1724_v44, %v1723_v10  ;;  %v1729_v17 = vsel %vm1585_vm9, %v1513_v58, %v1657_v52 }
 0x14c   : > { %v3840_v9 = vpop.f32.mrb[50].mxu0  ;;  %v3842_v14 = vpop.f32.mrb[51].mxu1  ;;  %v2374_v15 = vadd.f32 %v2373_v8, %v2303_v5  ;;  %v2225_v16 = vadd.f32 %v2224_v6, %v2154_v35  ;;  %vm1583_vm10 = vcmp.ge.f32.partialorder %v3822_v1, 0.0  ;;  %v1655_v20 = vmul.f32 0.2, %v3822_v1 }
 0x14d   : > { %v3846_v13 = vpop.f32.mrb[51].mxu0  ;;  %3035 = vst [vmem:[%s3692_s22 + $0x90] sm:$0xff] %v1777_v62   ;;  %v2155_v18 = vunpack.c.l.bf16 %v1777_v62  ;;  %v2156_v19 = vunpack.c.h.bf16 %v1777_v62  ;;  %v1514_v24 = vadd.f32 %v3682_v25, %v1349_v54  ;;  %v1341_v27 = vadd.f32 %v3786_v7, %v3784_v3 }
 0x14e   : > { %v2375_v26 = vadd.f32 %v2374_v15, %v2304_v59  ;;  %v1362_v29 = vadd.f32 %v3797_v21, %v3793_v23  ;;  %v1354_v30 = vadd.f32 %v3803_v32, %v3799_v28  ;;  %v1365_v28 = vadd.f32 %v3808_v37, %v3805_v33 }
 0x14f   : > { %v2226_v31 = vadd.f32 %v2225_v16, %v2155_v18  ;;  %v2305_v34 = vmul.f32 %v2155_v18, %v2155_v18  ;;  %v2306_v35 = vmul.f32 %v2156_v19, %v2156_v19  ;;  %vm1586_vm11 = vcmp.ge.f32.partialorder %v1514_v24, 0.0 }
 0x150   : > { %v1658_v22 = vmul.f32 0.2, %v1514_v24  ;;  %v1512_v36 = vadd.f32 %v3682_v25, %v1341_v27  ;;  %v1517_v39 = vadd.f32 %v3682_v25, %v1362_v29  ;;  %v3865_v3 = vadd.f32 %v3862_v40, %v1354_v30 }
 0x151   : > { %v3867_v7 = vpop.f32.mrb[52].mxu1  ;;  %v2227_v23 = vadd.f32 %v2226_v31, %v2156_v19  ;;  %v2376_v21 = vadd.f32 %v2375_v26, %v2305_v34  ;;  %v1357_v32 = vadd.f32 %v3814_v42, %v3810_v38  ;;  %v2307_v43 = vmul.f32 %v2157_v11, %v2157_v11 }
 0x152   : > { %v3873_v41 = vpop.f32.mrb[52].mxu0  ;;  %v3875_v25 = vpop.f32.mrb[53].mxu1  ;;  %v1730_v45 = vsel %vm1586_vm11, %v1514_v24, %v1658_v22  ;;  %vm1584_vm12 = vcmp.ge.f32.partialorder %v1512_v36, 0.0  ;;  %v1656_v46 = vmul.f32 0.2, %v1512_v36  ;;  %v1727_v42 = vsel %vm1583_vm10, %v3822_v1, %v1655_v20 }
 0x153   : > { %v3877_v47 = vpop.f32.mrb[53].mxu0  ;;  %v3879_v51 = vpop.f32.mrb[54].mxu1  ;;  %v2228_v48 = vadd.f32 %v2227_v23, %v2157_v11  ;;  %v2377_v49 = vadd.f32 %v2376_v21, %v2306_v35  ;;  %v1780_v53 = vpack.c.bf16 %v1730_v45, %v1729_v17  ;;  %v1661_v33 = vmul.f32 0.2, %v1517_v39 }
 0x154   : > { %v3881_v37 = vpop.f32.mrb[54].mxu0  ;;  %v3883_v38 = vpop.f32.mrb[55].mxu1  ;;  %v1728_v56 = vsel %vm1584_vm12, %v1512_v36, %v1656_v46  ;;  %vm1589_vm13 = vcmp.ge.f32.partialorder %v1517_v39, 0.0  ;;  %v1518_v57 = vadd.f32 %v3862_v40, %v1365_v28  ;;  %v2308_v50 = vmul.f32 %v2158_v61, %v2158_v61 }
 0x155   : > { %v3889_v58 = vpop.f32.mrb[55].mxu0  ;;  %v2378_v63 = vadd.f32 %v2377_v49, %v2307_v43  ;;  %3038 = vst [vmem:[%s3692_s22 + $0xa8] sm:$0xff] %v1780_v53   ;;  %v1779_v0 = vpack.c.bf16 %v1728_v56, %v1727_v42  ;;  %vm1587_vm14 = vcmp.ge.f32.partialorder %v3865_v3, 0.0  ;;  %v2161_v44 = vunpack.c.l.bf16 %v1780_v53 }
 0x156   : > { %v2162_v52 = vunpack.c.h.bf16 %v1780_v53  ;;  %v2229_v54 = vadd.f32 %v2228_v48, %v2158_v61  ;;  %v1659_v5 = vmul.f32 0.2, %v3865_v3  ;;  %v1733_v8 = vsel %vm1589_vm13, %v1517_v39, %v1661_v33 }
 0x157   : > { %3037 = vst [vmem:[%s3692_s22 + $0xa0] sm:$0xff] %v1779_v0   ;;  %v2159_v6 = vunpack.c.l.bf16 %v1779_v0  ;;  %v2160_v1 = vunpack.c.h.bf16 %v1779_v0  ;;  %vm1590_vm15 = vcmp.ge.f32.partialorder %v1518_v57, 0.0  ;;  %v2379_v10 = vadd.f32 %v2378_v63, %v2308_v50 }
 0x158   : > { %v1662_v59 = vmul.f32 0.2, %v1518_v57  ;;  %v1516_v11 = vadd.f32 %v3862_v40, %v1357_v32  ;;  %v1378_v62 = vadd.f32 %v3828_v60, %v3824_v2  ;;  %v1370_v61 = vadd.f32 %v3836_v12, %v3830_v4 }
 0x159   : > { %v3898_v15 = vpop.f32.mrb[56].mxu1  ;;  %v2230_v16 = vadd.f32 %v2229_v54, %v2159_v6  ;;  %v2309_v17 = vmul.f32 %v2159_v6, %v2159_v6  ;;  %v2310_v18 = vmul.f32 %v2160_v1, %v2160_v1  ;;  %v1381_v36 = vadd.f32 %v3840_v9, %v3838_v55 }
 0x15a   : > { %v3902_v19 = vpop.f32.mrb[56].mxu0  ;;  %v3904_v20 = vpop.f32.mrb[57].mxu1  ;;  %v1734_v24 = vsel %vm1590_vm15, %v1518_v57, %v1662_v59  ;;  %vm1588_vm0 = vcmp.ge.f32.partialorder %v1516_v11, 0.0  ;;  %v1660_v26 = vmul.f32 0.2, %v1516_v11  ;;  %v1521_v27 = vadd.f32 %v3862_v40, %v1378_v62 }
 0x15b   : > { %v3907_v29 = vpop.f32.mrb[57].mxu0  ;;  %v3909_v2 = vpop.f32.mrb[58].mxu1  ;;  %v2231_v60 = vadd.f32 %v2230_v16, %v2160_v1  ;;  %v2380_v30 = vadd.f32 %v2379_v10, %v2309_v17  ;;  %v1782_v31 = vpack.c.bf16 %v1734_v24, %v1733_v8  ;;  %v1519_v34 = vadd.f32 %v3862_v40, %v1370_v61 }
 0x15c   : > { %v3912_v4 = vpop.f32.mrb[58].mxu0  ;;  %v3914_v12 = vpop.f32.mrb[59].mxu1  ;;  %v1732_v35 = vsel %vm1588_vm0, %v1516_v11, %v1660_v26  ;;  %vm1593_vm1 = vcmp.ge.f32.partialorder %v1521_v27, 0.0  ;;  %v1665_v22 = vmul.f32 0.2, %v1521_v27  ;;  %v2311_v23 = vmul.f32 %v2161_v44, %v2161_v44 }
 0x15d   : > { %v3918_v39 = vpop.f32.mrb[59].mxu0  ;;  %v2232_v21 = vadd.f32 %v2231_v60, %v2161_v44  ;;  %v2381_v28 = vadd.f32 %v2380_v30, %v2310_v18  ;;  %v1731_v32 = vsel %vm1587_vm14, %v3865_v3, %v1659_v5  ;;  %3040 = vst [vmem:[%s3692_s22 + $0xb8] sm:$0xff] %v1782_v31   ;;  %v2312_v43 = vmul.f32 %v2162_v52, %v2162_v52 }
 0x15e   : > { %v2165_v45 = vunpack.c.l.bf16 %v1782_v31  ;;  %v2166_v46 = vunpack.c.h.bf16 %v1782_v31  ;;  %v1781_v48 = vpack.c.bf16 %v1732_v35, %v1731_v32  ;;  %v1737_v33 = vsel %vm1593_vm1, %v1521_v27, %v1665_v22 }
 0x15f   : > { %v2382_v49 = vadd.f32 %v2381_v28, %v2311_v23  ;;  %v2233_v53 = vadd.f32 %v2232_v21, %v2162_v52  ;;  %vm1591_vm2 = vcmp.ge.f32.partialorder %v1519_v34, 0.0  ;;  %v1663_v42 = vmul.f32 0.2, %v1519_v34 }
 0x160   : > { %3039 = vst [vmem:[%s3692_s22 + $0xb0] sm:$0xff] %v1781_v48   ;;  %v2163_v55 = vunpack.c.l.bf16 %v1781_v48  ;;  %v2164_v9 = vunpack.c.h.bf16 %v1781_v48  ;;  %v1522_v56 = vadd.f32 %v3862_v40, %v1381_v36  ;;  %v1373_v3 = vadd.f32 %v3846_v13, %v3842_v14 }
 0x161   : > { %v3926_v57 = vpop.f32.mrb[60].mxu1  ;;  %v2383_v50 = vadd.f32 %v2382_v49, %v2312_v43  ;;  %v1394_v63 = vadd.f32 %v3873_v41, %v3867_v7  ;;  %v1386_v0 = vadd.f32 %v3877_v47, %v3875_v25  ;;  %v1397_v11 = vadd.f32 %v3881_v37, %v3879_v51 }
 0x162   : > { %v3934_v44 = vpop.f32.mrb[60].mxu0  ;;  %v3936_v52 = vpop.f32.mrb[61].mxu1  ;;  %v2234_v54 = vadd.f32 %v2233_v53, %v2163_v55  ;;  %v2313_v5 = vmul.f32 %v2163_v55, %v2163_v55  ;;  %v2314_v6 = vmul.f32 %v2164_v9, %v2164_v9  ;;  %vm1594_vm3 = vcmp.ge.f32.partialorder %v1522_v56, 0.0 }
 0x163   : > { %v3938_v1 = vpop.f32.mrb[61].mxu0  ;;  %v3940_v8 = vpop.f32.mrb[62].mxu1  ;;  %v1666_v10 = vmul.f32 0.2, %v1522_v56  ;;  %v1520_v14 = vadd.f32 %v3862_v40, %v1373_v3  ;;  %v1525_v13 = vadd.f32 %v3862_v40, %v1394_v63  ;;  %v3945_v7 = vadd.f32 %v3862_v40, %v1386_v0 }
 0x164   : > { %v3947_v41 = vpop.f32.mrb[62].mxu0  ;;  %v3949_v25 = vpop.f32.mrb[63].mxu1  ;;  %v2235_v47 = vadd.f32 %v2234_v54, %v2164_v9  ;;  %v2384_v59 = vadd.f32 %v2383_v50, %v2313_v5  ;;  %v1389_v62 = vadd.f32 %v3889_v58, %v3883_v38  ;;  %v2315_v17 = vmul.f32 %v2165_v45, %v2165_v45 }
 0x165   : > { %v3955_v16 = vpop.f32.mrb[63].mxu0  ;;  %v1738_v18 = vsel %vm1594_vm3, %v1522_v56, %v1666_v10  ;;  %vm1592_vm4 = vcmp.ge.f32.partialorder %v1520_v14, 0.0  ;;  %v1664_v61 = vmul.f32 0.2, %v1520_v14  ;;  %v1669_v60 = vmul.f32 0.2, %v1525_v13 }
 0x166   : > { %v2236_v24 = vadd.f32 %v2235_v47, %v2165_v45  ;;  %v2385_v26 = vadd.f32 %v2384_v59, %v2314_v6  ;;  %v1784_v27 = vpack.c.bf16 %v1738_v18, %v1737_v33  ;;  %v1735_v30 = vsel %vm1591_vm2, %v1519_v34, %v1663_v42 }
 0x167   : > { %v1736_v31 = vsel %vm1592_vm4, %v1520_v14, %v1664_v61  ;;  %vm1597_vm5 = vcmp.ge.f32.partialorder %v1525_v13, 0.0  ;;  %v1526_v51 = vadd.f32 %v3862_v40, %v1397_v11  ;;  %v2316_v37 = vmul.f32 %v2166_v46, %v2166_v46 }
 0x168   : > { %v2386_v38 = vadd.f32 %v2385_v26, %v2315_v17  ;;  %3042 = vst [vmem:[%s3692_s22 + $0xc8] sm:$0xff] %v1784_v27   ;;  %v1783_v58 = vpack.c.bf16 %v1736_v31, %v1735_v30  ;;  %vm1595_vm6 = vcmp.ge.f32.partialorder %v3945_v7, 0.0  ;;  %v2169_v22 = vunpack.c.l.bf16 %v1784_v27 }
 0x169   : > { %v3961_v35 = vpop.f32.mrb[64].mxu1  ;;  %v2170_v36 = vunpack.c.h.bf16 %v1784_v27  ;;  %v2237_v23 = vadd.f32 %v2236_v24, %v2166_v46  ;;  %v1667_v21 = vmul.f32 0.2, %v3945_v7  ;;  %v1741_v45 = vsel %vm1597_vm5, %v1525_v13, %v1669_v60 }
 0x16a   : > { %v3964_v28 = vpop.f32.mrb[64].mxu0  ;;  %v3966_v34 = vpop.f32.mrb[65].mxu1  ;;  %3041 = vst [vmem:[%s3692_s22 + $0xc0] sm:$0xff] %v1783_v58   ;;  %v2167_v32 = vunpack.c.l.bf16 %v1783_v58  ;;  %v2168_v43 = vunpack.c.h.bf16 %v1783_v58  ;;  %vm1598_vm7 = vcmp.ge.f32.partialorder %v1526_v51, 0.0  ;;  %v2387_v53 = vadd.f32 %v2386_v38, %v2316_v37 }
 0x16b   : > { %v3970_v48 = vpop.f32.mrb[65].mxu0  ;;  %v3972_v49 = vpop.f32.mrb[66].mxu1  ;;  %v1670_v33 = vmul.f32 0.2, %v1526_v51  ;;  %v1524_v46 = vadd.f32 %v3862_v40, %v1389_v62  ;;  %v1410_v55 = vadd.f32 %v3902_v19, %v3898_v15  ;;  %v1402_v63 = vadd.f32 %v3907_v29, %v3904_v20 }
 0x16c   : > { %v3977_v9 = vpop.f32.mrb[66].mxu0  ;;  %v3979_v42 = vpop.f32.mrb[67].mxu1  ;;  %v2238_v56 = vadd.f32 %v2237_v23, %v2167_v32  ;;  %v2317_v50 = vmul.f32 %v2167_v32, %v2167_v32  ;;  %v2318_v3 = vmul.f32 %v2168_v43, %v2168_v43  ;;  %v1413_v59 = vadd.f32 %v3912_v4, %v3909_v2 }
 0x16d   : > { %v3983_v0 = vpop.f32.mrb[67].mxu0  ;;  %v1742_v54 = vsel %vm1598_vm7, %v1526_v51, %v1670_v33  ;;  %vm1596_vm8 = vcmp.ge.f32.partialorder %v1524_v46, 0.0  ;;  %v1668_v5 = vmul.f32 0.2, %v1524_v46  ;;  %v1529_v6 = vadd.f32 %v3862_v40, %v1410_v55 }
 0x16e   : > { %v2239_v10 = vadd.f32 %v2238_v56, %v2168_v43  ;;  %v2388_v15 = vadd.f32 %v2387_v53, %v2317_v50  ;;  %v1786_v19 = vpack.c.bf16 %v1742_v54, %v1741_v45  ;;  %v1527_v14 = vadd.f32 %v3862_v40, %v1402_v63 }
 0x16f   : > { %v1740_v13 = vsel %vm1596_vm8, %v1524_v46, %v1668_v5  ;;  %vm1601_vm9 = vcmp.ge.f32.partialorder %v1529_v6, 0.0  ;;  %v1673_v47 = vmul.f32 0.2, %v1529_v6  ;;  %v2319_v20 = vmul.f32 %v2169_v22, %v2169_v22 }
 0x170   : > { %v2240_v29 = vadd.f32 %v2239_v10, %v2169_v22  ;;  %v2389_v11 = vadd.f32 %v2388_v15, %v2318_v3  ;;  %v1739_v62 = vsel %vm1595_vm6, %v3945_v7, %v1667_v21  ;;  %3044 = vst [vmem:[%s3692_s22 + $0xd8] sm:$0xff] %v1786_v19   ;;  %v2320_v18 = vmul.f32 %v2170_v36, %v2170_v36 }
 0x171   : > { %v3993_v17 = vpop.f32.mrb[68].mxu1  ;;  %v2173_v61 = vunpack.c.l.bf16 %v1786_v19  ;;  %v2174_v24 = vunpack.c.h.bf16 %v1786_v19  ;;  %v1785_v26 = vpack.c.bf16 %v1740_v13, %v1739_v62  ;;  %v1745_v30 = vsel %vm1601_vm9, %v1529_v6, %v1673_v47 }
 0x172   : > { %v3995_v27 = vpop.f32.mrb[68].mxu0  ;;  %v3997_v60 = vpop.f32.mrb[69].mxu1  ;;  %v2390_v2 = vadd.f32 %v2389_v11, %v2319_v20  ;;  %v2241_v4 = vadd.f32 %v2240_v29, %v2170_v36  ;;  %vm1599_vm10 = vcmp.ge.f32.partialorder %v1527_v14, 0.0  ;;  %v1671_v38 = vmul.f32 0.2, %v1527_v14 }
 0x173   : > { %v4000_v31 = vpop.f32.mrb[69].mxu0  ;;  %v4002_v51 = vpop.f32.mrb[70].mxu1  ;;  %3043 = vst [vmem:[%s3692_s22 + $0xd0] sm:$0xff] %v1785_v26   ;;  %v2171_v7 = vunpack.c.l.bf16 %v1785_v26  ;;  %v2172_v37 = vunpack.c.h.bf16 %v1785_v26  ;;  %v1530_v58 = vadd.f32 %v3862_v40, %v1413_v59  ;;  %v1405_v36 = vadd.f32 %v3918_v39, %v3914_v12 }
 0x174   : > { %v4006_v22 = vpop.f32.mrb[70].mxu0  ;;  %v4008_v23 = vpop.f32.mrb[71].mxu1  ;;  %v2391_v21 = vadd.f32 %v2390_v2, %v2320_v18  ;;  %v1426_v32 = vadd.f32 %v3934_v44, %v3926_v57  ;;  %v1418_v43 = vadd.f32 %v3938_v1, %v3936_v52  ;;  %v1429_v57 = vadd.f32 %v3947_v41, %v3940_v8 }
 0x175   : > { %v4016_v45 = vpop.f32.mrb[71].mxu0  ;;  %v2242_v53 = vadd.f32 %v2241_v4, %v2171_v7  ;;  %v2321_v33 = vmul.f32 %v2171_v7, %v2171_v7  ;;  %v2322_v46 = vmul.f32 %v2172_v37, %v2172_v37  ;;  %vm1602_vm11 = vcmp.ge.f32.partialorder %v1530_v58, 0.0 }
 0x176   : > { %v1674_v55 = vmul.f32 0.2, %v1530_v58  ;;  %v1528_v56 = vadd.f32 %v3862_v40, %v1405_v36  ;;  %v1533_v50 = vadd.f32 %v3862_v40, %v1426_v32  ;;  %v1531_v3 = vadd.f32 %v3862_v40, %v1418_v43 }
 0x177   : > { %v2243_v12 = vadd.f32 %v2242_v53, %v2172_v37  ;;  %v2392_v39 = vadd.f32 %v2391_v21, %v2321_v33  ;;  %v1421_v44 = vadd.f32 %v3955_v16, %v3949_v25  ;;  %v2323_v52 = vmul.f32 %v2173_v61, %v2173_v61 }
 0x178   : > { %v1746_v1 = vsel %vm1602_vm11, %v1530_v58, %v1674_v55  ;;  %vm1600_vm12 = vcmp.ge.f32.partialorder %v1528_v56, 0.0  ;;  %v1672_v63 = vmul.f32 0.2, %v1528_v56  ;;  %v1677_v10 = vmul.f32 0.2, %v1533_v50 }
 0x179   : > { %v2244_v54 = vadd.f32 %v2243_v12, %v2173_v61  ;;  %v2393_v5 = vadd.f32 %v2392_v39, %v2322_v46  ;;  %v1788_v6 = vpack.c.bf16 %v1746_v1, %v1745_v30  ;;  %v1743_v15 = vsel %vm1599_vm10, %v1527_v14, %v1671_v38 }
 0x17a   : > { %v1744_v19 = vsel %vm1600_vm12, %v1528_v56, %v1672_v63  ;;  %vm1605_vm13 = vcmp.ge.f32.partialorder %v1533_v50, 0.0  ;;  %v1534_v13 = vadd.f32 %v3862_v40, %v1429_v57  ;;  %v2324_v8 = vmul.f32 %v2174_v24, %v2174_v24 }
 0x17b   : > { %v2394_v41 = vadd.f32 %v2393_v5, %v2323_v52  ;;  %3046 = vst [vmem:[%s3692_s22 + $0xe8] sm:$0xff] %v1788_v6   ;;  %v1787_v47 = vpack.c.bf16 %v1744_v19, %v1743_v15  ;;  %vm1603_vm14 = vcmp.ge.f32.partialorder %v1531_v3, 0.0  ;;  %v2177_v25 = vunpack.c.l.bf16 %v1788_v6 }
 0x17c   : > { %v2178_v16 = vunpack.c.h.bf16 %v1788_v6  ;;  %v2245_v59 = vadd.f32 %v2244_v54, %v2174_v24  ;;  %v1675_v20 = vmul.f32 0.2, %v1531_v3  ;;  %v1749_v62 = vsel %vm1605_vm13, %v1533_v50, %v1677_v10 }
 0x17d   : > { %3045 = vst [vmem:[%s3692_s22 + $0xe0] sm:$0xff] %v1787_v47   ;;  %v2175_v29 = vunpack.c.l.bf16 %v1787_v47  ;;  %v2176_v11 = vunpack.c.h.bf16 %v1787_v47  ;;  %vm1606_vm15 = vcmp.ge.f32.partialorder %v1534_v13, 0.0  ;;  %v2395_v18 = vadd.f32 %v2394_v41, %v2324_v8 }
 0x17e   : > { %v1678_v14 = vmul.f32 0.2, %v1534_v13  ;;  %v1532_v61 = vadd.f32 %v3862_v40, %v1421_v44  ;;  %v1442_v26 = vadd.f32 %v3964_v28, %v3961_v35  ;;  %v1434_v7 = vadd.f32 %v3970_v48, %v3966_v34 }
 0x17f   : > { %v2246_v2 = vadd.f32 %v2245_v59, %v2175_v29  ;;  %v2325_v4 = vmul.f32 %v2175_v29, %v2175_v29  ;;  %v2326_v30 = vmul.f32 %v2176_v11, %v2176_v11  ;;  %v1445_v28 = vadd.f32 %v3977_v9, %v3972_v49 }
 0x180   : > { %v1750_v24 = vsel %vm1606_vm15, %v1534_v13, %v1678_v14  ;;  %vm1604_vm0 = vcmp.ge.f32.partialorder %v1532_v61, 0.0  ;;  %v1676_v37 = vmul.f32 0.2, %v1532_v61  ;;  %v1537_v38 = vadd.f32 %v3862_v40, %v1442_v26 }
 0x181   : > { %v2247_v58 = vadd.f32 %v2246_v2, %v2176_v11  ;;  %v2396_v21 = vadd.f32 %v2395_v18, %v2325_v4  ;;  %v1790_v36 = vpack.c.bf16 %v1750_v24, %v1749_v62  ;;  %v1535_v32 = vadd.f32 %v3862_v40, %v1434_v7 }
 0x182   : > { %v1748_v43 = vsel %vm1604_vm0, %v1532_v61, %v1676_v37  ;;  %vm1609_vm1 = vcmp.ge.f32.partialorder %v1537_v38, 0.0  ;;  %v1681_v35 = vmul.f32 0.2, %v1537_v38  ;;  %v2327_v53 = vmul.f32 %v2177_v25, %v2177_v25 }
 0x183   : > { %v2248_v34 = vadd.f32 %v2247_v58, %v2177_v25  ;;  %v2397_v48 = vadd.f32 %v2396_v21, %v2326_v30  ;;  %v1747_v33 = vsel %vm1603_vm14, %v1531_v3, %v1675_v20  ;;  %3048 = vst [vmem:[%s3692_s22 + $0xf8] sm:$0xff] %v1790_v36   ;;  %v2328_v46 = vmul.f32 %v2178_v16, %v2178_v16 }
 0x184   : > { %v2181_v55 = vunpack.c.l.bf16 %v1790_v36  ;;  %v1789_v56 = vpack.c.bf16 %v1748_v43, %v1747_v33  ;;  %v2182_v12 = vunpack.c.h.bf16 %v1790_v36  ;;  %v1753_v57 = vsel %vm1609_vm1, %v1537_v38, %v1681_v35 }
 0x185   : > { %v2398_v50 = vadd.f32 %v2397_v48, %v2327_v53  ;;  %v2249_v39 = vadd.f32 %v2248_v34, %v2178_v16  ;;  %vm1607_vm2 = vcmp.ge.f32.partialorder %v1535_v32, 0.0  ;;  %v1538_v1 = vadd.f32 %v3862_v40, %v1445_v28 }
 0x186   : > { %3047 = vst [vmem:[%s3692_s22 + $0xf0] sm:$0xff] %v1789_v56   ;;  %v2179_v44 = vunpack.c.l.bf16 %v1789_v56  ;;  %v2180_v52 = vunpack.c.h.bf16 %v1789_v56  ;;  %v1437_v9 = vadd.f32 %v3983_v0, %v3979_v42  ;;  %v1458_v3 = vadd.f32 %v3995_v27, %v3993_v17 }
 0x187   : > { %v2399_v49 = vadd.f32 %v2398_v50, %v2328_v46  ;;  %v1450_v63 = vadd.f32 %v4000_v31, %v3997_v60  ;;  %v1679_v6 = vmul.f32 0.2, %v1535_v32  ;;  %vm1610_vm3 = vcmp.ge.f32.partialorder %v1538_v1, 0.0 }
 0x188   : > { %v2250_v54 = vadd.f32 %v2249_v39, %v2179_v44  ;;  %v2329_v5 = vmul.f32 %v2179_v44, %v2179_v44  ;;  %v2331_v10 = vmul.f32 %v2181_v55, %v2181_v55  ;;  %v2330_v15 = vmul.f32 %v2180_v52, %v2180_v52 }
 0x189   : > { %v1682_v19 = vmul.f32 0.2, %v1538_v1  ;;  %v1536_v13 = vadd.f32 %v3862_v40, %v1437_v9  ;;  %v1461_v42 = vadd.f32 %v4006_v22, %v4002_v51  ;;  %v1453_v0 = vadd.f32 %v4016_v45, %v4008_v23 }
 0x18a   : > { %v2251_v8 = vadd.f32 %v2250_v54, %v2180_v52  ;;  %v2400_v41 = vadd.f32 %v2399_v49, %v2329_v5  ;;  %v1541_v60 = vadd.f32 %v3862_v40, %v1458_v3  ;;  %v1539_v16 = vadd.f32 %v3862_v40, %v1450_v63 }
 0x18b   : > { %v1754_v17 = vsel %vm1610_vm3, %v1538_v1, %v1682_v19  ;;  %vm1608_vm4 = vcmp.ge.f32.partialorder %v1536_v13, 0.0  ;;  %v1680_v27 = vmul.f32 0.2, %v1536_v13  ;;  %v1751_v59 = vsel %vm1607_vm2, %v1535_v32, %v1679_v6 }
 0x18c   : > { %v2252_v31 = vadd.f32 %v2251_v8, %v2181_v55  ;;  %v2401_v47 = vadd.f32 %v2400_v41, %v2330_v15  ;;  %v1792_v25 = vpack.c.bf16 %v1754_v17, %v1753_v57  ;;  %v1542_v29 = vadd.f32 %v3862_v40, %v1461_v42 }
 0x18d   : > { %v1752_v20 = vsel %vm1608_vm4, %v1536_v13, %v1680_v27  ;;  %v2332_v23 = vmul.f32 %v2182_v12, %v2182_v12  ;;  %vm1613_vm5 = vcmp.ge.f32.partialorder %v1541_v60, 0.0  ;;  %v1685_v11 = vmul.f32 0.2, %v1541_v60 }
 0x18e   : > { %v2402_v51 = vadd.f32 %v2401_v47, %v2331_v10  ;;  %3050 = vst [vmem:[%s3692_s22 + $0x108] sm:$0xff] %v1792_v25   ;;  %v1791_v22 = vpack.c.bf16 %v1752_v20, %v1751_v59  ;;  %v2253_v45 = vadd.f32 %v2252_v31, %v2182_v12  ;;  %vm1611_vm6 = vcmp.ge.f32.partialorder %v1539_v16, 0.0 }
 0x18f   : > { %vm1614_vm7 = vcmp.ge.f32.partialorder %v1542_v29, 0.0  ;;  %v1683_v61 = vmul.f32 0.2, %v1539_v16  ;;  %v1686_v26 = vmul.f32 0.2, %v1542_v29  ;;  %v1540_v2 = vadd.f32 %v3862_v40, %v1453_v0 }
 0x190   : > { %3049 = vst [vmem:[%s3692_s22 + $0x100] sm:$0xff] %v1791_v22   ;;  %v2183_v62 = vunpack.c.l.bf16 %v1791_v22  ;;  %v2184_v18 = vunpack.c.h.bf16 %v1791_v22  ;;  %v2403_v14 = vadd.f32 %v2402_v51, %v2332_v23  ;;  %v2185_v4 = vunpack.c.l.bf16 %v1792_v25 }
 0x191   : > { %v2186_v30 = vunpack.c.h.bf16 %v1792_v25  ;;  %v1757_v37 = vsel %vm1613_vm5, %v1541_v60, %v1685_v11  ;;  %v1758_v38 = vsel %vm1614_vm7, %v1542_v29, %v1686_v26  ;;  %vm1612_vm8 = vcmp.ge.f32.partialorder %v1540_v2, 0.0 }
 0x192   : > { %v2254_v7 = vadd.f32 %v2253_v45, %v2183_v62  ;;  %v2333_v24 = vmul.f32 %v2183_v62, %v2183_v62  ;;  %v1684_v58 = vmul.f32 0.2, %v1540_v2  ;;  %v2334_v36 = vmul.f32 %v2184_v18, %v2184_v18 }
 0x193   : > { %v1794_v43 = vpack.c.bf16 %v1758_v38, %v1757_v37  ;;  %v2335_v28 = vmul.f32 %v2185_v4, %v2185_v4  ;;  %v1755_v40 = vsel %vm1611_vm6, %v1539_v16, %v1683_v61  ;;  %v2336_v33 = vmul.f32 %v2186_v30, %v2186_v30 }
 0x194   : > { %v2255_v21 = vadd.f32 %v2254_v7, %v2184_v18  ;;  %v2404_v32 = vadd.f32 %v2403_v14, %v2333_v24  ;;  %v1756_v35 = vsel %vm1612_vm8, %v1540_v2, %v1684_v58 }
 0x195   : > { %3052 = vst [vmem:[%s3692_s22 + $0x118] sm:$0xff] %v1794_v43   ;;  %v1793_v48 = vpack.c.bf16 %v1756_v35, %v1755_v40  ;;  %v2189_v39 = vunpack.c.l.bf16 %v1794_v43  ;;  %v2190_v52 = vunpack.c.h.bf16 %v1794_v43 }
 0x196   : > { %v2256_v53 = vadd.f32 %v2255_v21, %v2185_v4  ;;  %v2405_v34 = vadd.f32 %v2404_v32, %v2334_v36 }
 0x197   : > { %3051 = vst [vmem:[%s3692_s22 + $0x110] sm:$0xff] %v1793_v48   ;;  %v2187_v56 = vunpack.c.l.bf16 %v1793_v48  ;;  %v2188_v50 = vunpack.c.h.bf16 %v1793_v48  ;;  %v2339_v3 = vmul.f32 %v2189_v39, %v2189_v39  ;;  %v2340_v5 = vmul.f32 %v2190_v52, %v2190_v52 }
 0x198   : > { %v2406_v46 = vadd.f32 %v2405_v34, %v2335_v28  ;;  %v2257_v55 = vadd.f32 %v2256_v53, %v2186_v30 }
 0x199   : > { %v2337_v44 = vmul.f32 %v2187_v56, %v2187_v56  ;;  %v2338_v49 = vmul.f32 %v2188_v50, %v2188_v50 }
 0x19a   : > { %v2407_v12 = vadd.f32 %v2406_v46, %v2336_v33  ;;  %v2258_v57 = vadd.f32 %v2257_v55, %v2187_v56 }
 0x19c   : > { %v2259_v1 = vadd.f32 %v2258_v57, %v2188_v50  ;;  %v2408_v9 = vadd.f32 %v2407_v12, %v2337_v44 }
 0x19e   : > { %v2260_v63 = vadd.f32 %v2259_v1, %v2189_v39  ;;  %v2409_v54 = vadd.f32 %v2408_v9, %v2338_v49 }
 0x1a0   : > { %v2261_v6 = vadd.f32 %v2260_v63, %v2190_v52  ;;  %v2410_v10 = vadd.f32 %v2409_v54, %v2339_v3 }
 0x1a2   : > { %v2262_v15 = vrot.slane %v2261_v6, 4  ;;  %v2411_v19 = vadd.f32 %v2410_v10, %v2340_v5 }
 0x1a4   : > { %v2263_v13 = vadd.f32 %v2262_v15, %v2261_v6  ;;  %v2412_v8 = vrot.slane %v2411_v19, 4 }
 0x1a6   : > { %v2264_v41 = vrot.slane %v2263_v13, 2  ;;  %v2413_v42 = vadd.f32 %v2412_v8, %v2411_v19 }
 0x1a8   : > { %v2265_v0 = vadd.f32 %v2264_v41, %v2263_v13  ;;  %v2414_v17 = vrot.slane %v2413_v42, 2 }
 0x1aa   : > { %v2266_v27 = vrot.slane %v2265_v0, 1  ;;  %v2415_v60 = vadd.f32 %v2414_v17, %v2413_v42 }
 0x1ac   : > { %v2267_v31 = vadd.f32 %v2266_v27, %v2265_v0  ;;  %v2416_v47 = vrot.slane %v2415_v60, 1 }
 0x1ae   : > { %2268 = vst [vmem:[%s238_s27] sm:$0x1] %v2267_v31  ;;  %v2417_v25 = vadd.f32 %v2416_v47, %v2415_v60 }
 0x1b0   : > { %2418 = vst [vmem:[%s241_s30] sm:$0x1] %v2417_v25 }
 0x1b1 PF: > { %s16_s18 = sadd.s32 1, %s3462_s18  }
 0x1b2   : > { %p13_p4 = scmp.ge.s32.totalorder %s16_s18, 4  }
 0x1b4   :  { %15 = sbr.rel (!%p13_p4) target bundleno = 1 (0x1), region = 87 }

// kernel: encoder_forward.7
= control target key start
LH: loop header
LB: loop body
LE: loop exit
PB: predicated region body
PF: predicated region fallthrough
CT: control target
= control target key end

     0   :  { %s1432_s18 = smov 0   ;;  %s1637_s0 = inlined_call_operand.vmem [shape: bf16[2,156,128], index: 0, kind: input, shape index: {}]   ;;  %s1638_s1 = inlined_call_operand.vmem [shape: bf16[2,128,128], index: 1, kind: input, shape index: {}]   ;;  %s1639_s2 = inlined_call_operand.vmem [shape: f32[1,128], index: 2, kind: input, shape index: {}]   ;;  %s1640_s3 = inlined_call_operand.vmem [shape: bf16[2,144,128], index: 3, kind: output, shape index: {0}]   ;;  %s1641_s4 = inlined_call_operand.vmem [shape: f32[2,1,128], index: 4, kind: output, shape index: {1}]   ;;  %s1642_s5 = inlined_call_operand.vmem [shape: f32[2,1,128], index: 5, kind: output, shape index: {2}]  }
   0x1 LB: > { %s1057_s19 = sadd.s32 4294967295, %s1398_s18   ;;  %p1061_p0 = scmp.ge.s32.totalorder %s1398_s18, 1  ;;  %s1398_s18 = sphi %s1432_s18, %s16_s18  }
   0x2   : > { %p192_p1 = scmp.lt.s32.totalorder %s1398_s18, 3 }
   0x4   : > { %p193_p2 = pnand %p1061_p0, %p192_p1 }
   0x5   : > { %v1357_v0 = vld [vmem:[%s1638_s1 + $0x40] sm:$0xff] (!%p193_p2)   ;;  %v1400_v1 = vmov (!%p193_p2), 0.0   ;;  %v1359_v3 = vld [vmem:[%s1638_s1 + $0x48] sm:$0xff] (!%p193_p2)   ;;  %vm1401_vm0 = vmmov (!%p193_p2), 0   ;;  %p226_p3 = scmp.lt.s32.totalorder (!%p193_p2), %s1057_s19, 1  ;;  %v1361_v5 = vld [vmem:[%s1638_s1 + $0x50] sm:$0xff] (!%p193_p2)  }
   0x6   : > { %196 = sbr.rel (%p193_p2) target bundleno = 347 (0x15b), region = 32  ;;  %1241 = vmatprep.subr.bf16.mxu0 (!%p193_p2), %v1400_v1  ;;  %1293 = vmatprep.subr.bf16.mxu1 (!%p193_p2), %v1400_v1  ;;  %v1358_v2 = vld [vmem:[%s1638_s1] sm:$0xff] (!%p193_p2)   ;;  %v1360_v4 = vld [vmem:[%s1638_s1 + $0x8] sm:$0xff] (!%p193_p2)   ;;  %v1362_v6 = vld [vmem:[%s1638_s1 + $0x10] sm:$0xff] (!%p193_p2)   ;;  %vm344_vm1 = vcmask (!%p193_p2), 1045504  }
   0x7   : > { %1242 = vmatpush3.bf16.msra.mxu0 (!%p193_p2), %v1357_v0  ;;  %1257 = vmatprep.mubr.msk.bf16.mxu0 (!%p193_p2), %vm1401_vm0, %v1400_v1  ;;  %v1363_v7 = vld [vmem:[%s1638_s1 + $0x58] sm:$0xff] (!%p193_p2)   ;;  %v1365_v9 = vld [vmem:[%s1638_s1 + $0x60] sm:$0xff] (!%p193_p2)   ;;  %v1367_v11 = vld [vmem:[%s1638_s1 + $0x68] sm:$0xff] (!%p193_p2)  }
   0x8   : > { %1294 = vmatpush3.bf16.msra.mxu1 (!%p193_p2), %v1358_v2  ;;  %1243 = vmatprep.subr.bf16.mxu0 (!%p193_p2), %v1400_v1  ;;  %v1364_v8 = vld [vmem:[%s1638_s1 + $0x18] sm:$0xff] (!%p193_p2)   ;;  %v1366_v10 = vld [vmem:[%s1638_s1 + $0x20] sm:$0xff] (!%p193_p2)   ;;  %v1368_v12 = vld [vmem:[%s1638_s1 + $0x28] sm:$0xff] (!%p193_p2)  }
   0x9   : > { %1295 = vmatprep.subr.bf16.mxu1 (!%p193_p2), %v1400_v1  ;;  %1309 = vmatprep.mubr.msk.bf16.mxu1 (!%p193_p2), %vm1401_vm0, %v1400_v1  ;;  %v1369_v17 = vld [vmem:[%s1638_s1 + $0x70] sm:$0xff] (!%p193_p2)   ;;  %v1371_v25 = vld [vmem:[%s1638_s1 + $0x78] sm:$0xff] (!%p193_p2)  }
   0xa   : > { %v1370_v20 = vld [vmem:[%s1638_s1 + $0x30] sm:$0xff] (!%p193_p2)   ;;  %v1372_v26 = vld [vmem:[%s1638_s1 + $0x38] sm:$0xff] (!%p193_p2)  }
   0xb   : > { %1244 = vmatpush3.bf16.msra.mxu0 (!%p193_p2), %v1359_v3 }
   0xc   : > { %1296 = vmatpush3.bf16.msra.mxu1 (!%p193_p2), %v1360_v4  ;;  %1245 = vmatprep.subr.bf16.mxu0 (!%p193_p2), %v1400_v1 }
   0xd   : > { %s1644_s19 = smov (!%p226_p3, %s1057_s19), 1  ;;  %1297 = vmatprep.subr.bf16.mxu1 %v1400_v1 }
   0xe   : > { %s1345_s11 = smul.u32 80, %s1644_s19  ;;  %s238_s16 = scalar_lea.vmem %s1641_s4, %s1644_s19 }
   0xf   : > { %1246 = vmatpush3.bf16.msra.mxu0 %v1361_v5  ;;  %s1346_s10 = smul.u32 72, %s1644_s19  ;;  %s241_s21 = scalar_lea.vmem %s1642_s5, %s1644_s19 }
  0x10   : > { %1298 = vmatpush3.bf16.msra.mxu1 %v1362_v6  ;;  %1247 = vmatprep.subr.bf16.mxu0 %v1400_v1  ;;  %s1489_s20 = scalar_lea.vmem %s1637_s0, %s1345_s11 }
  0x11   : > { %1299 = vmatprep.subr.bf16.mxu1 %v1400_v1  ;;  %v244_v13 = vld [vmem:[%s1489_s20 + $0x4] sm:$0xf]  ;;  %v245_v14 = vld [vmem:[%s1489_s20 + $0x8] sm:$0xf]  ;;  %v246_v15 = vld [vmem:[%s1489_s20 + $0xc] sm:$0xf]  ;;  %s1599_s13 = scalar_lea.vmem %s1640_s3, %s1346_s10 }
  0x12   : > { %v247_v16 = vld [vmem:[%s1489_s20 + $0x10] sm:$0xf]  ;;  %v1080_v18 = vcombine.low %v244_v13, %v245_v14  ;;  %v1512_v21 = vld [vmem:[%s1489_s20 + $0x44] sm:$0xf]  ;;  %v261_v22 = vld [vmem:[%s1489_s20 + $0x48] sm:$0xf]  ;;  %v1099_v42 = vcombine.low %v245_v14, %v246_v15 }
  0x13   : > { %1248 = vmatpush3.bf16.msra.mxu0 %v1363_v7  ;;  %v1081_v19 = vcombine.low %v246_v15, %v247_v16  ;;  %v1088_v23 = vcombine.low %v1512_v21, %v261_v22  ;;  %v1390_v24 = vld [vmem:[%s1489_s20 + $0x4c] ss:$0 sps:$4 sm:$0x33]   ;;  %v243_v31 = vld [vmem:[%s1489_s20] sm:$0xf] }
  0x14   : > { %1300 = vmatpush3.bf16.msra.mxu1 %v1364_v8  ;;  %1249 = vmatprep.subr.bf16.mxu0 %v1400_v1  ;;  %v345_v27 = vrot.slane %v1080_v18, 2  ;;  %v362_v30 = vrot.slane %v1390_v24, 2  ;;  %v248_v32 = vld [vmem:[%s1489_s20 + $0x14] sm:$0xf]  ;;  %v249_v33 = vld [vmem:[%s1489_s20 + $0x18] sm:$0xf]  ;;  %v1098_v36 = vcombine.low %v243_v31, %v244_v13 }
  0x15   : > { %1301 = vmatprep.subr.bf16.mxu1 %v1400_v1  ;;  %v346_v28 = vrot.slane %v1081_v19, 2  ;;  %v1524_v29 = vrot.slane %v1088_v23, 2  ;;  %v1082_v37 = vcombine.low %v248_v32, %v249_v33  ;;  %v250_v39 = vld [vmem:[%s1489_s20 + $0x1c] sm:$0xf]  ;;  %v251_v40 = vld [vmem:[%s1489_s20 + $0x20] sm:$0xf]  ;;  %v1100_v48 = vcombine.low %v247_v16, %v248_v32 }
  0x16   : > { %v1083_v43 = vcombine.low %v250_v39, %v251_v40  ;;  %v252_v45 = vld [vmem:[%s1489_s20 + $0x24] sm:$0xf]  ;;  %v253_v46 = vld [vmem:[%s1489_s20 + $0x28] sm:$0xf]  ;;  %v254_v51 = vld [vmem:[%s1489_s20 + $0x2c] sm:$0xf]  ;;  %v1101_v54 = vcombine.low %v249_v33, %v250_v39 }
  0x17   : > { %1250 = vmatpush3.bf16.msra.mxu0 %v1365_v9  ;;  %v1533_v34 = vsel %vm344_vm1, %v1524_v29, %v362_v30  ;;  %v347_v35 = vsel %vm344_vm1, %v345_v27, %v346_v28  ;;  %v348_v38 = vrot.slane %v1082_v37, 2  ;;  %v1084_v49 = vcombine.low %v252_v45, %v253_v46  ;;  %v255_v52 = vld [vmem:[%s1489_s20 + $0x30] sm:$0xf]  ;;  %v256_v57 = vld [vmem:[%s1489_s20 + $0x34] sm:$0xf] }
  0x18   : > { %1302 = vmatpush3.bf16.msra.mxu1 %v1366_v10  ;;  %1251 = vmatprep.subr.bf16.mxu0 %v1400_v1  ;;  %v350_v44 = vrot.slane %v1083_v43, 2  ;;  %v1085_v55 = vcombine.low %v254_v51, %v255_v52  ;;  %v257_v58 = vld [vmem:[%s1489_s20 + $0x38] sm:$0xf]  ;;  %v1102_v60 = vcombine.low %v251_v40, %v252_v45  ;;  %v258_v63 = vld [vmem:[%s1489_s20 + $0x3c] sm:$0xf]  ;;  %v1103_v3 = vcombine.low %v253_v46, %v254_v51 }
  0x19   : > { %1303 = vmatprep.subr.bf16.mxu1 %v1400_v1  ;;  %v349_v41 = vsel %vm344_vm1, %v346_v28, %v348_v38  ;;  %v352_v50 = vrot.slane %v1084_v49, 2  ;;  %v1086_v61 = vcombine.low %v256_v57, %v257_v58  ;;  %v259_v0 = vld [vmem:[%s1489_s20 + $0x40] sm:$0xf]  ;;  %v1104_v7 = vcombine.low %v255_v52, %v256_v57 }
  0x1a   : > { %v351_v47 = vsel %vm344_vm1, %v348_v38, %v350_v44  ;;  %v354_v56 = vrot.slane %v1085_v55, 2  ;;  %v1087_v4 = vcombine.low %v258_v63, %v259_v0  ;;  %v1105_v9 = vcombine.low %v257_v58, %v258_v63  ;;  %v1591_v13 = vld [vmem:[%s1639_s2] ss:$0 sm:$0xff] }
  0x1b   : > { %1252 = vmatpush3.bf16.msra.mxu0 %v1367_v11  ;;  %v353_v53 = vsel %vm344_vm1, %v350_v44, %v352_v50  ;;  %v356_v62 = vrot.slane %v1086_v61, 2  ;;  %v1106_v10 = vcombine.low %v259_v0, %v1512_v21 }
  0x1c   : > { %1304 = vmatpush3.bf16.msra.mxu1 %v1368_v12  ;;  %1253 = vmatprep.subr.bf16.mxu0 %v1400_v1  ;;  %v355_v59 = vsel %vm344_vm1, %v352_v50, %v354_v56  ;;  %v358_v5 = vrot.slane %v1087_v4, 2 }
  0x1d   : > { %1305 = vmatprep.subr.bf16.mxu1 %v1400_v1  ;;  %v357_v2 = vsel %vm344_vm1, %v354_v56, %v356_v62 }
  0x1e   : > { %v359_v6 = vsel %vm344_vm1, %v356_v62, %v358_v5  ;;  %v361_v8 = vsel %vm344_vm1, %v358_v5, %v1524_v29 }
  0x1f   : > { %1254 = vmatpush3.bf16.msra.mxu0 %v1369_v17 }
  0x20   : > { %1306 = vmatpush3.bf16.msra.mxu1 %v1370_v20  ;;  %1255 = vmatprep.subr.bf16.mxu0 %v1400_v1 }
  0x21   : > { %1307 = vmatprep.subr.bf16.mxu1 %v1400_v1 }
  0x23   : > { %1256 = vmatpush3.bf16.msra.mxu0 %v1371_v25 }
  0x24   : > { %1308 = vmatpush3.bf16.msra.mxu1 %v1372_v26 }
  0x26   : > { %1258 = vmatmul.mubr.bf16.vlgmr.msra.gmra.mrb[0].mxu0 %v347_v35 }
  0x27   : > { %1310 = vmatmul.mubr.bf16.vlgmr.msra.gmra.mrb[0].mxu1 %v1098_v36  ;;  %1261 = vmatprep.mubr.msk.bf16.mxu0 %vm1401_vm0, %v1400_v1 }
  0x28   : > { %1313 = vmatprep.mubr.msk.bf16.mxu1 %vm1401_vm0, %v1400_v1 }
  0x2e   : > { %1262 = vmatmul.mubr.bf16.gmra.mrb[4].mxu0 %v349_v41 }
  0x2f   : > { %1314 = vmatmul.mubr.bf16.gmra.mrb[4].mxu1 %v1099_v42  ;;  %1265 = vmatprep.mubr.msk.bf16.mxu0 %vm1401_vm0, %v1400_v1 }
  0x30   : > { %1317 = vmatprep.mubr.msk.bf16.mxu1 %vm1401_vm0, %v1400_v1 }
  0x36   : > { %1266 = vmatmul.mubr.bf16.gmra.mrb[8].mxu0 %v351_v47 }
  0x37   : > { %1318 = vmatmul.mubr.bf16.gmra.mrb[8].mxu1 %v1100_v48  ;;  %1269 = vmatprep.mubr.msk.bf16.mxu0 %vm1401_vm0, %v1400_v1 }
  0x38   : > { %1321 = vmatprep.mubr.msk.bf16.mxu1 %vm1401_vm0, %v1400_v1 }
  0x3e   : > { %1270 = vmatmul.mubr.bf16.gmra.mrb[12].mxu0 %v353_v53 }
  0x3f   : > { %1322 = vmatmul.mubr.bf16.gmra.mrb[12].mxu1 %v1101_v54  ;;  %1273 = vmatprep.mubr.msk.bf16.mxu0 %vm1401_vm0, %v1400_v1 }
  0x40   : > { %1325 = vmatprep.mubr.msk.bf16.mxu1 %vm1401_vm0, %v1400_v1 }
  0x46   : > { %1274 = vmatmul.mubr.bf16.gmra.mrb[16].mxu0 %v355_v59 }
  0x47   : > { %1326 = vmatmul.mubr.bf16.gmra.mrb[16].mxu1 %v1102_v60  ;;  %1277 = vmatprep.mubr.msk.bf16.mxu0 %vm1401_vm0, %v1400_v1 }
  0x48   : > { %1329 = vmatprep.mubr.msk.bf16.mxu1 %vm1401_vm0, %v1400_v1 }
  0x4e   : > { %1278 = vmatmul.mubr.bf16.gmra.mrb[20].mxu0 %v357_v2 }
  0x4f   : > { %1330 = vmatmul.mubr.bf16.gmra.mrb[20].mxu1 %v1103_v3  ;;  %1281 = vmatprep.mubr.msk.bf16.mxu0 %vm1401_vm0, %v1400_v1 }
  0x50   : > { %1333 = vmatprep.mubr.msk.bf16.mxu1 %vm1401_vm0, %v1400_v1 }
  0x56   : > { %1282 = vmatmul.mubr.bf16.gmra.mrb[24].mxu0 %v359_v6 }
  0x57   : > { %1334 = vmatmul.mubr.bf16.gmra.mrb[24].mxu1 %v1104_v7  ;;  %1285 = vmatprep.mubr.msk.bf16.mxu0 %vm1401_vm0, %v1400_v1 }
  0x58   : > { %1337 = vmatprep.mubr.msk.bf16.mxu1 %vm1401_vm0, %v1400_v1 }
  0x5e   : > { %1286 = vmatmul.mubr.bf16.gmra.mrb[28].mxu0 %v361_v8 }
  0x5f   : > { %1338 = vmatmul.mubr.bf16.gmra.mrb[28].mxu1 %v1105_v9  ;;  %1289 = vmatprep.mubr.msk.bf16.mxu0 %vm1401_vm0, %v1400_v1 }
  0x60   : > { %1341 = vmatprep.mubr.msk.bf16.mxu1 %vm1401_vm0, %v1400_v1 }
  0x66   : > { %1290 = vmatmul.mubr.bf16.gmra.mrb[32].mxu0 %v1533_v34 }
  0x67   : > { %1342 = vmatmul.mubr.bf16.gmra.mrb[32].mxu1 %v1106_v10 }
  0xf9   : > { %v455_v11 = vpop.f32.mrb[0].mxu0 }
  0xfa   : > { %v628_v12 = vpop.f32.mrb[0].mxu1  ;;  %v1259_v14 = vpop.f32.mrb[1].mxu0 }
  0xfb   : > { %v629_v15 = vadd.f32 %v628_v12, %v455_v11  ;;  %v1311_v16 = vpop.f32.mrb[1].mxu1  ;;  %v458_v17 = vpop.f32.mrb[2].mxu0 }
  0xfc   : > { %v631_v18 = vpop.f32.mrb[2].mxu1  ;;  %v1260_v19 = vpop.f32.mrb[3].mxu0 }
  0xfd   : > { %v706_v1 = vadd.f32 %v1591_v13, %v629_v15  ;;  %v632_v20 = vadd.f32 %v631_v18, %v458_v17  ;;  %v1312_v21 = vpop.f32.mrb[3].mxu1 }
  0xff   : > { %v742_v22 = vmul.f32 0.2, %v706_v1  ;;  %v707_v23 = vadd.f32 %v1591_v13, %v632_v20  ;;  %vm724_vm2 = vcmp.ge.f32.partialorder %v706_v1, 0.0 }
 0x101   : > { %vm725_vm3 = vcmp.ge.f32.partialorder %v707_v23, 0.0  ;;  %v743_v24 = vmul.f32 0.2, %v707_v23  ;;  %v463_v25 = vpop.f32.mrb[4].mxu0  ;;  %v760_v28 = vsel %vm724_vm2, %v706_v1, %v742_v22 }
 0x102   : > { %v636_v26 = vpop.f32.mrb[4].mxu1  ;;  %v1263_v27 = vpop.f32.mrb[5].mxu0 }
 0x103   : > { %v761_v29 = vsel %vm725_vm3, %v707_v23, %v743_v24  ;;  %v637_v30 = vadd.f32 %v636_v26, %v463_v25  ;;  %v1315_v31 = vpop.f32.mrb[5].mxu1  ;;  %v466_v32 = vpop.f32.mrb[6].mxu0 }
 0x104   : > { %v778_v33 = vpack.c.bf16 %v761_v29, %v760_v28  ;;  %v639_v34 = vpop.f32.mrb[6].mxu1  ;;  %v1264_v35 = vpop.f32.mrb[7].mxu0 }
 0x105   : > { %v708_v36 = vadd.f32 %v1591_v13, %v637_v30  ;;  %v640_v37 = vadd.f32 %v639_v34, %v466_v32  ;;  %v1316_v38 = vpop.f32.mrb[7].mxu1 }
 0x106   : > { %1158 = vst [vmem:[%s1599_s13] sm:$0xff] %v778_v33   ;;  %v868_v41 = vunpack.c.l.bf16 %v778_v33  ;;  %v869_v42 = vunpack.c.h.bf16 %v778_v33 }
 0x107   : > { %v744_v39 = vmul.f32 0.2, %v708_v36  ;;  %v709_v40 = vadd.f32 %v1591_v13, %v640_v37  ;;  %vm726_vm4 = vcmp.ge.f32.partialorder %v708_v36, 0.0 }
 0x108   : > { %v910_v52 = vmul.f32 %v868_v41, %v868_v41  ;;  %v911_v53 = vmul.f32 %v869_v42, %v869_v42  ;;  %v886_v60 = vadd.f32 %v869_v42, %v868_v41 }
 0x109   : > { %vm727_vm5 = vcmp.ge.f32.partialorder %v709_v40, 0.0  ;;  %v745_v43 = vmul.f32 0.2, %v709_v40  ;;  %v471_v44 = vpop.f32.mrb[8].mxu0  ;;  %v762_v47 = vsel %vm726_vm4, %v708_v36, %v744_v39 }
 0x10a   : > { %v644_v45 = vpop.f32.mrb[8].mxu1  ;;  %v1267_v46 = vpop.f32.mrb[9].mxu0  ;;  %v928_v2 = vadd.f32 %v911_v53, %v910_v52 }
 0x10b   : > { %v763_v48 = vsel %vm727_vm5, %v709_v40, %v745_v43  ;;  %v645_v49 = vadd.f32 %v644_v45, %v471_v44  ;;  %v1319_v50 = vpop.f32.mrb[9].mxu1  ;;  %v474_v51 = vpop.f32.mrb[10].mxu0 }
 0x10c   : > { %v779_v54 = vpack.c.bf16 %v763_v48, %v762_v47  ;;  %v647_v55 = vpop.f32.mrb[10].mxu1  ;;  %v1268_v56 = vpop.f32.mrb[11].mxu0 }
 0x10d   : > { %v710_v57 = vadd.f32 %v1591_v13, %v645_v49  ;;  %v648_v58 = vadd.f32 %v647_v55, %v474_v51  ;;  %v1320_v59 = vpop.f32.mrb[11].mxu1 }
 0x10e   : > { %1199 = vst [vmem:[%s1599_s13 + $0x8] sm:$0xff] %v779_v54   ;;  %v870_v61 = vunpack.c.l.bf16 %v779_v54  ;;  %v871_v62 = vunpack.c.h.bf16 %v779_v54 }
 0x10f   : > { %v746_v63 = vmul.f32 0.2, %v710_v57  ;;  %v711_v0 = vadd.f32 %v1591_v13, %v648_v58  ;;  %vm728_vm6 = vcmp.ge.f32.partialorder %v710_v57, 0.0 }
 0x110   : > { %v887_v3 = vadd.f32 %v886_v60, %v870_v61  ;;  %v912_v4 = vmul.f32 %v870_v61, %v870_v61  ;;  %v913_v8 = vmul.f32 %v871_v62, %v871_v62 }
 0x111   : > { %vm729_vm7 = vcmp.ge.f32.partialorder %v711_v0, 0.0  ;;  %v747_v5 = vmul.f32 0.2, %v711_v0  ;;  %v479_v6 = vpop.f32.mrb[12].mxu0  ;;  %v764_v12 = vsel %vm728_vm6, %v710_v57, %v746_v63 }
 0x112   : > { %v888_v7 = vadd.f32 %v887_v3, %v871_v62  ;;  %v929_v9 = vadd.f32 %v928_v2, %v912_v4  ;;  %v652_v10 = vpop.f32.mrb[12].mxu1  ;;  %v1271_v11 = vpop.f32.mrb[13].mxu0 }
 0x113   : > { %v765_v14 = vsel %vm729_vm7, %v711_v0, %v747_v5  ;;  %v653_v15 = vadd.f32 %v652_v10, %v479_v6  ;;  %v1323_v16 = vpop.f32.mrb[13].mxu1  ;;  %v482_v17 = vpop.f32.mrb[14].mxu0 }
 0x114   : > { %v930_v18 = vadd.f32 %v929_v9, %v913_v8  ;;  %v780_v19 = vpack.c.bf16 %v765_v14, %v764_v12  ;;  %v655_v1 = vpop.f32.mrb[14].mxu1  ;;  %v1272_v20 = vpop.f32.mrb[15].mxu0 }
 0x115   : > { %v712_v21 = vadd.f32 %v1591_v13, %v653_v15  ;;  %v656_v22 = vadd.f32 %v655_v1, %v482_v17  ;;  %v1324_v23 = vpop.f32.mrb[15].mxu1 }
 0x116   : > { %1200 = vst [vmem:[%s1599_s13 + $0x10] sm:$0xff] %v780_v19   ;;  %v872_v24 = vunpack.c.l.bf16 %v780_v19  ;;  %v873_v25 = vunpack.c.h.bf16 %v780_v19 }
 0x117   : > { %v748_v26 = vmul.f32 0.2, %v712_v21  ;;  %v713_v27 = vadd.f32 %v1591_v13, %v656_v22  ;;  %vm730_vm8 = vcmp.ge.f32.partialorder %v712_v21, 0.0 }
 0x118   : > { %v889_v28 = vadd.f32 %v888_v7, %v872_v24  ;;  %v914_v29 = vmul.f32 %v872_v24, %v872_v24  ;;  %v915_v33 = vmul.f32 %v873_v25, %v873_v25 }
 0x119   : > { %vm731_vm9 = vcmp.ge.f32.partialorder %v713_v27, 0.0  ;;  %v749_v30 = vmul.f32 0.2, %v713_v27  ;;  %v487_v31 = vpop.f32.mrb[16].mxu0  ;;  %v766_v37 = vsel %vm730_vm8, %v712_v21, %v748_v26 }
 0x11a   : > { %v890_v32 = vadd.f32 %v889_v28, %v873_v25  ;;  %v931_v34 = vadd.f32 %v930_v18, %v914_v29  ;;  %v660_v35 = vpop.f32.mrb[16].mxu1  ;;  %v1275_v36 = vpop.f32.mrb[17].mxu0 }
 0x11b   : > { %v767_v38 = vsel %vm731_vm9, %v713_v27, %v749_v30  ;;  %v661_v39 = vadd.f32 %v660_v35, %v487_v31  ;;  %v1327_v40 = vpop.f32.mrb[17].mxu1  ;;  %v490_v41 = vpop.f32.mrb[18].mxu0 }
 0x11c   : > { %v932_v42 = vadd.f32 %v931_v34, %v915_v33  ;;  %v781_v43 = vpack.c.bf16 %v767_v38, %v766_v37  ;;  %v663_v44 = vpop.f32.mrb[18].mxu1  ;;  %v1276_v45 = vpop.f32.mrb[19].mxu0 }
 0x11d   : > { %v714_v46 = vadd.f32 %v1591_v13, %v661_v39  ;;  %v664_v47 = vadd.f32 %v663_v44, %v490_v41  ;;  %v1328_v48 = vpop.f32.mrb[19].mxu1 }
 0x11e   : > { %1201 = vst [vmem:[%s1599_s13 + $0x18] sm:$0xff] %v781_v43   ;;  %v874_v49 = vunpack.c.l.bf16 %v781_v43  ;;  %v875_v50 = vunpack.c.h.bf16 %v781_v43 }
 0x11f   : > { %v750_v51 = vmul.f32 0.2, %v714_v46  ;;  %v715_v52 = vadd.f32 %v1591_v13, %v664_v47  ;;  %vm732_vm10 = vcmp.ge.f32.partialorder %v714_v46, 0.0 }
 0x120   : > { %v891_v53 = vadd.f32 %v890_v32, %v874_v49  ;;  %v916_v54 = vmul.f32 %v874_v49, %v874_v49  ;;  %v917_v58 = vmul.f32 %v875_v50, %v875_v50 }
 0x121   : > { %vm733_vm11 = vcmp.ge.f32.partialorder %v715_v52, 0.0  ;;  %v751_v55 = vmul.f32 0.2, %v715_v52  ;;  %v495_v56 = vpop.f32.mrb[20].mxu0  ;;  %v768_v62 = vsel %vm732_vm10, %v714_v46, %v750_v51 }
 0x122   : > { %v892_v57 = vadd.f32 %v891_v53, %v875_v50  ;;  %v933_v59 = vadd.f32 %v932_v42, %v916_v54  ;;  %v668_v60 = vpop.f32.mrb[20].mxu1  ;;  %v1279_v61 = vpop.f32.mrb[21].mxu0 }
 0x123   : > { %v769_v63 = vsel %vm733_vm11, %v715_v52, %v751_v55  ;;  %v669_v0 = vadd.f32 %v668_v60, %v495_v56  ;;  %v1331_v2 = vpop.f32.mrb[21].mxu1  ;;  %v498_v3 = vpop.f32.mrb[22].mxu0 }
 0x124   : > { %v934_v4 = vadd.f32 %v933_v59, %v917_v58  ;;  %v782_v5 = vpack.c.bf16 %v769_v63, %v768_v62  ;;  %v671_v6 = vpop.f32.mrb[22].mxu1  ;;  %v1280_v7 = vpop.f32.mrb[23].mxu0 }
 0x125   : > { %v716_v8 = vadd.f32 %v1591_v13, %v669_v0  ;;  %v672_v9 = vadd.f32 %v671_v6, %v498_v3  ;;  %v1332_v10 = vpop.f32.mrb[23].mxu1 }
 0x126   : > { %1202 = vst [vmem:[%s1599_s13 + $0x20] sm:$0xff] %v782_v5   ;;  %v876_v11 = vunpack.c.l.bf16 %v782_v5  ;;  %v877_v12 = vunpack.c.h.bf16 %v782_v5 }
 0x127   : > { %v752_v14 = vmul.f32 0.2, %v716_v8  ;;  %v717_v15 = vadd.f32 %v1591_v13, %v672_v9  ;;  %vm734_vm12 = vcmp.ge.f32.partialorder %v716_v8, 0.0 }
 0x128   : > { %v893_v16 = vadd.f32 %v892_v57, %v876_v11  ;;  %v918_v17 = vmul.f32 %v876_v11, %v876_v11  ;;  %v919_v20 = vmul.f32 %v877_v12, %v877_v12 }
 0x129   : > { %vm735_vm13 = vcmp.ge.f32.partialorder %v717_v15, 0.0  ;;  %v753_v18 = vmul.f32 0.2, %v717_v15  ;;  %v503_v19 = vpop.f32.mrb[24].mxu0  ;;  %v770_v24 = vsel %vm734_vm12, %v716_v8, %v752_v14 }
 0x12a   : > { %v894_v1 = vadd.f32 %v893_v16, %v877_v12  ;;  %v935_v21 = vadd.f32 %v934_v4, %v918_v17  ;;  %v676_v22 = vpop.f32.mrb[24].mxu1  ;;  %v1283_v23 = vpop.f32.mrb[25].mxu0 }
 0x12b   : > { %v771_v25 = vsel %vm735_vm13, %v717_v15, %v753_v18  ;;  %v677_v26 = vadd.f32 %v676_v22, %v503_v19  ;;  %v1335_v27 = vpop.f32.mrb[25].mxu1  ;;  %v506_v28 = vpop.f32.mrb[26].mxu0 }
 0x12c   : > { %v936_v29 = vadd.f32 %v935_v21, %v919_v20  ;;  %v783_v30 = vpack.c.bf16 %v771_v25, %v770_v24  ;;  %v679_v31 = vpop.f32.mrb[26].mxu1  ;;  %v1284_v32 = vpop.f32.mrb[27].mxu0 }
 0x12d   : > { %v718_v33 = vadd.f32 %v1591_v13, %v677_v26  ;;  %v680_v34 = vadd.f32 %v679_v31, %v506_v28  ;;  %v1336_v35 = vpop.f32.mrb[27].mxu1 }
 0x12e   : > { %1203 = vst [vmem:[%s1599_s13 + $0x28] sm:$0xff] %v783_v30   ;;  %v878_v36 = vunpack.c.l.bf16 %v783_v30  ;;  %v879_v37 = vunpack.c.h.bf16 %v783_v30 }
 0x12f   : > { %v754_v38 = vmul.f32 0.2, %v718_v33  ;;  %v719_v39 = vadd.f32 %v1591_v13, %v680_v34  ;;  %vm736_vm14 = vcmp.ge.f32.partialorder %v718_v33, 0.0 }
 0x130   : > { %v895_v40 = vadd.f32 %v894_v1, %v878_v36  ;;  %v920_v41 = vmul.f32 %v878_v36, %v878_v36  ;;  %v921_v45 = vmul.f32 %v879_v37, %v879_v37 }
 0x131   : > { %vm737_vm15 = vcmp.ge.f32.partialorder %v719_v39, 0.0  ;;  %v755_v42 = vmul.f32 0.2, %v719_v39  ;;  %v511_v43 = vpop.f32.mrb[28].mxu0  ;;  %v772_v49 = vsel %vm736_vm14, %v718_v33, %v754_v38 }
 0x132   : > { %v896_v44 = vadd.f32 %v895_v40, %v879_v37  ;;  %v937_v46 = vadd.f32 %v936_v29, %v920_v41  ;;  %v684_v47 = vpop.f32.mrb[28].mxu1  ;;  %v1287_v48 = vpop.f32.mrb[29].mxu0 }
 0x133   : > { %v773_v50 = vsel %vm737_vm15, %v719_v39, %v755_v42  ;;  %v685_v51 = vadd.f32 %v684_v47, %v511_v43  ;;  %v1339_v52 = vpop.f32.mrb[29].mxu1  ;;  %v514_v53 = vpop.f32.mrb[30].mxu0 }
 0x134   : > { %v938_v54 = vadd.f32 %v937_v46, %v921_v45  ;;  %v784_v55 = vpack.c.bf16 %v773_v50, %v772_v49  ;;  %v687_v56 = vpop.f32.mrb[30].mxu1  ;;  %v1288_v57 = vpop.f32.mrb[31].mxu0 }
 0x135   : > { %v720_v58 = vadd.f32 %v1591_v13, %v685_v51  ;;  %v688_v59 = vadd.f32 %v687_v56, %v514_v53  ;;  %v1340_v60 = vpop.f32.mrb[31].mxu1 }
 0x136   : > { %1204 = vst [vmem:[%s1599_s13 + $0x30] sm:$0xff] %v784_v55   ;;  %v880_v61 = vunpack.c.l.bf16 %v784_v55  ;;  %v881_v62 = vunpack.c.h.bf16 %v784_v55 }
 0x137   : > { %v756_v63 = vmul.f32 0.2, %v720_v58  ;;  %v721_v0 = vadd.f32 %v1591_v13, %v688_v59  ;;  %vm738_vm0 = vcmp.ge.f32.partialorder %v720_v58, 0.0 }
 0x138   : > { %v897_v2 = vadd.f32 %v896_v44, %v880_v61  ;;  %v922_v3 = vmul.f32 %v880_v61, %v880_v61  ;;  %v923_v7 = vmul.f32 %v881_v62, %v881_v62 }
 0x139   : > { %vm739_vm1 = vcmp.ge.f32.partialorder %v721_v0, 0.0  ;;  %v757_v4 = vmul.f32 0.2, %v721_v0  ;;  %v519_v5 = vpop.f32.mrb[32].mxu0  ;;  %v774_v11 = vsel %vm738_vm0, %v720_v58, %v756_v63 }
 0x13a   : > { %v898_v6 = vadd.f32 %v897_v2, %v881_v62  ;;  %v939_v8 = vadd.f32 %v938_v54, %v922_v3  ;;  %v692_v9 = vpop.f32.mrb[32].mxu1  ;;  %v1291_v10 = vpop.f32.mrb[33].mxu0 }
 0x13b   : > { %v775_v12 = vsel %vm739_vm1, %v721_v0, %v757_v4  ;;  %v693_v14 = vadd.f32 %v692_v9, %v519_v5  ;;  %v1343_v15 = vpop.f32.mrb[33].mxu1  ;;  %v522_v16 = vpop.f32.mrb[34].mxu0 }
 0x13c   : > { %v940_v17 = vadd.f32 %v939_v8, %v923_v7  ;;  %v785_v18 = vpack.c.bf16 %v775_v12, %v774_v11  ;;  %v695_v19 = vpop.f32.mrb[34].mxu1  ;;  %v1292_v1 = vpop.f32.mrb[35].mxu0 }
 0x13d   : > { %v722_v20 = vadd.f32 %v1591_v13, %v693_v14  ;;  %v696_v21 = vadd.f32 %v695_v19, %v522_v16  ;;  %v1344_v22 = vpop.f32.mrb[35].mxu1 }
 0x13e   : > { %1205 = vst [vmem:[%s1599_s13 + $0x38] sm:$0xff] %v785_v18   ;;  %v882_v23 = vunpack.c.l.bf16 %v785_v18  ;;  %v883_v24 = vunpack.c.h.bf16 %v785_v18 }
 0x13f   : > { %v758_v25 = vmul.f32 0.2, %v722_v20  ;;  %v723_v26 = vadd.f32 %v1591_v13, %v696_v21  ;;  %vm740_vm2 = vcmp.ge.f32.partialorder %v722_v20, 0.0 }
 0x140   : > { %v899_v27 = vadd.f32 %v898_v6, %v882_v23  ;;  %v924_v28 = vmul.f32 %v882_v23, %v882_v23  ;;  %v925_v31 = vmul.f32 %v883_v24, %v883_v24 }
 0x141   : > { %vm741_vm3 = vcmp.ge.f32.partialorder %v723_v26, 0.0  ;;  %v759_v29 = vmul.f32 0.2, %v723_v26  ;;  %v776_v33 = vsel %vm740_vm2, %v722_v20, %v758_v25 }
 0x142   : > { %v900_v30 = vadd.f32 %v899_v27, %v883_v24  ;;  %v941_v32 = vadd.f32 %v940_v17, %v924_v28 }
 0x143   : > { %v777_v34 = vsel %vm741_vm3, %v723_v26, %v759_v29 }
 0x144   : > { %v942_v35 = vadd.f32 %v941_v32, %v925_v31  ;;  %v786_v36 = vpack.c.bf16 %v777_v34, %v776_v33 }
 0x146   : > { %1206 = vst [vmem:[%s1599_s13 + $0x40] sm:$0xff] %v786_v36   ;;  %v884_v37 = vunpack.c.l.bf16 %v786_v36  ;;  %v885_v38 = vunpack.c.h.bf16 %v786_v36 }
 0x148   : > { %v901_v39 = vadd.f32 %v900_v30, %v884_v37  ;;  %v926_v40 = vmul.f32 %v884_v37, %v884_v37  ;;  %v927_v13 = vmul.f32 %v885_v38, %v885_v38 }
 0x14a   : > { %v902_v41 = vadd.f32 %v901_v39, %v885_v38  ;;  %v943_v42 = vadd.f32 %v942_v35, %v926_v40 }
 0x14c   : > { %v903_v43 = vrot.slane %v902_v41, 4  ;;  %v944_v44 = vadd.f32 %v943_v42, %v927_v13 }
 0x14e   : > { %v904_v45 = vadd.f32 %v903_v43, %v902_v41  ;;  %v945_v46 = vrot.slane %v944_v44, 4 }
 0x150   : > { %v905_v47 = vrot.slane %v904_v45, 2  ;;  %v946_v48 = vadd.f32 %v945_v46, %v944_v44 }
 0x152   : > { %v906_v49 = vadd.f32 %v905_v47, %v904_v45  ;;  %v947_v50 = vrot.slane %v946_v48, 2 }
 0x154   : > { %v907_v51 = vrot.slane %v906_v49, 1  ;;  %v948_v52 = vadd.f32 %v947_v50, %v946_v48 }
 0x156   : > { %v908_v53 = vadd.f32 %v907_v51, %v906_v49  ;;  %v949_v54 = vrot.slane %v948_v52, 1 }
 0x158   : > { %909 = vst [vmem:[%s238_s16] sm:$0x1] %v908_v53  ;;  %v950_v55 = vadd.f32 %v949_v54, %v948_v52 }
 0x15a   : > { %951 = vst [vmem:[%s241_s21] sm:$0x1] %v950_v55 }
 0x15b PF: > { %s16_s18 = sadd.s32 1, %s1398_s18  }
 0x15c   : > { %p13_p4 = scmp.ge.s32.totalorder %s16_s18, 4  }
 0x15e   :  { %15 = sbr.rel (!%p13_p4) target bundleno = 1 (0x1), region = 87 }

// kernel: encoder_forward.9
= control target key start
LH: loop header
LB: loop body
LE: loop exit
PB: predicated region body
PF: predicated region fallthrough
CT: control target
= control target key end

     0   :  { %s323_s12 = smov 0   ;;  %s346_s0 = inlined_call_operand.vmem [shape: bf16[2,36,128], index: 0, kind: input, shape index: {}]   ;;  %s347_s1 = inlined_call_operand.vmem [shape: f32[1,128], index: 1, kind: input, shape index: {}]   ;;  %s348_s2 = inlined_call_operand.vmem [shape: f32[1,128], index: 2, kind: input, shape index: {}]   ;;  %s349_s3 = inlined_call_operand.vmem [shape: f32[2,36,128], index: 3, kind: output, shape index: {}]  }
   0x1 LB: > { %s265_s13 = sadd.s32 4294967295, %s301_s12   ;;  %p269_p0 = scmp.ge.s32.totalorder %s301_s12, 1  ;;  %s301_s12 = sphi %s323_s12, %s13_s12  }
   0x2   : > { %p137_p1 = scmp.lt.s32.totalorder %s301_s12, 3 }
   0x4   : > { %p138_p2 = pnand %p269_p0, %p137_p1 }
   0x5   : > { %p161_p3 = scmp.lt.s32.totalorder (!%p138_p2), %s265_s13, 1  ;;  %v272_v0 = vld [vmem:[%s347_s1] ss:$0 sm:$0xff] (!%p138_p2) }
   0x6   : > { %141 = sbr.rel (%p138_p2) target bundleno = 27 (0x1b), region = 32  ;;  %v273_v8 = vld [vmem:[%s348_s2] ss:$0 sm:$0xff] (!%p138_p2) }
   0xd   : > { %s351_s13 = smov (!%p161_p3, %s265_s13), 1 }
   0xe   : > { %s285_s14 = smul.u32 20, %s351_s13 }
   0xf   : > { %s286_s20 = smul.u32 40, %s351_s13 }
  0x10   : > { %s165_s17 = scalar_lea.vmem %s346_s0, %s285_s14 }
  0x11   : > { %v277_v1 = vld [vmem:[%s165_s17] sm:$0xff]   ;;  %v284_v2 = vld [vmem:[%s165_s17 + $0x8] sm:$0xff]   ;;  %v175_v3 = vld [vmem:[%s165_s17 + $0x10] sm:$0x3]  ;;  %s170_s25 = scalar_lea.vmem %s349_s3, %s286_s20 }
  0x12   : > { %v278_v4 = vunpack.c.l.bf16 %v277_v1  ;;  %v279_v5 = vunpack.c.h.bf16 %v277_v1  ;;  %v282_v6 = vunpack.c.l.bf16 %v284_v2  ;;  %v283_v7 = vunpack.c.h.bf16 %v284_v2 }
  0x13   : > { %v180_v9 = vunpack.c.l.bf16 %v175_v3 }
  0x14   : > { %v188_v10 = vmul.f32 %v278_v4, %v272_v0  ;;  %v189_v11 = vmul.f32 %v279_v5, %v272_v0  ;;  %v190_v12 = vmul.f32 %v282_v6, %v272_v0  ;;  %v191_v13 = vmul.f32 %v283_v7, %v272_v0 }
  0x15   : > { %v192_v14 = vmul.f32 %v272_v0, %v180_v9 }
  0x16   : > { %v200_v15 = vadd.f32 %v273_v8, %v188_v10  ;;  %v201_v16 = vadd.f32 %v273_v8, %v189_v11  ;;  %v202_v17 = vadd.f32 %v273_v8, %v190_v12  ;;  %v203_v18 = vadd.f32 %v273_v8, %v191_v13 }
  0x17   : > { %v204_v19 = vadd.f32 %v273_v8, %v192_v14 }
  0x18   : > { %205 = vst [vmem:[%s170_s25] sm:$0xff] %v200_v15  ;;  %206 = vst [vmem:[%s170_s25 + $0x8] sm:$0xff] %v201_v16 }
  0x19   : > { %207 = vst [vmem:[%s170_s25 + $0x10] sm:$0xff] %v202_v17  ;;  %208 = vst [vmem:[%s170_s25 + $0x18] sm:$0xff] %v203_v18 }
  0x1a   : > { %209 = vst [vmem:[%s170_s25 + $0x20] sm:$0xf] %v204_v19 }
  0x1b PF: > { %s13_s12 = sadd.s32 1, %s301_s12  }
  0x1c   : > { %p10_p4 = scmp.ge.s32.totalorder %s13_s12, 4  }
  0x1e   :  { %12 = sbr.rel (!%p10_p4) target bundleno = 1 (0x1), region = 62 }

// kernel: encoder_forward.8
= control target key start
LH: loop header
LB: loop body
LE: loop exit
PB: predicated region body
PF: predicated region fallthrough
CT: control target
= control target key end

     0   :  { %s1121_s18 = smov 0   ;;  %s1262_s0 = inlined_call_operand.vmem [shape: bf16[2,42,256], index: 0, kind: input, shape index: {}]   ;;  %s1263_s1 = inlined_call_operand.vmem [shape: bf16[2,256,128], index: 1, kind: input, shape index: {}]   ;;  %s1264_s2 = inlined_call_operand.vmem [shape: f32[1,128], index: 2, kind: input, shape index: {}]   ;;  %s1265_s3 = inlined_call_operand.vmem [shape: bf16[2,36,128], index: 3, kind: output, shape index: {0}]   ;;  %s1266_s4 = inlined_call_operand.vmem [shape: f32[2,1,128], index: 4, kind: output, shape index: {1}]   ;;  %s1267_s5 = inlined_call_operand.vmem [shape: f32[2,1,128], index: 5, kind: output, shape index: {2}]  }
   0x1 LB: > { %s860_s19 = sadd.s32 4294967295, %s1089_s18   ;;  %p864_p0 = scmp.ge.s32.totalorder %s1089_s18, 1  ;;  %s1089_s18 = sphi %s1121_s18, %s16_s18  }
   0x2   : > { %p192_p1 = scmp.lt.s32.totalorder %s1089_s18, 3 }
   0x4   : > { %p193_p2 = pnand %p864_p0, %p192_p1 }
   0x5   : > { %v1041_v0 = vld [vmem:[%s1263_s1 + $0xc0] sm:$0xff] (!%p193_p2)   ;;  %v1045_v4 = vld [vmem:[%s1263_s1 + $0xc8] sm:$0xff] (!%p193_p2)   ;;  %v1049_v8 = vld [vmem:[%s1263_s1 + $0xd0] sm:$0xff] (!%p193_p2)   ;;  %p226_p3 = scmp.lt.s32.totalorder (!%p193_p2), %s860_s19, 1  ;;  %vm338_vm0 = vcmask (!%p193_p2), 1044480   ;;  %vm728_vm6 = vcmask (!%p193_p2), 1043456  }
   0x6   : > { %196 = sbr.rel (%p193_p2) target bundleno = 300 (0x12c), region = 32  ;;  %v1042_v1 = vld [vmem:[%s1263_s1 + $0x40] sm:$0xff] (!%p193_p2)   ;;  %963 = vmatprep.subr.bf16.mxu0 (!%p193_p2), %v1041_v0  ;;  %v1046_v5 = vld [vmem:[%s1263_s1 + $0x48] sm:$0xff] (!%p193_p2)   ;;  %v1050_v9 = vld [vmem:[%s1263_s1 + $0x50] sm:$0xff] (!%p193_p2)  }
   0x7   : > { %v1043_v2 = vld [vmem:[%s1263_s1 + $0x80] sm:$0xff] (!%p193_p2)   ;;  %997 = vmatprep.subr.bf16.mxu1 (!%p193_p2), %v1042_v1  ;;  %v1047_v6 = vld [vmem:[%s1263_s1 + $0x88] sm:$0xff] (!%p193_p2)   ;;  %v1051_v10 = vld [vmem:[%s1263_s1 + $0x90] sm:$0xff] (!%p193_p2)  }
   0x8   : > { %v1044_v3 = vld [vmem:[%s1263_s1] sm:$0xff] (!%p193_p2)   ;;  %964 = vmatpush3.bf16.msra.mxu0 (!%p193_p2), %v1043_v2  ;;  %v1048_v7 = vld [vmem:[%s1263_s1 + $0x8] sm:$0xff] (!%p193_p2)   ;;  %v1052_v11 = vld [vmem:[%s1263_s1 + $0x10] sm:$0xff] (!%p193_p2)  }
   0x9   : > { %998 = vmatpush3.bf16.msra.mxu1 (!%p193_p2), %v1044_v3  ;;  %965 = vmatprep.subr.bf16.mxu0 (!%p193_p2), %v1045_v4  ;;  %v1053_v12 = vld [vmem:[%s1263_s1 + $0xd8] sm:$0xff] (!%p193_p2)   ;;  %v1057_v16 = vld [vmem:[%s1263_s1 + $0xe0] sm:$0xff] (!%p193_p2)   ;;  %v1061_v20 = vld [vmem:[%s1263_s1 + $0xe8] sm:$0xff] (!%p193_p2)  }
   0xa   : > { %999 = vmatprep.subr.bf16.mxu1 (!%p193_p2), %v1046_v5  ;;  %v1054_v13 = vld [vmem:[%s1263_s1 + $0x58] sm:$0xff] (!%p193_p2)   ;;  %v1058_v17 = vld [vmem:[%s1263_s1 + $0x60] sm:$0xff] (!%p193_p2)   ;;  %v1062_v21 = vld [vmem:[%s1263_s1 + $0x68] sm:$0xff] (!%p193_p2)  }
   0xb   : > { %v1055_v14 = vld [vmem:[%s1263_s1 + $0x98] sm:$0xff] (!%p193_p2)   ;;  %v1059_v18 = vld [vmem:[%s1263_s1 + $0xa0] sm:$0xff] (!%p193_p2)   ;;  %v1063_v22 = vld [vmem:[%s1263_s1 + $0xa8] sm:$0xff] (!%p193_p2)  }
   0xc   : > { %966 = vmatpush3.bf16.msra.mxu0 (!%p193_p2), %v1047_v6  ;;  %v1056_v15 = vld [vmem:[%s1263_s1 + $0x18] sm:$0xff] (!%p193_p2)   ;;  %v1060_v19 = vld [vmem:[%s1263_s1 + $0x20] sm:$0xff] (!%p193_p2)   ;;  %v1064_v23 = vld [vmem:[%s1263_s1 + $0x28] sm:$0xff] (!%p193_p2)  }
   0xd   : > { %1000 = vmatpush3.bf16.msra.mxu1 %v1048_v7  ;;  %967 = vmatprep.subr.bf16.mxu0 %v1049_v8  ;;  %s1269_s19 = smov (!%p226_p3, %s860_s19), 1  ;;  %v1065_v24 = vld [vmem:[%s1263_s1 + $0xf0] sm:$0xff]   ;;  %v1069_v28 = vld [vmem:[%s1263_s1 + $0xf8] sm:$0xff]   ;;  %v939_v62 = vld [vmem:[%s1264_s2] ss:$0 sm:$0xff] }
   0xe   : > { %1001 = vmatprep.subr.bf16.mxu1 %v1050_v9  ;;  %v1066_v25 = vld [vmem:[%s1263_s1 + $0x70] sm:$0xff]   ;;  %s1031_s28 = smul.u32 48, %s1269_s19  ;;  %v1070_v29 = vld [vmem:[%s1263_s1 + $0x78] sm:$0xff]   ;;  %s238_s27 = scalar_lea.vmem %s1266_s4, %s1269_s19 }
   0xf   : > { %v1067_v26 = vld [vmem:[%s1263_s1 + $0xb0] sm:$0xff]   ;;  %v1071_v30 = vld [vmem:[%s1263_s1 + $0xb8] sm:$0xff]   ;;  %s1032_s21 = smul.u32 20, %s1269_s19  ;;  %s241_s30 = scalar_lea.vmem %s1267_s5, %s1269_s19 }
  0x10   : > { %968 = vmatpush3.bf16.msra.mxu0 %v1051_v10  ;;  %v1068_v27 = vld [vmem:[%s1263_s1 + $0x30] sm:$0xff]   ;;  %s230_s14 = scalar_lea.vmem %s1262_s0, %s1031_s28  ;;  %v1072_v31 = vld [vmem:[%s1263_s1 + $0x38] sm:$0xff]  }
  0x11   : > { %1002 = vmatpush3.bf16.msra.mxu1 %v1052_v11  ;;  %969 = vmatprep.subr.bf16.mxu0 %v1053_v12  ;;  %v1073_v32 = vld [vmem:[%s230_s14 + $0x4] ss:$8 sps:$4 sm:$0xff]   ;;  %v1075_v33 = vld [vmem:[%s230_s14 + $0x14] ss:$8 sps:$4 sm:$0xff]   ;;  %v1077_v34 = vld [vmem:[%s230_s14] ss:$8 sps:$4 sm:$0xff]   ;;  %s1246_s24 = scalar_lea.vmem %s1265_s3, %s1032_s21 }
  0x12   : > { %1003 = vmatprep.subr.bf16.mxu1 %v1054_v13  ;;  %v1078_v35 = vld [vmem:[%s230_s14 + $0x10] ss:$8 sps:$4 sm:$0xff]   ;;  %v247_v36 = vld [vmem:[%s230_s14 + $0x20] sm:$0xff]  ;;  %v342_v37 = vrot.slane %v1073_v32, 3  ;;  %v343_v38 = vrot.slane %v1075_v33, 3  ;;  %643 = vmatprep.mubr.bf16.mxu1 %v1073_v32  ;;  %v339_v40 = vrot.slane %v1077_v34, 3 }
  0x13   : > { %v248_v39 = vld [vmem:[%s230_s14 + $0x28] sm:$0x11]  ;;  %v340_v41 = vrot.slane %v1078_v35, 3  ;;  %v922_v49 = vcombine.high %v247_v36, %v247_v36  ;;  %v921_v51 = vcombine.low %v247_v36, %v247_v36 }
  0x14   : > { %970 = vmatpush3.bf16.msra.mxu0 %v1055_v14  ;;  %v904_v42 = vcombine.high %v247_v36, %v248_v39  ;;  %v903_v43 = vcombine.low %v247_v36, %v248_v39  ;;  %v344_v44 = vsel %vm338_vm0, %v342_v37, %v343_v38 }
  0x15   : > { %1004 = vmatpush3.bf16.msra.mxu1 %v1056_v15  ;;  %971 = vmatprep.subr.bf16.mxu0 %v1057_v16  ;;  %v341_v45 = vsel %vm338_vm0, %v339_v40, %v340_v41 }
  0x16   : > { %1005 = vmatprep.subr.bf16.mxu1 %v1058_v17  ;;  %483 = vmatprep.mubr.bf16.mxu0 %v344_v44  ;;  %v347_v46 = vrot.slane %v904_v42, 3  ;;  %v345_v48 = vrot.slane %v903_v43, 3 }
  0x18   : > { %972 = vmatpush3.bf16.msra.mxu0 %v1059_v18  ;;  %v348_v47 = vsel %vm338_vm0, %v343_v38, %v347_v46  ;;  %v346_v50 = vsel %vm338_vm0, %v340_v41, %v345_v48 }
  0x19   : > { %1006 = vmatpush3.bf16.msra.mxu1 %v1060_v19  ;;  %973 = vmatprep.subr.bf16.mxu0 %v1061_v20 }
  0x1a   : > { %1007 = vmatprep.subr.bf16.mxu1 %v1062_v21 }
  0x1c   : > { %974 = vmatpush3.bf16.msra.mxu0 %v1063_v22 }
  0x1d   : > { %1008 = vmatpush3.bf16.msra.mxu1 %v1064_v23  ;;  %975 = vmatprep.subr.bf16.mxu0 %v1065_v24 }
  0x1e   : > { %1009 = vmatprep.subr.bf16.mxu1 %v1066_v25 }
  0x20   : > { %976 = vmatpush3.bf16.msra.mxu0 %v1067_v26 }
  0x21   : > { %1010 = vmatpush3.bf16.msra.mxu1 %v1068_v27  ;;  %977 = vmatprep.subr.bf16.mxu0 %v1069_v28 }
  0x22   : > { %1011 = vmatprep.subr.bf16.mxu1 %v1070_v29 }
  0x24   : > { %978 = vmatpush3.bf16.msra.mxu0 %v1071_v30 }
  0x25   : > { %1012 = vmatpush3.bf16.msra.mxu1 %v1072_v31 }
  0x27   : > { %484 = vmatmul.mubr.bf16.vlgmr.msra.gmra.mrb[0].mxu0 %v341_v45 }
  0x28   : > { %644 = vmatmul.mubr.bf16.vlgmr.msra.gmra.mrb[0].mxu1 %v1077_v34  ;;  %491 = vmatprep.mubr.bf16.mxu0 %v348_v47 }
  0x29   : > { %651 = vmatprep.mubr.bf16.mxu1 %v1075_v33 }
  0x2f   : > { %492 = vmatmul.mubr.bf16.gmra.mrb[4].mxu0 %v346_v50 }
  0x30   : > { %652 = vmatmul.mubr.bf16.gmra.mrb[4].mxu1 %v1078_v35  ;;  %499 = vmatprep.mubr.bf16.mxu0 %v347_v46 }
  0x31   : > { %659 = vmatprep.mubr.bf16.mxu1 %v922_v49 }
  0x37   : > { %500 = vmatmul.mubr.bf16.gmra.mrb[8].mxu0 %v345_v48 }
  0x38   : > { %660 = vmatmul.mubr.bf16.gmra.mrb[8].mxu1 %v921_v51 }
  0xfa   : > { %v979_v56 = vpop.f32.mrb[0].mxu0 }
  0xfb   : > { %v1013_v52 = vpop.f32.mrb[0].mxu1  ;;  %v980_v58 = vpop.f32.mrb[1].mxu0 }
  0xfc   : > { %v1014_v53 = vpop.f32.mrb[1].mxu1  ;;  %v981_v60 = vadd.f32 %v980_v58, %v979_v56  ;;  %v982_v61 = vpop.f32.mrb[2].mxu0 }
  0xfd   : > { %v1015_v54 = vadd.f32 %v1014_v53, %v1013_v52  ;;  %v1016_v55 = vpop.f32.mrb[2].mxu1  ;;  %v983_v63 = vpop.f32.mrb[3].mxu0 }
  0xfe   : > { %v1017_v57 = vpop.f32.mrb[3].mxu1  ;;  %v984_v1 = vadd.f32 %v983_v63, %v982_v61 }
  0xff   : > { %v1018_v59 = vadd.f32 %v1017_v57, %v1016_v55  ;;  %v646_v0 = vadd.f32 %v1015_v54, %v981_v60 }
 0x101   : > { %v674_v3 = vadd.f32 %v939_v62, %v646_v0  ;;  %v649_v4 = vadd.f32 %v1018_v59, %v984_v1 }
 0x102   : > { %v985_v10 = vpop.f32.mrb[4].mxu0 }
 0x103   : > { %v1019_v2 = vpop.f32.mrb[4].mxu1  ;;  %v684_v8 = vmul.f32 0.2, %v674_v3  ;;  %v675_v9 = vadd.f32 %v939_v62, %v649_v4  ;;  %vm679_vm1 = vcmp.ge.f32.partialorder %v674_v3, 0.0  ;;  %v986_v12 = vpop.f32.mrb[5].mxu0 }
 0x104   : > { %v1020_v5 = vpop.f32.mrb[5].mxu1  ;;  %v987_v15 = vadd.f32 %v986_v12, %v985_v10  ;;  %v988_v16 = vpop.f32.mrb[6].mxu0 }
 0x105   : > { %v1021_v6 = vadd.f32 %v1020_v5, %v1019_v2  ;;  %v1022_v7 = vpop.f32.mrb[6].mxu1  ;;  %vm680_vm2 = vcmp.ge.f32.partialorder %v675_v9, 0.0  ;;  %v685_v14 = vmul.f32 0.2, %v675_v9  ;;  %v989_v17 = vpop.f32.mrb[7].mxu0  ;;  %v689_v18 = vsel %vm679_vm1, %v674_v3, %v684_v8 }
 0x106   : > { %v1023_v11 = vpop.f32.mrb[7].mxu1  ;;  %v990_v21 = vadd.f32 %v989_v17, %v988_v16 }
 0x107   : > { %v1024_v13 = vadd.f32 %v1023_v11, %v1022_v7  ;;  %v690_v19 = vsel %vm680_vm2, %v675_v9, %v685_v14  ;;  %v654_v20 = vadd.f32 %v1021_v6, %v987_v15 }
 0x108   : > { %v694_v22 = vpack.c.bf16 %v690_v19, %v689_v18 }
 0x109   : > { %v676_v24 = vadd.f32 %v939_v62, %v654_v20  ;;  %v657_v25 = vadd.f32 %v1024_v13, %v990_v21 }
 0x10a   : > { %956 = vst [vmem:[%s1246_s24] sm:$0xff] %v694_v22   ;;  %v991_v31 = vpop.f32.mrb[8].mxu0  ;;  %v720_v33 = vunpack.c.l.bf16 %v694_v22  ;;  %v721_v34 = vunpack.c.h.bf16 %v694_v22 }
 0x10b   : > { %v1025_v23 = vpop.f32.mrb[8].mxu1  ;;  %v686_v29 = vmul.f32 0.2, %v676_v24  ;;  %v677_v30 = vadd.f32 %v939_v62, %v657_v25  ;;  %vm681_vm3 = vcmp.ge.f32.partialorder %v676_v24, 0.0  ;;  %v992_v35 = vpop.f32.mrb[9].mxu0 }
 0x10c   : > { %v1026_v26 = vpop.f32.mrb[9].mxu1  ;;  %v993_v37 = vadd.f32 %v992_v35, %v991_v31  ;;  %v994_v38 = vpop.f32.mrb[10].mxu0  ;;  %v738_v43 = vmul.f32 %v720_v33, %v720_v33  ;;  %v739_v44 = vmul.f32 %v721_v34, %v721_v34  ;;  %v725_v47 = vadd.f32 %v721_v34, %v720_v33 }
 0x10d   : > { %v1027_v27 = vadd.f32 %v1026_v26, %v1025_v23  ;;  %v1028_v28 = vpop.f32.mrb[10].mxu1  ;;  %vm682_vm4 = vcmp.ge.f32.partialorder %v677_v30, 0.0  ;;  %v687_v36 = vmul.f32 0.2, %v677_v30  ;;  %v995_v39 = vpop.f32.mrb[11].mxu0  ;;  %v691_v40 = vsel %vm681_vm3, %v676_v24, %v686_v29 }
 0x10e   : > { %v1029_v32 = vpop.f32.mrb[11].mxu1  ;;  %v743_v51 = vadd.f32 %v739_v44, %v738_v43 }
 0x10f   : > { %v692_v41 = vsel %vm682_vm4, %v677_v30, %v687_v36  ;;  %v662_v42 = vadd.f32 %v1027_v27, %v993_v37 }
 0x110   : > { %v695_v45 = vpack.c.bf16 %v692_v41, %v691_v40 }
 0x111   : > { %v678_v46 = vadd.f32 %v939_v62, %v662_v42 }
 0x112   : > { %v722_v48 = vunpack.c.l.bf16 %v695_v45  ;;  %v723_v49 = vunpack.c.h.bf16 %v695_v45  ;;  %962 = vst [vmem:[%s1246_s24 + $0x8] sm:$0xff] %v695_v45  }
 0x113   : > { %vm683_vm5 = vcmp.ge.f32.partialorder %v678_v46, 0.0  ;;  %v688_v50 = vmul.f32 0.2, %v678_v46 }
 0x114   : > { %v726_v52 = vadd.f32 %v725_v47, %v722_v48  ;;  %v740_v53 = vmul.f32 %v722_v48, %v722_v48  ;;  %v741_v55 = vmul.f32 %v723_v49, %v723_v49 }
 0x115   : > { %v693_v54 = vsel %vm683_vm5, %v678_v46, %v688_v50 }
 0x116   : > { %v744_v56 = vadd.f32 %v743_v51, %v740_v53  ;;  %v696_v57 = vpack.c.bf16 %v693_v54, %v693_v54  ;;  %v727_v58 = vadd.f32 %v726_v52, %v723_v49 }
 0x118   : > { %719 = vst [vmem:[%s1246_s24 + $0x10] sm:$0x3] %v696_v57  ;;  %v724_v59 = vunpack.c.l.bf16 %v696_v57  ;;  %v745_v60 = vadd.f32 %v744_v56, %v741_v55 }
 0x11a   : > { %v729_v61 = vsel %vm728_vm6, %v724_v59, 0.0  ;;  %v742_v62 = vmul.f32 %v724_v59, %v724_v59 }
 0x11b   : > { %v730_v63 = vadd.f32 %v729_v61, %v727_v58 }
 0x11c   : > { %v746_v0 = vsel %vm728_vm6, %v742_v62, 0.0 }
 0x11d   : > { %v731_v1 = vrot.slane %v730_v63, 4  ;;  %v747_v2 = vadd.f32 %v746_v0, %v745_v60 }
 0x11f   : > { %v732_v3 = vadd.f32 %v731_v1, %v730_v63  ;;  %v748_v4 = vrot.slane %v747_v2, 4 }
 0x121   : > { %v733_v5 = vrot.slane %v732_v3, 2  ;;  %v749_v6 = vadd.f32 %v748_v4, %v747_v2 }
 0x123   : > { %v734_v7 = vadd.f32 %v733_v5, %v732_v3  ;;  %v750_v8 = vrot.slane %v749_v6, 2 }
 0x125   : > { %v735_v9 = vrot.slane %v734_v7, 1  ;;  %v751_v10 = vadd.f32 %v750_v8, %v749_v6 }
 0x127   : > { %v736_v11 = vadd.f32 %v735_v9, %v734_v7  ;;  %v752_v12 = vrot.slane %v751_v10, 1 }
 0x129   : > { %737 = vst [vmem:[%s238_s27] sm:$0x1] %v736_v11  ;;  %v753_v13 = vadd.f32 %v752_v12, %v751_v10 }
 0x12b   : > { %754 = vst [vmem:[%s241_s30] sm:$0x1] %v753_v13 }
 0x12c PF: > { %s16_s18 = sadd.s32 1, %s1089_s18  }
 0x12d   : > { %p13_p4 = scmp.ge.s32.totalorder %s16_s18, 4  }
 0x12f   :  { %15 = sbr.rel (!%p13_p4) target bundleno = 1 (0x1), region = 87 }

</bundles_post_ra>
